<compile_context>
chip_gen: v7x
topology: tpu7x:2x2x1
jax: 0.10.0
libtpu: 0.0.40
codegen_flags: <defaults>
</compile_context>

<pallas_src>
import numpy as np
import jax
import jax.numpy as jnp
from jax.experimental import pallas as pl
from jax.experimental.pallas import tpu as pltpu

NF = 32            # nf (channels at 4x4 resolution)
DLATENT = 32       # dlatent_size
H = W = 4
HW = H * W
SLAB = HW * NF     # 512: one sample = one lane-dense row
GAIN = float(np.sqrt(2.0))
LRELU_SLOPE = 0.2
EPS = 1e-8
PREC = jax.lax.Precision.HIGHEST   # reference only


# ----------------------------- Pallas kernel -------------------------------
def input_block_kernel(wlat_ref, noise_ref, pvec_ref, sw_ref, nw_ref,
                       cw_ref, pn_ref, out_ref):
    Bblk, S = out_ref.shape          # (samples per step, HW*C = 512)

    pv = pvec_ref[...]               # (6, S) position-replicated per-channel rows
    cbase = pv[0:1]                  # const + bias0 (position-major)
    y1s_b = pv[1:2]                  # style-scale bias epi1 (+1 folded)
    y1b_b = pv[2:3]                  # style-shift bias epi1
    y2s_b = pv[3:4]                  # style-scale bias epi2 (+1 folded)
    y2b_b = pv[4:5]                  # style-shift bias epi2
    cb    = pv[5:6]                  # conv bias

    # ---- both epilogues' style projections: ONE per-sample matmul ----------
    # wlat: (Bblk, 2D) rows [w1|w2]; sw: (2D, 4S) block-diag, position-replicated
    y = jnp.dot(wlat_ref[...], sw_ref[...],
                preferred_element_type=jnp.float32)              # (Bblk, 4S)
    y1s = y[:, 0 * S:1 * S] + y1s_b
    y1b = y[:, 1 * S:2 * S] + y1b_b
    y2s = y[:, 2 * S:3 * S] + y2s_b
    y2b = y[:, 3 * S:4 * S] + y2b_b

    # ---- both epilogues' noise-add terms: ONE per-sample matmul ------------
    # noise: (Bblk, 32) = [noise1(16 pos) | noise2(16 pos)]; nw: (32, 2S)
    nadd = jnp.dot(noise_ref[...], nw_ref[...],
                   preferred_element_type=jnp.float32)           # (Bblk, 2S)
    nadd1 = nadd[:, :S]
    nadd2 = nadd[:, S:]

    pn = pn_ref[...]                 # (S, S) spatial-mean projector

    def instance_norm(x):
        # per-sample spatial mean/var per channel, via matmuls (no XLU reduces)
        mu = jnp.dot(x, pn, preferred_element_type=jnp.float32)
        d = x - mu
        var = jnp.dot(d * d, pn, preferred_element_type=jnp.float32)
        return d * jax.lax.rsqrt(var + EPS)

    def epilogue(x, nadd_t, ys, yb):
        # LayerOut: noise add -> LeakyReLU(0.2) -> instance norm -> style mod
        x = x + nadd_t
        x = jnp.where(x >= 0, x, LRELU_SLOPE * x)
        x = instance_norm(x)
        return x * ys + yb

    # ---- const learned input broadcast over the samples of this block ------
    x = jnp.broadcast_to(cbase, (Bblk, S))
    x = epilogue(x, nadd1, y1s, y1b)

    # ---- 3x3 "same" conv: ONE (S, S) matmul (shifts + border masks baked in)
    x = jnp.dot(x, cw_ref[...], preferred_element_type=jnp.float32) + cb

    # ---- second epilogue + store --------------------------------------------
    x = epilogue(x, nadd2, y2s, y2b)
    out_ref[...] = x.astype(out_ref.dtype)


# ----------------------------- wrapper / glue -------------------------------
def _choose_grid(batch):
    """One row per sample.  Large per-step batches amortize the ~600-cycle
    per-step overhead; keep per-step activations a few MiB (well under VMEM
    on v5e/v6e 128 MiB and v7x 64 MiB).  Keep >=2 even steps only once the
    batch is large enough to be worth splitting across v7x's 2 TensorCores."""
    max_bblk = 256
    nblk = max(1, pl.cdiv(batch, max_bblk))
    if batch >= 128 and nblk < 2:
        nblk = 2                      # feed both v7x TensorCores
    if nblk > 1 and nblk % 2:
        nblk += 1                     # even step count keeps the 2 TCs balanced
    bblk = pl.cdiv(batch, nblk)
    bblk = pl.cdiv(bblk, 8) * 8       # sublane-align the per-step row count
    return nblk, bblk


def make_params(key):
    ks = jax.random.split(key, 8)
    style_mul = 1.0 / np.sqrt(DLATENT)        # equalized-lr mul, gain=1.0
    conv_mul = GAIN / np.sqrt(NF * 3 * 3)     # equalized-lr mul, gain=sqrt(2)
    return dict(
        const=jnp.ones((HW, NF), jnp.float32),     # nn.Parameter(ones(1,nf,4,4))
        bias0=jnp.ones((1, NF), jnp.float32),      # nn.Parameter(ones(nf))
        nw1=0.1 * jax.random.normal(ks[0], (1, NF), jnp.float32),
        sw1=style_mul * jax.random.normal(ks[1], (2, DLATENT, NF), jnp.float32),
        sb1=0.1 * jax.random.normal(ks[2], (2, NF), jnp.float32),
        cw=conv_mul * jax.random.normal(ks[3], (9, NF, NF), jnp.float32),
        cb=0.1 * jax.random.normal(ks[4], (1, NF), jnp.float32),
        nw2=0.1 * jax.random.normal(ks[5], (1, NF), jnp.float32),
        sw2=style_mul * jax.random.normal(ks[6], (2, DLATENT, NF), jnp.float32),
        sb2=0.1 * jax.random.normal(ks[7], (2, NF), jnp.float32),
    )


def input_block_forward(dlatents, noise, p):
    """dlatents: (B, 2, D) f32; noise: (B, HW, 2) f32 ([...,0]=epi1, [...,1]=epi2)."""
    B = dlatents.shape[0]
    C, D, S = NF, DLATENT, SLAB
    nblk, bblk = _choose_grid(B)
    Bpad = nblk * bblk

    # ---- constant parameter packing (layout prep, outside the kernel) ------
    def rep_pos(v):                       # (1, C) -> (1, S) replicated over positions
        return jnp.tile(v.reshape(1, 1, C), (1, HW, 1)).reshape(1, S)

    cbase = (p["const"] + p["bias0"]).reshape(1, S)          # position-major
    pvec = jnp.concatenate([
        cbase,
        rep_pos(p["sb1"][0:1] + 1.0),
        rep_pos(p["sb1"][1:2]),
        rep_pos(p["sb2"][0:1] + 1.0),
        rep_pos(p["sb2"][1:2]),
        rep_pos(p["cb"]),
    ], axis=0).astype(jnp.float32)                           # (6, S)

    # style weights, block-diag over [w1|w2], replicated across the 16 positions
    def rep_style(w):                     # (D, C) -> (D, S)
        return jnp.tile(w.reshape(D, 1, C), (1, HW, 1)).reshape(D, S)
    zds = jnp.zeros((D, S), jnp.float32)
    swrep = jnp.concatenate([
        jnp.concatenate([rep_style(p["sw1"][0]), rep_style(p["sw1"][1]), zds, zds], axis=1),
        jnp.concatenate([zds, zds, rep_style(p["sw2"][0]), rep_style(p["sw2"][1])], axis=1),
    ], axis=0).astype(jnp.float32)                           # (2D, 4S)

    # noise-weight matrices: noise value (per position) * per-channel weight
    eye16 = jnp.eye(HW, dtype=jnp.float32)
    nw1_blk = (eye16[:, :, None] * p["nw1"].reshape(1, 1, C)).reshape(HW, S)
    nw2_blk = (eye16[:, :, None] * p["nw2"].reshape(1, 1, C)).reshape(HW, S)
    zhs = jnp.zeros((HW, S), jnp.float32)
    nwall = jnp.concatenate([
        jnp.concatenate([nw1_blk, zhs], axis=1),
        jnp.concatenate([zhs, nw2_blk], axis=1),
    ], axis=0).astype(jnp.float32)                           # (2*HW, 2S)

    # 3x3 SAME conv baked into a (S, S) matrix: out[q*C+co] = sum x[p*C+ci]*CW[...]
    adj = np.zeros((9, HW, HW), np.float32)
    for q in range(HW):
        qh, qw = q // W, q % W
        for dy in (-1, 0, 1):
            for dx in (-1, 0, 1):
                ph, pw = qh + dy, qw + dx
                if 0 <= ph < H and 0 <= pw < W:
                    t = (dy + 1) * 3 + (dx + 1)
                    adj[t, ph * W + pw, q] = 1.0
    cw512 = jnp.einsum("tpq,tio->piqo", jnp.asarray(adj), p["cw"]) \
               .reshape(S, S).astype(jnp.float32)            # (S, S)

    # spatial-mean projector: mean over positions per channel, replicated back
    pnorm = jnp.tile(jnp.eye(C, dtype=jnp.float32) / HW, (HW, HW))   # (S, S)

    # ---- per-sample inputs (no per-row replication; pad batch to nblk*bblk) -
    dl, nz = dlatents, noise
    if Bpad != B:
        dl = jnp.concatenate([dl, jnp.zeros((Bpad - B, 2, D), dl.dtype)], axis=0)
        nz = jnp.concatenate([nz, jnp.zeros((Bpad - B, HW, 2), nz.dtype)], axis=0)
    wlat_p = dl.reshape(Bpad, 2 * D).reshape(nblk, bblk, 2 * D).astype(jnp.float32)
    noise_p = nz.transpose(0, 2, 1).reshape(Bpad, 2 * HW) \
                .reshape(nblk, bblk, 2 * HW).astype(jnp.float32)

    out = pl.pallas_call(
        input_block_kernel,
        out_shape=jax.ShapeDtypeStruct((nblk, bblk, S), jnp.float32),
        grid_spec=pltpu.PrefetchScalarGridSpec(
            num_scalar_prefetch=0,
            grid=(nblk,),
            in_specs=[
                pl.BlockSpec((None, bblk, 2 * D), lambda b: (b, 0, 0)),   # latents
                pl.BlockSpec((None, bblk, 2 * HW), lambda b: (b, 0, 0)),  # noise 1+2
                pl.BlockSpec((6, S), lambda b: (0, 0)),                   # packed vecs
                pl.BlockSpec((2 * D, 4 * S), lambda b: (0, 0)),           # style weights
                pl.BlockSpec((2 * HW, 2 * S), lambda b: (0, 0)),          # noise weights
                pl.BlockSpec((S, S), lambda b: (0, 0)),                   # conv weights
                pl.BlockSpec((S, S), lambda b: (0, 0)),                   # mean projector
            ],
            out_specs=pl.BlockSpec((None, bblk, S), lambda b: (b, 0, 0)),
        ),
        compiler_params=pltpu.CompilerParams(
            dimension_semantics=("parallel",)),
    )(wlat_p, noise_p, pvec, swrep, nwall, cw512, pnorm)

    return out.reshape(Bpad, HW, C)[:B]


# ----------------------------- pure-JAX reference (NCHW, mirrors PyTorch) ---
def ref_forward(dlatents, noise, p):
    B = dlatents.shape[0]
    const_nchw = p["const"].reshape(H, W, NF).transpose(2, 0, 1)[None]
    x = jnp.broadcast_to(const_nchw, (B, NF, H, W)) + p["bias0"].reshape(1, NF, 1, 1)
    n1 = noise[:, :, 0].reshape(B, 1, H, W)
    n2 = noise[:, :, 1].reshape(B, 1, H, W)

    def epi(x, nz, nw, sw, sb, wlat):
        x = x + nw.reshape(1, NF, 1, 1) * nz
        x = jnp.where(x >= 0, x, LRELU_SLOPE * x)
        mu = jnp.mean(x, axis=(2, 3), keepdims=True)
        var = jnp.mean((x - mu) ** 2, axis=(2, 3), keepdims=True)
        x = (x - mu) * jax.lax.rsqrt(var + EPS)
        ys = (jnp.dot(wlat, sw[0], precision=PREC) + sb[0]).reshape(B, NF, 1, 1)
        yb = (jnp.dot(wlat, sw[1], precision=PREC) + sb[1]).reshape(B, NF, 1, 1)
        return x * (ys + 1.0) + yb

    x = epi(x, n1, p["nw1"], p["sw1"], p["sb1"], dlatents[:, 0])
    wconv = p["cw"].reshape(3, 3, NF, NF).transpose(3, 2, 0, 1)   # OIHW
    x = jax.lax.conv_general_dilated(
        x, wconv, (1, 1), "SAME",
        dimension_numbers=("NCHW", "OIHW", "NCHW"),
        precision=PREC) + p["cb"].reshape(1, NF, 1, 1)
    x = epi(x, n2, p["nw2"], p["sw2"], p["sb2"], dlatents[:, 1])
    return x


if __name__ == "__main__":
    key = jax.random.PRNGKey(0)
    kp, kd, kn = jax.random.split(key, 3)
    params = make_params(kp)

    B = 2
    dlatents = jax.random.normal(kd, (B, 2, DLATENT), jnp.float32)
    noise = jax.random.normal(kn, (B, HW, 2), jnp.float32)   # [...,0]=epi1, [...,1]=epi2

    out = jax.block_until_ready(input_block_forward(dlatents, noise, params))

    ref = ref_forward(dlatents, noise, params)
    ref_hwc = ref.transpose(0, 2, 3, 1).reshape(B, HW, NF)
    # all matmuls use f32 operands now; tolerance left generous for HW matmul passes
    np.testing.assert_allclose(np.asarray(out), np.asarray(ref_hwc),
                               rtol=2e-2, atol=2e-2)
    print("KERNEL_OK")
</pallas_src>

<mosaic_0001>
module attributes {stable_mosaic.version = 11 : i64} {
  func.func @input_block_kernel(%arg0: i32, %arg1: memref<1x8x64xf32, #tpu.memory_space<vmem>>, %arg2: memref<1x8x32xf32, #tpu.memory_space<vmem>>, %arg3: memref<6x512xf32, #tpu.memory_space<vmem>>, %arg4: memref<64x2048xf32, #tpu.memory_space<vmem>>, %arg5: memref<32x1024xf32, #tpu.memory_space<vmem>>, %arg6: memref<512x512xf32, #tpu.memory_space<vmem>>, %arg7: memref<512x512xf32, #tpu.memory_space<vmem>>, %arg8: memref<1x8x512xf32, #tpu.memory_space<vmem>>) attributes {dimension_semantics = [#tpu.dimension_semantics<parallel>], iteration_bounds = array<i64: 1>, scalar_prefetch = 0 : i64, scratch_operands = 0 : i64, tpu.core_type = #tpu.core_type<tc>, window_params = [{transform_indices = @transform_0, window_bounds = array<i64: 1, 8, 64>}, {transform_indices = @transform_1, window_bounds = array<i64: 1, 8, 32>}, {pipeline_mode = #tpu.pipeline_mode<synchronous>, transform_indices = @transform_2, window_bounds = array<i64: 6, 512>}, {pipeline_mode = #tpu.pipeline_mode<synchronous>, transform_indices = @transform_3, window_bounds = array<i64: 64, 2048>}, {pipeline_mode = #tpu.pipeline_mode<synchronous>, transform_indices = @transform_4, window_bounds = array<i64: 32, 1024>}, {pipeline_mode = #tpu.pipeline_mode<synchronous>, transform_indices = @transform_5, window_bounds = array<i64: 512, 512>}, {pipeline_mode = #tpu.pipeline_mode<synchronous>, transform_indices = @transform_6, window_bounds = array<i64: 512, 512>}, {transform_indices = @transform_7, window_bounds = array<i64: 1, 8, 512>}]} {
    %c0 = arith.constant 0 : index
    %c0_0 = arith.constant 0 : index
    %0 = vector.load %arg3[%c0, %c0_0] : memref<6x512xf32, #tpu.memory_space<vmem>>, vector<6x512xf32>
    %1 = vector.extract_strided_slice %0 {offsets = [0, 0], sizes = [1, 512], strides = [1, 1]} : vector<6x512xf32> to vector<1x512xf32>
    %2 = vector.extract_strided_slice %0 {offsets = [1, 0], sizes = [1, 512], strides = [1, 1]} : vector<6x512xf32> to vector<1x512xf32>
    %3 = vector.extract_strided_slice %0 {offsets = [2, 0], sizes = [1, 512], strides = [1, 1]} : vector<6x512xf32> to vector<1x512xf32>
    %4 = vector.extract_strided_slice %0 {offsets = [3, 0], sizes = [1, 512], strides = [1, 1]} : vector<6x512xf32> to vector<1x512xf32>
    %5 = vector.extract_strided_slice %0 {offsets = [4, 0], sizes = [1, 512], strides = [1, 1]} : vector<6x512xf32> to vector<1x512xf32>
    %6 = vector.extract_strided_slice %0 {offsets = [5, 0], sizes = [1, 512], strides = [1, 1]} : vector<6x512xf32> to vector<1x512xf32>
    %c0_1 = arith.constant 0 : index
    %c0_2 = arith.constant 0 : index
    %c0_3 = arith.constant 0 : index
    %7 = vector.load %arg1[%c0_1, %c0_2, %c0_3] : memref<1x8x64xf32, #tpu.memory_space<vmem>>, vector<1x8x64xf32>
    %8 = vector.shape_cast %7 : vector<1x8x64xf32> to vector<8x64xf32>
    %c0_4 = arith.constant 0 : index
    %c0_5 = arith.constant 0 : index
    %9 = vector.load %arg4[%c0_4, %c0_5] : memref<64x2048xf32, #tpu.memory_space<vmem>>, vector<64x2048xf32>
    %cst = arith.constant dense<0.000000e+00> : vector<8x2048xf32>
    %10 = tpu.matmul %8, %9, %cst {dimension_numbers = #tpu.dot_dimension_numbers<[1], [0], [0], [1], [0, 0, 1, 1], [], []>} : vector<8x64xf32>, vector<64x2048xf32>, vector<8x2048xf32> -> vector<8x2048xf32>
    %11 = vector.extract_strided_slice %10 {offsets = [0, 0], sizes = [8, 512], strides = [1, 1]} : vector<8x2048xf32> to vector<8x512xf32>
    %12 = vector.broadcast %2 : vector<1x512xf32> to vector<8x512xf32>
    %13 = arith.addf %11, %12 : vector<8x512xf32>
    %14 = vector.extract_strided_slice %10 {offsets = [0, 512], sizes = [8, 512], strides = [1, 1]} : vector<8x2048xf32> to vector<8x512xf32>
    %15 = vector.broadcast %3 : vector<1x512xf32> to vector<8x512xf32>
    %16 = arith.addf %14, %15 : vector<8x512xf32>
    %17 = vector.extract_strided_slice %10 {offsets = [0, 1024], sizes = [8, 512], strides = [1, 1]} : vector<8x2048xf32> to vector<8x512xf32>
    %18 = vector.broadcast %4 : vector<1x512xf32> to vector<8x512xf32>
    %19 = arith.addf %17, %18 : vector<8x512xf32>
    %20 = vector.extract_strided_slice %10 {offsets = [0, 1536], sizes = [8, 512], strides = [1, 1]} : vector<8x2048xf32> to vector<8x512xf32>
    %21 = vector.broadcast %5 : vector<1x512xf32> to vector<8x512xf32>
    %22 = arith.addf %20, %21 : vector<8x512xf32>
    %c0_6 = arith.constant 0 : index
    %c0_7 = arith.constant 0 : index
    %c0_8 = arith.constant 0 : index
    %23 = vector.load %arg2[%c0_6, %c0_7, %c0_8] : memref<1x8x32xf32, #tpu.memory_space<vmem>>, vector<1x8x32xf32>
    %24 = vector.shape_cast %23 : vector<1x8x32xf32> to vector<8x32xf32>
    %c0_9 = arith.constant 0 : index
    %c0_10 = arith.constant 0 : index
    %25 = vector.load %arg5[%c0_9, %c0_10] : memref<32x1024xf32, #tpu.memory_space<vmem>>, vector<32x1024xf32>
    %cst_11 = arith.constant dense<0.000000e+00> : vector<8x1024xf32>
    %26 = tpu.matmul %24, %25, %cst_11 {dimension_numbers = #tpu.dot_dimension_numbers<[1], [0], [0], [1], [0, 0, 1, 1], [], []>} : vector<8x32xf32>, vector<32x1024xf32>, vector<8x1024xf32> -> vector<8x1024xf32>
    %27 = vector.extract_strided_slice %26 {offsets = [0, 0], sizes = [8, 512], strides = [1, 1]} : vector<8x1024xf32> to vector<8x512xf32>
    %28 = vector.extract_strided_slice %26 {offsets = [0, 512], sizes = [8, 512], strides = [1, 1]} : vector<8x1024xf32> to vector<8x512xf32>
    %c0_12 = arith.constant 0 : index
    %c0_13 = arith.constant 0 : index
    %29 = vector.load %arg7[%c0_12, %c0_13] : memref<512x512xf32, #tpu.memory_space<vmem>>, vector<512x512xf32>
    %30 = vector.shape_cast %1 : vector<1x512xf32> to vector<1x512xf32>
    %31 = vector.broadcast %30 : vector<1x512xf32> to vector<8x512xf32>
    %32 = arith.addf %31, %27 : vector<8x512xf32>
    %cst_14 = arith.constant 0.000000e+00 : f32
    %33 = vector.broadcast %cst_14 : f32 to vector<8x512xf32>
    %34 = arith.cmpf oge, %32, %33 : vector<8x512xf32>
    %cst_15 = arith.constant 2.000000e-01 : f32
    %35 = vector.broadcast %cst_15 : f32 to vector<8x512xf32>
    %36 = arith.mulf %35, %32 : vector<8x512xf32>
    %37 = arith.select %34, %32, %36 : vector<8x512xi1>, vector<8x512xf32>
    %cst_16 = arith.constant dense<0.000000e+00> : vector<8x512xf32>
    %38 = tpu.matmul %37, %29, %cst_16 {dimension_numbers = #tpu.dot_dimension_numbers<[1], [0], [0], [1], [0, 0, 1, 1], [], []>} : vector<8x512xf32>, vector<512x512xf32>, vector<8x512xf32> -> vector<8x512xf32>
    %39 = arith.subf %37, %38 : vector<8x512xf32>
    %40 = arith.mulf %39, %39 : vector<8x512xf32>
    %cst_17 = arith.constant dense<0.000000e+00> : vector<8x512xf32>
    %41 = tpu.matmul %40, %29, %cst_17 {dimension_numbers = #tpu.dot_dimension_numbers<[1], [0], [0], [1], [0, 0, 1, 1], [], []>} : vector<8x512xf32>, vector<512x512xf32>, vector<8x512xf32> -> vector<8x512xf32>
    %cst_18 = arith.constant 9.99999993E-9 : f32
    %42 = vector.broadcast %cst_18 : f32 to vector<8x512xf32>
    %43 = arith.addf %41, %42 : vector<8x512xf32>
    %44 = math.rsqrt %43 : vector<8x512xf32>
    %45 = arith.mulf %39, %44 : vector<8x512xf32>
    %46 = arith.mulf %45, %13 : vector<8x512xf32>
    %47 = arith.addf %46, %16 : vector<8x512xf32>
    %c0_19 = arith.constant 0 : index
    %c0_20 = arith.constant 0 : index
    %48 = vector.load %arg6[%c0_19, %c0_20] : memref<512x512xf32, #tpu.memory_space<vmem>>, vector<512x512xf32>
    %cst_21 = arith.constant dense<0.000000e+00> : vector<8x512xf32>
    %49 = tpu.matmul %47, %48, %cst_21 {dimension_numbers = #tpu.dot_dimension_numbers<[1], [0], [0], [1], [0, 0, 1, 1], [], []>} : vector<8x512xf32>, vector<512x512xf32>, vector<8x512xf32> -> vector<8x512xf32>
    %50 = vector.broadcast %6 : vector<1x512xf32> to vector<8x512xf32>
    %51 = arith.addf %49, %50 : vector<8x512xf32>
    %52 = arith.addf %51, %28 : vector<8x512xf32>
    %cst_22 = arith.constant 0.000000e+00 : f32
    %53 = vector.broadcast %cst_22 : f32 to vector<8x512xf32>
    %54 = arith.cmpf oge, %52, %53 : vector<8x512xf32>
    %cst_23 = arith.constant 2.000000e-01 : f32
    %55 = vector.broadcast %cst_23 : f32 to vector<8x512xf32>
    %56 = arith.mulf %55, %52 : vector<8x512xf32>
    %57 = arith.select %54, %52, %56 : vector<8x512xi1>, vector<8x512xf32>
    %cst_24 = arith.constant dense<0.000000e+00> : vector<8x512xf32>
    %58 = tpu.matmul %57, %29, %cst_24 {dimension_numbers = #tpu.dot_dimension_numbers<[1], [0], [0], [1], [0, 0, 1, 1], [], []>} : vector<8x512xf32>, vector<512x512xf32>, vector<8x512xf32> -> vector<8x512xf32>
    %59 = arith.subf %57, %58 : vector<8x512xf32>
    %60 = arith.mulf %59, %59 : vector<8x512xf32>
    %cst_25 = arith.constant dense<0.000000e+00> : vector<8x512xf32>
    %61 = tpu.matmul %60, %29, %cst_25 {dimension_numbers = #tpu.dot_dimension_numbers<[1], [0], [0], [1], [0, 0, 1, 1], [], []>} : vector<8x512xf32>, vector<512x512xf32>, vector<8x512xf32> -> vector<8x512xf32>
    %cst_26 = arith.constant 9.99999993E-9 : f32
    %62 = vector.broadcast %cst_26 : f32 to vector<8x512xf32>
    %63 = arith.addf %61, %62 : vector<8x512xf32>
    %64 = math.rsqrt %63 : vector<8x512xf32>
    %65 = arith.mulf %59, %64 : vector<8x512xf32>
    %66 = arith.mulf %65, %19 : vector<8x512xf32>
    %67 = arith.addf %66, %22 : vector<8x512xf32>
    %c0_27 = arith.constant 0 : index
    %c0_28 = arith.constant 0 : index
    %c0_29 = arith.constant 0 : index
    %68 = vector.load %arg8[%c0_27, %c0_28, %c0_29] : memref<1x8x512xf32, #tpu.memory_space<vmem>>, vector<1x8x512xf32>
    %69 = vector.shape_cast %68 : vector<1x8x512xf32> to vector<8x512xf32>
    %70 = vector.shape_cast %67 : vector<8x512xf32> to vector<1x8x512xf32>
    tpu.vector_store %arg8[%c0_27, %c0_28, %c0_29], %70 {strides = array<i32>} : memref<1x8x512xf32, #tpu.memory_space<vmem>>, vector<1x8x512xf32>,
    return
  }
  func.func @transform_0(%arg0: i32) -> (i32, i32, i32) {
    %c0_i32 = arith.constant 0 : i32
    %c0_i32_0 = arith.constant 0 : i32
    %c0_i32_1 = arith.constant 0 : i32
    return %arg0, %c0_i32, %c0_i32_0 : i32, i32, i32
  }
  func.func @transform_1(%arg0: i32) -> (i32, i32, i32) {
    %c0_i32 = arith.constant 0 : i32
    %c0_i32_0 = arith.constant 0 : i32
    %c0_i32_1 = arith.constant 0 : i32
    return %arg0, %c0_i32, %c0_i32_0 : i32, i32, i32
  }
  func.func @transform_2(%arg0: i32) -> (i32, i32) {
    %c0_i32 = arith.constant 0 : i32
    %c0_i32_0 = arith.constant 0 : i32
    %c0_i32_1 = arith.constant 0 : i32
    return %c0_i32, %c0_i32_0 : i32, i32
  }
  func.func @transform_3(%arg0: i32) -> (i32, i32) {
    %c0_i32 = arith.constant 0 : i32
    %c0_i32_0 = arith.constant 0 : i32
    %c0_i32_1 = arith.constant 0 : i32
    return %c0_i32, %c0_i32_0 : i32, i32
  }
  func.func @transform_4(%arg0: i32) -> (i32, i32) {
    %c0_i32 = arith.constant 0 : i32
    %c0_i32_0 = arith.constant 0 : i32
    %c0_i32_1 = arith.constant 0 : i32
    return %c0_i32, %c0_i32_0 : i32, i32
  }
  func.func @transform_5(%arg0: i32) -> (i32, i32) {
    %c0_i32 = arith.constant 0 : i32
    %c0_i32_0 = arith.constant 0 : i32
    %c0_i32_1 = arith.constant 0 : i32
    return %c0_i32, %c0_i32_0 : i32, i32
  }
  func.func @transform_6(%arg0: i32) -> (i32, i32) {
    %c0_i32 = arith.constant 0 : i32
    %c0_i32_0 = arith.constant 0 : i32
    %c0_i32_1 = arith.constant 0 : i32
    return %c0_i32, %c0_i32_0 : i32, i32
  }
  func.func @transform_7(%arg0: i32) -> (i32, i32, i32) {
    %c0_i32 = arith.constant 0 : i32
    %c0_i32_0 = arith.constant 0 : i32
    %c0_i32_1 = arith.constant 0 : i32
    return %arg0, %c0_i32, %c0_i32_0 : i32, i32, i32
  }
}

</mosaic_0001>

<bundles_post_ra>
// kernel: tpu_custom_call.1
= control target key start
LH: loop header
LB: loop body
LE: loop exit
PB: predicated region body
PF: predicated region fallthrough
CT: control target
= control target key end

     0   :  { %12 = vsyncpa [#allocation3], 0  ;;  %s6170_s0 = inlined_call_operand.hbm [shape: f32[1,8,64], index: 0, kind: input, shape index: {}]   ;;  %s6171_s1 = inlined_call_operand.hbm [shape: f32[1,8,32], index: 1, kind: input, shape index: {}]   ;;  %s6172_s2 = inlined_call_operand.hbm [shape: f32[6,512], index: 2, kind: input, shape index: {}]   ;;  %s6173_s3 = inlined_call_operand.hbm [shape: f32[64,2048], index: 3, kind: input, shape index: {}]   ;;  %s6174_s4 = inlined_call_operand.hbm [shape: f32[32,1024], index: 4, kind: input, shape index: {}]   ;;  %s6175_s5 = inlined_call_operand.hbm [shape: f32[512,512], index: 5, kind: input, shape index: {}]   ;;  %s6176_s6 = inlined_call_operand.hbm [shape: f32[512,512], index: 6, kind: input, shape index: {}]   ;;  %s6177_s7 = inlined_call_operand.hbm [shape: f32[1,8,512], index: 7, kind: output, shape index: {}]  }
   0x1   :  { %13 = vsyncpa [#allocation6], 0 }
   0x2   :  { %14 = vsyncpa [#allocation9], 0 }
   0x3   :  { %15 = vsyncpa [#allocation12], 0 }
   0x4   :  { %16 = vsyncpa [#allocation4], 0  ;;  %s5000_s24 = smov [#allocation5]   ;;  %s5001_s26 = smov [#allocation8]  }
   0x5   :  { %s33_s25 = sshll.u32 %s5000_s24, 4  ;;  %s52_s27 = sshll.u32 %s5001_s26, 4  ;;  %s34_s25 = int_to_ptr.vmem [resolvable:$true] %s33_s25  ;;  %s5055_s27 = int_to_ptr.vmem [resolvable:$true] %s52_s27 }
   0x6   :  { %s4814_s30 = scalar_lea.hbm %s6171_s1, 128 }
   0x7   :  { %p4815_p0 = scmp.ne.s32.totalorder %s6171_s1, %s4814_s30  ;;  %p4818_p1 = scmp.lt.u32.totalorder %s4814_s30, %s6171_s1 }
   0x9   :  { %p4820_p2 = pnand %p4818_p1, %p4815_p0 }
   0xb   :  { %4823 = shalt.err (!%p4820_p2)
}
   0xc   :  { %s4824_s12 = scalar_lea.vmem %s34_s25, 128  ;;  %p4829_p4 = scmp.lt.s32.totalorder %s34_s25, %s34_s25 }
   0xd   :  { %p4825_p3 = scmp.ne.s32.totalorder %s34_s25, %s4824_s12  ;;  %p4830_p5 = scmp.lt.s32.totalorder %s4824_s12, %s4824_s12 }
   0xf   :  { %p4831_p6 = por %p4830_p5, %p4829_p4 }
  0x11   :  { %p4832_p7 = pnand %p4831_p6, %p4825_p3 }
  0x13   :  { %4835 = shalt.err (!%p4832_p7)
}
  0x14   :  { %36 = dma.hbm_to_vmem [thread:$0]  %s6171_s1, 128, %s34_s25, [#allocation6]  }
  0x15   :  { %s4836_s17 = scalar_lea.hbm %s6173_s3, 16384 }
  0x16   :  { %p4837_p8 = scmp.ne.s32.totalorder %s6173_s3, %s4836_s17  ;;  %p4840_p9 = scmp.lt.u32.totalorder %s4836_s17, %s6173_s3 }
  0x18   :  { %p4842_p10 = pnand %p4840_p9, %p4837_p8 }
  0x1a   :  { %4845 = shalt.err (!%p4842_p10)
}
  0x1b   :  { %s4846_s22 = scalar_lea.vmem %s5055_s27, 16384  ;;  %p4851_p12 = scmp.lt.s32.totalorder %s5055_s27, %s5055_s27 }
  0x1c   :  { %p4847_p11 = scmp.ne.s32.totalorder %s5055_s27, %s4846_s22  ;;  %p4852_p13 = scmp.lt.s32.totalorder %s4846_s22, %s4846_s22 }
  0x1e   :  { %p4853_p0 = por %p4852_p13, %p4851_p12 }
  0x20   :  { %p4854_p1 = pnand %p4853_p0, %p4847_p11 }
  0x22   :  { %4857 = shalt.err (!%p4854_p1)
}
  0x23   :  { %s5002_s1 = smov 2048   ;;  %s5003_s23 = smov 128  }
  0x24   :  { %58 = dma.hbm_to_vmem [thread:$0]  %s6173_s3, 16384, %s5055_s27, [#allocation9], %s5002_s1, %s5002_s1, %s5003_s23  }
  0x25   :  { %s5004_s26 = smov [#allocation11]   ;;  %s4858_s8 = scalar_lea.hbm %s6175_s5, 32768 }
  0x26   :  { %s76_s28 = sshll.u32 %s5004_s26, 4  ;;  %p4859_p2 = scmp.ne.s32.totalorder %s6175_s5, %s4858_s8  ;;  %s77_s28 = int_to_ptr.vmem [resolvable:$true] %s76_s28 }
  0x27   :  { %p4862_p3 = scmp.lt.u32.totalorder %s4858_s8, %s6175_s5 }
  0x29   :  { %p4864_p4 = pnand %p4862_p3, %p4859_p2 }
  0x2b   :  { %4867 = shalt.err (!%p4864_p4)
}
  0x2c   :  { %s4868_s13 = scalar_lea.vmem %s77_s28, 32768  ;;  %p4873_p6 = scmp.lt.s32.totalorder %s77_s28, %s77_s28 }
  0x2d   :  { %p4869_p5 = scmp.ne.s32.totalorder %s77_s28, %s4868_s13  ;;  %p4874_p7 = scmp.lt.s32.totalorder %s4868_s13, %s4868_s13 }
  0x2f   :  { %p4875_p8 = por %p4874_p7, %p4873_p6 }
  0x31   :  { %p4876_p9 = pnand %p4875_p8, %p4869_p5 }
  0x33   :  { %4879 = shalt.err (!%p4876_p9)
}
  0x34   :  { %s5005_s3 = smov 512   ;;  %s5006_s27 = smov 32  }
  0x35   :  { %82 = dma.hbm_to_vmem [thread:$0]  %s6175_s5, 32768, %s77_s28, [#allocation12], %s5005_s3, %s5005_s3, %s5006_s27  }
  0x36   :  { %s5007_s16 = smov [#allocation2]   ;;  %s5008_s18 = smov [#allocation7]  }
  0x37   :  { %s23_s17 = sshll.u32 %s5007_s16, 4  ;;  %s43_s19 = sshll.u32 %s5008_s18, 4  ;;  %s24_s17 = int_to_ptr.vmem [resolvable:$true] %s23_s17  ;;  %s44_s19 = int_to_ptr.vmem [resolvable:$true] %s43_s19 }
  0x38   :  { %s4880_s22 = scalar_lea.hbm %s6170_s0, 128 }
  0x39   :  { %p4881_p10 = scmp.ne.s32.totalorder %s6170_s0, %s4880_s22  ;;  %p4884_p11 = scmp.lt.u32.totalorder %s4880_s22, %s6170_s0 }
  0x3b   :  { %p4886_p12 = pnand %p4884_p11, %p4881_p10 }
  0x3d   :  { %4889 = shalt.err (!%p4886_p12)
}
  0x3e   :  { %s4890_s5 = scalar_lea.vmem %s24_s17, 128  ;;  %p4895_p0 = scmp.lt.s32.totalorder %s24_s17, %s24_s17 }
  0x3f   :  { %p4891_p13 = scmp.ne.s32.totalorder %s24_s17, %s4890_s5  ;;  %p4896_p1 = scmp.lt.s32.totalorder %s4890_s5, %s4890_s5 }
  0x41   :  { %p4897_p2 = por %p4896_p1, %p4895_p0 }
  0x43   :  { %p4898_p3 = pnand %p4897_p2, %p4891_p13 }
  0x45   :  { %4901 = shalt.err (!%p4898_p3)
}
  0x46   :  { %26 = dma.hbm_to_vmem [thread:$0]  %s6170_s0, 128, %s24_s17, [#allocation3]  }
  0x47   :  { %s4902_s8 = scalar_lea.hbm %s6172_s2, 512 }
  0x48   :  { %p4903_p4 = scmp.ne.s32.totalorder %s6172_s2, %s4902_s8  ;;  %p4906_p5 = scmp.lt.u32.totalorder %s4902_s8, %s6172_s2 }
  0x4a   :  { %p4908_p6 = pnand %p4906_p5, %p4903_p4 }
  0x4c   :  { %4911 = shalt.err (!%p4908_p6)
}
  0x4d   :  { %s4912_s13 = scalar_lea.vmem %s44_s19, 512  ;;  %p4917_p8 = scmp.lt.s32.totalorder %s44_s19, %s44_s19 }
  0x4e   :  { %p4913_p7 = scmp.ne.s32.totalorder %s44_s19, %s4912_s13  ;;  %p4918_p9 = scmp.lt.s32.totalorder %s4912_s13, %s4912_s13 }
  0x50   :  { %p4919_p10 = por %p4918_p9, %p4917_p8 }
  0x52   :  { %p4920_p11 = pnand %p4919_p10, %p4913_p7 }
  0x54   :  { %4923 = shalt.err (!%p4920_p11)
}
  0x55   :  { %46 = dma.hbm_to_vmem [thread:$0]  %s6172_s2, 512, %s44_s19, [#allocation6]  }
  0x56   :  { %s5009_s15 = smov [#allocation10]   ;;  %s4924_s20 = scalar_lea.hbm %s6174_s4, 4096 }
  0x57   :  { %s64_s16 = sshll.u32 %s5009_s15, 4  ;;  %p4925_p12 = scmp.ne.s32.totalorder %s6174_s4, %s4924_s20  ;;  %s65_s16 = int_to_ptr.vmem [resolvable:$true] %s64_s16 }
  0x58   :  { %p4928_p13 = scmp.lt.u32.totalorder %s4924_s20, %s6174_s4 }
  0x5a   :  { %p4930_p0 = pnand %p4928_p13, %p4925_p12 }
  0x5c   :  { %4933 = shalt.err (!%p4930_p0)
}
  0x5d   :  { %s4934_s24 = scalar_lea.vmem %s65_s16, 4096  ;;  %p4939_p2 = scmp.lt.s32.totalorder %s65_s16, %s65_s16 }
  0x5e   :  { %p4935_p1 = scmp.ne.s32.totalorder %s65_s16, %s4934_s24  ;;  %p4940_p3 = scmp.lt.s32.totalorder %s4934_s24, %s4934_s24 }
  0x60   :  { %p4941_p4 = por %p4940_p3, %p4939_p2 }
  0x62   :  { %p4942_p5 = pnand %p4941_p4, %p4935_p1 }
  0x64   :  { %4945 = shalt.err (!%p4942_p5)
}
  0x65   :  { %s5010_s2 = smov 1024   ;;  %s5011_s19 = smov 64  }
  0x66   :  { %70 = dma.hbm_to_vmem [thread:$0]  %s6174_s4, 4096, %s65_s16, [#allocation9], %s5010_s2, %s5010_s2, %s5011_s19  }
  0x67   :  { %s5012_s26 = smov [#allocation13]   ;;  %s4946_s8 = scalar_lea.hbm %s6176_s6, 32768 }
  0x68   :  { %s88_s28 = sshll.u32 %s5012_s26, 4  ;;  %p4947_p6 = scmp.ne.s32.totalorder %s6176_s6, %s4946_s8  ;;  %s89_s28 = int_to_ptr.vmem [resolvable:$true] %s88_s28 }
  0x69   :  { %p4950_p7 = scmp.lt.u32.totalorder %s4946_s8, %s6176_s6 }
  0x6b   :  { %p4952_p8 = pnand %p4950_p7, %p4947_p6 }
  0x6d   :  { %4955 = shalt.err (!%p4952_p8)
}
  0x6e   :  { %s4956_s13 = scalar_lea.vmem %s89_s28, 32768  ;;  %p4961_p10 = scmp.lt.s32.totalorder %s89_s28, %s89_s28 }
  0x6f   :  { %p4957_p9 = scmp.ne.s32.totalorder %s89_s28, %s4956_s13  ;;  %p4962_p11 = scmp.lt.s32.totalorder %s4956_s13, %s4956_s13 }
  0x71   :  { %p4963_p12 = por %p4962_p11, %p4961_p10 }
  0x73   :  { %p4964_p13 = pnand %p4963_p12, %p4957_p9 }
  0x75   :  { %4967 = shalt.err (!%p4964_p13)
}
  0x76   :  { %94 = dma.hbm_to_vmem [thread:$0]  %s6176_s6, 32768, %s89_s28, [#allocation12], %s5005_s3, %s5005_s3, %s5006_s27  }
  0x77   :  { %4990 = dma.done.wait [#allocation3], 128  }
  0x78   :  { %4991 = vsyncadd [#allocation3], 4294967168 }
  0x79   :  { %4992 = dma.done.wait [#allocation6], 640  }
  0x7a   :  { %4993 = vsyncadd [#allocation6], 4294966656 }
  0x7b   :  { %4994 = dma.done.wait [#allocation9], 20480  }
  0x7c   :  { %4995 = vsyncadd [#allocation9], 4294946816 }
  0x7d   :  { %4996 = dma.done.wait [#allocation12], 65536  }
  0x7e   :  { %4997 = vsyncadd [#allocation12], 4294901760  ;;  %v5013_v0 = vmov 0.0   ;;  %v122_v1 = vld [vmem:[#allocation8 + $0x8] sm:$0xff]  ;;  %v121_v3 = vld [vmem:[#allocation8] sm:$0xff]  ;;  %vm249_vm0 = vcmask 523264  }
  0x7f   :  { %317 = vmatprep.mubr.f32.mxu0 %v5013_v0  ;;  %388 = vmatprep.mubr.f32.mxu1 %v5013_v0  ;;  %v138_v2 = vld [vmem:[#allocation8 + $0x88] sm:$0xff]  ;;  %v137_v5 = vld [vmem:[#allocation8 + $0x80] sm:$0xff]  ;;  %v5154_v32 = vld [vmem:[#allocation2] sm:$0xff]  ;;  %vm934_vm1 = vcmask 261120   ;;  %s5014_s6 = smov [#allocation14]  }
  0x80   :  { %v3300_v4 = vpack.c.bf16 %v138_v2, %v122_v1  ;;  %v154_v6 = vld [vmem:[#allocation8 + $0x108] sm:$0xff]  ;;  %v3302_v8 = vpack.c.bf16 %v137_v5, %v121_v3  ;;  %v153_v10 = vld [vmem:[#allocation8 + $0x100] sm:$0xff]  ;;  %v124_v40 = vld [vmem:[#allocation8 + $0x18] sm:$0xff]  ;;  %s3276_s3 = sshll.u32 %s5014_s6, 4  ;;  %s3277_s3 = int_to_ptr.vmem [resolvable:$true] %s3276_s3 }
  0x81   :  { %v170_v7 = vld [vmem:[#allocation8 + $0x188] sm:$0xff]  ;;  %v169_v11 = vld [vmem:[#allocation8 + $0x180] sm:$0xff]  ;;  %v140_v41 = vld [vmem:[#allocation8 + $0x98] sm:$0xff]  ;;  %s4968_s27 = scalar_lea.vmem %s3277_s3, 512  ;;  %p4973_p1 = scmp.lt.s32.totalorder %s3277_s3, %s3277_s3 }
  0x82   :  { %v3304_v9 = vpack.c.bf16 %v170_v7, %v154_v6  ;;  %v186_v12 = vld [vmem:[#allocation8 + $0x208] sm:$0xff]  ;;  %3301 = vmatprep.subr.bf16.mxu0 %v3300_v4  ;;  %v3306_v14 = vpack.c.bf16 %v169_v11, %v153_v10  ;;  %v185_v16 = vld [vmem:[#allocation8 + $0x200] sm:$0xff]  ;;  %v3316_v45 = vpack.c.bf16 %v140_v41, %v124_v40  ;;  %v123_v46 = vld [vmem:[#allocation8 + $0x10] sm:$0xff]  ;;  %p4969_p0 = scmp.ne.s32.totalorder %s3277_s3, %s4968_s27  ;;  %p4974_p2 = scmp.lt.s32.totalorder %s4968_s27, %s4968_s27 }
  0x83   :  { %v202_v13 = vld [vmem:[#allocation8 + $0x288] sm:$0xff]  ;;  %3303 = vmatpush1.bf16.msra.mxu0 %v3302_v8  ;;  %v201_v17 = vld [vmem:[#allocation8 + $0x280] sm:$0xff]  ;;  %v139_v49 = vld [vmem:[#allocation8 + $0x90] sm:$0xff] }
  0x84   :  { %3305 = vmatprep.subr.bf16.mxu0 %v3304_v9  ;;  %v3308_v15 = vpack.c.bf16 %v202_v13, %v186_v12  ;;  %v218_v18 = vld [vmem:[#allocation8 + $0x308] sm:$0xff]  ;;  %v3310_v20 = vpack.c.bf16 %v201_v17, %v185_v16  ;;  %v217_v22 = vld [vmem:[#allocation8 + $0x300] sm:$0xff]  ;;  %3317 = vmatprep.subr.bf16.mxu1 %v3316_v45  ;;  %v3318_v50 = vpack.c.bf16 %v139_v49, %v123_v46  ;;  %v156_v51 = vld [vmem:[#allocation8 + $0x118] sm:$0xff]  ;;  %p4975_p3 = por %p4974_p2, %p4973_p1 }
  0x85   :  { %v234_v19 = vld [vmem:[#allocation8 + $0x388] sm:$0xff]  ;;  %v233_v23 = vld [vmem:[#allocation8 + $0x380] sm:$0xff]  ;;  %v172_v52 = vld [vmem:[#allocation8 + $0x198] sm:$0xff] }
  0x86   :  { %v3312_v21 = vpack.c.bf16 %v234_v19, %v218_v18  ;;  %v126_v24 = vld [vmem:[#allocation8 + $0x28] sm:$0xff]  ;;  %v3314_v26 = vpack.c.bf16 %v233_v23, %v217_v22  ;;  %v125_v28 = vld [vmem:[#allocation8 + $0x20] sm:$0xff]  ;;  %v3320_v54 = vpack.c.bf16 %v172_v52, %v156_v51  ;;  %v155_v55 = vld [vmem:[#allocation8 + $0x110] sm:$0xff]  ;;  %3319 = vmatpush1.bf16.msra.mxu1 %v3318_v50  ;;  %p4976_p4 = pnand %p4975_p3, %p4969_p0 }
  0x87   :  { %3307 = vmatpush1.bf16.msra.mxu0 %v3306_v14  ;;  %v142_v25 = vld [vmem:[#allocation8 + $0xa8] sm:$0xff]  ;;  %v141_v29 = vld [vmem:[#allocation8 + $0xa0] sm:$0xff]  ;;  %v171_v56 = vld [vmem:[#allocation8 + $0x190] sm:$0xff] }
  0x88   :  { %3309 = vmatprep.subr.bf16.mxu0 %v3308_v15  ;;  %v3332_v27 = vpack.c.bf16 %v142_v25, %v126_v24  ;;  %v158_v30 = vld [vmem:[#allocation8 + $0x128] sm:$0xff]  ;;  %v3334_v33 = vpack.c.bf16 %v141_v29, %v125_v28  ;;  %v157_v35 = vld [vmem:[#allocation8 + $0x120] sm:$0xff]  ;;  %v3322_v60 = vpack.c.bf16 %v171_v56, %v155_v55  ;;  %v188_v61 = vld [vmem:[#allocation8 + $0x218] sm:$0xff]  ;;  %3321 = vmatprep.subr.bf16.mxu1 %v3320_v54 }
  0x89   :  { %v174_v31 = vld [vmem:[#allocation8 + $0x1a8] sm:$0xff]  ;;  %v173_v36 = vld [vmem:[#allocation8 + $0x1a0] sm:$0xff]  ;;  %v204_v1 = vld [vmem:[#allocation8 + $0x298] sm:$0xff] }
  0x8a   :  { %v3336_v34 = vpack.c.bf16 %v174_v31, %v158_v30  ;;  %v190_v37 = vld [vmem:[#allocation8 + $0x228] sm:$0xff]  ;;  %v3338_v39 = vpack.c.bf16 %v173_v36, %v157_v35  ;;  %v189_v43 = vld [vmem:[#allocation8 + $0x220] sm:$0xff]  ;;  %v3324_v2 = vpack.c.bf16 %v204_v1, %v188_v61  ;;  %v187_v3 = vld [vmem:[#allocation8 + $0x210] sm:$0xff]  ;;  %3323 = vmatpush1.bf16.msra.mxu1 %v3322_v60 }
  0x8b   :  { %3311 = vmatpush1.bf16.msra.mxu0 %v3310_v20  ;;  %v206_v38 = vld [vmem:[#allocation8 + $0x2a8] sm:$0xff]  ;;  %v205_v44 = vld [vmem:[#allocation8 + $0x2a0] sm:$0xff]  ;;  %v203_v4 = vld [vmem:[#allocation8 + $0x290] sm:$0xff] }
  0x8c   :  { %3313 = vmatprep.subr.bf16.mxu0 %v3312_v21  ;;  %v3340_v42 = vpack.c.bf16 %v206_v38, %v190_v37  ;;  %v222_v47 = vld [vmem:[#allocation8 + $0x328] sm:$0xff]  ;;  %v3342_v53 = vpack.c.bf16 %v205_v44, %v189_v43  ;;  %v221_v58 = vld [vmem:[#allocation8 + $0x320] sm:$0xff]  ;;  %v220_v6 = vld [vmem:[#allocation8 + $0x318] sm:$0xff]  ;;  %v3326_v12 = vpack.c.bf16 %v203_v4, %v187_v3  ;;  %3325 = vmatprep.subr.bf16.mxu1 %v3324_v2 }
  0x8d   :  { %v238_v48 = vld [vmem:[#allocation8 + $0x3a8] sm:$0xff]  ;;  %v237_v59 = vld [vmem:[#allocation8 + $0x3a0] sm:$0xff]  ;;  %v236_v7 = vld [vmem:[#allocation8 + $0x398] sm:$0xff] }
  0x8e   :  { %v3344_v57 = vpack.c.bf16 %v238_v48, %v222_v47  ;;  %v130_v62 = vld [vmem:[#allocation8 + $0x48] sm:$0xff]  ;;  %v3346_v5 = vpack.c.bf16 %v237_v59, %v221_v58  ;;  %v129_v9 = vld [vmem:[#allocation8 + $0x40] sm:$0xff]  ;;  %v3328_v14 = vpack.c.bf16 %v236_v7, %v220_v6  ;;  %v219_v15 = vld [vmem:[#allocation8 + $0x310] sm:$0xff]  ;;  %3327 = vmatpush1.bf16.msra.mxu1 %v3326_v12 }
  0x8f   :  { %3315 = vmatpush1.bf16.msra.mxu0 %v3314_v26  ;;  %v146_v63 = vld [vmem:[#allocation8 + $0xc8] sm:$0xff]  ;;  %v145_v10 = vld [vmem:[#allocation8 + $0xc0] sm:$0xff]  ;;  %v235_v16 = vld [vmem:[#allocation8 + $0x390] sm:$0xff] }
  0x90   :  { %3333 = vmatprep.subr.bf16.mxu0 %v3332_v27  ;;  %v3364_v8 = vpack.c.bf16 %v146_v63, %v130_v62  ;;  %v162_v11 = vld [vmem:[#allocation8 + $0x148] sm:$0xff]  ;;  %v128_v17 = vld [vmem:[#allocation8 + $0x38] sm:$0xff]  ;;  %v3366_v19 = vpack.c.bf16 %v145_v10, %v129_v9  ;;  %v161_v21 = vld [vmem:[#allocation8 + $0x140] sm:$0xff]  ;;  %v3330_v24 = vpack.c.bf16 %v235_v16, %v219_v15  ;;  %3329 = vmatprep.subr.bf16.mxu1 %v3328_v14 }
  0x91   :  { %v178_v13 = vld [vmem:[#allocation8 + $0x1c8] sm:$0xff]  ;;  %v144_v18 = vld [vmem:[#allocation8 + $0xb8] sm:$0xff]  ;;  %v177_v22 = vld [vmem:[#allocation8 + $0x1c0] sm:$0xff] }
  0x92   :  { %3288 = vmatmul.mubr.msk.f32.vlgmr.msra.gmra.mrb[0].mxu0 %vm249_vm0, %v5154_v32  ;;  %v3368_v20 = vpack.c.bf16 %v178_v13, %v162_v11  ;;  %v194_v23 = vld [vmem:[#allocation8 + $0x248] sm:$0xff]  ;;  %v3348_v26 = vpack.c.bf16 %v144_v18, %v128_v17  ;;  %v127_v27 = vld [vmem:[#allocation8 + $0x30] sm:$0xff]  ;;  %v160_v29 = vld [vmem:[#allocation8 + $0x138] sm:$0xff]  ;;  %v3370_v31 = vpack.c.bf16 %v177_v22, %v161_v21  ;;  %3331 = vmatpush1.bf16.msra.mxu1 %v3330_v24 }
  0x93   :  { %3335 = vmatpush1.bf16.msra.mxu0 %v3334_v33  ;;  %459 = vmatprep.mubr.f32.mxu0 %v5013_v0  ;;  %v210_v25 = vld [vmem:[#allocation8 + $0x2c8] sm:$0xff]  ;;  %v143_v28 = vld [vmem:[#allocation8 + $0xb0] sm:$0xff]  ;;  %v176_v30 = vld [vmem:[#allocation8 + $0x1b8] sm:$0xff] }
  0x94   :  { %3337 = vmatprep.subr.bf16.mxu0 %v3336_v34  ;;  %v3372_v33 = vpack.c.bf16 %v210_v25, %v194_v23  ;;  %v193_v34 = vld [vmem:[#allocation8 + $0x240] sm:$0xff]  ;;  %v226_v36 = vld [vmem:[#allocation8 + $0x348] sm:$0xff]  ;;  %v3350_v37 = vpack.c.bf16 %v143_v28, %v127_v27  ;;  %3349 = vmatprep.subr.bf16.mxu1 %v3348_v26  ;;  %v159_v40 = vld [vmem:[#allocation8 + $0x130] sm:$0xff] }
  0x95   :  { %v209_v35 = vld [vmem:[#allocation8 + $0x2c0] sm:$0xff]  ;;  %v242_v38 = vld [vmem:[#allocation8 + $0x3c8] sm:$0xff]  ;;  %v175_v41 = vld [vmem:[#allocation8 + $0x1b0] sm:$0xff]  ;;  %3289 = vmatmul.mubr.msk.f32.vlgmr.msra.gmra.mrb[0].mxu1 %vm249_vm0, %v5154_v32 }
  0x96   :  { %v208_v43 = vld [vmem:[#allocation8 + $0x2b8] sm:$0xff]  ;;  %v3374_v44 = vpack.c.bf16 %v209_v35, %v193_v34  ;;  %v3376_v45 = vpack.c.bf16 %v242_v38, %v226_v36  ;;  %v225_v46 = vld [vmem:[#allocation8 + $0x340] sm:$0xff]  ;;  %v134_v48 = vld [vmem:[#allocation8 + $0x68] sm:$0xff]  ;;  %3351 = vmatpush1.bf16.msra.mxu1 %v3350_v37  ;;  %v3354_v49 = vpack.c.bf16 %v175_v41, %v159_v40  ;;  %530 = vmatprep.mubr.f32.mxu1 %v5013_v0 }
  0x97   :  { %3339 = vmatpush1.bf16.msra.mxu0 %v3338_v39  ;;  %v3352_v39 = vpack.c.bf16 %v176_v30, %v160_v29  ;;  %v241_v47 = vld [vmem:[#allocation8 + $0x3c0] sm:$0xff]  ;;  %v150_v50 = vld [vmem:[#allocation8 + $0xe8] sm:$0xff]  ;;  %v191_v52 = vld [vmem:[#allocation8 + $0x230] sm:$0xff] }
  0x98   :  { %3341 = vmatprep.subr.bf16.mxu0 %v3340_v42  ;;  %v192_v42 = vld [vmem:[#allocation8 + $0x238] sm:$0xff]  ;;  %v3378_v56 = vpack.c.bf16 %v241_v47, %v225_v46  ;;  %v133_v58 = vld [vmem:[#allocation8 + $0x60] sm:$0xff]  ;;  %v166_v60 = vld [vmem:[#allocation8 + $0x168] sm:$0xff] }
  0x99   :  { %3353 = vmatprep.subr.bf16.mxu1 %v3352_v39  ;;  %v3356_v51 = vpack.c.bf16 %v208_v43, %v192_v42  ;;  %v224_v54 = vld [vmem:[#allocation8 + $0x338] sm:$0xff]  ;;  %v149_v59 = vld [vmem:[#allocation8 + $0xe0] sm:$0xff]  ;;  %v182_v62 = vld [vmem:[#allocation8 + $0x1e8] sm:$0xff] }
  0x9a   :  { %v240_v55 = vld [vmem:[#allocation8 + $0x3b8] sm:$0xff]  ;;  %3355 = vmatpush1.bf16.msra.mxu1 %v3354_v49  ;;  %v223_v1 = vld [vmem:[#allocation8 + $0x330] sm:$0xff]  ;;  %v3400_v6 = vpack.c.bf16 %v182_v62, %v166_v60  ;;  %v165_v7 = vld [vmem:[#allocation8 + $0x160] sm:$0xff] }
  0x9b   :  { %3343 = vmatpush1.bf16.msra.mxu0 %v3342_v53  ;;  %v207_v53 = vld [vmem:[#allocation8 + $0x2b0] sm:$0xff]  ;;  %3357 = vmatprep.subr.bf16.mxu1 %v3356_v51  ;;  %v3360_v63 = vpack.c.bf16 %v240_v55, %v224_v54  ;;  %v132_v3 = vld [vmem:[#allocation8 + $0x58] sm:$0xff]  ;;  %v198_v9 = vld [vmem:[#allocation8 + $0x268] sm:$0xff] }
  0x9c   :  { %3345 = vmatprep.subr.bf16.mxu0 %v3344_v57  ;;  %v3396_v57 = vpack.c.bf16 %v150_v50, %v134_v48  ;;  %v3358_v61 = vpack.c.bf16 %v207_v53, %v191_v52  ;;  %v239_v2 = vld [vmem:[#allocation8 + $0x3b0] sm:$0xff]  ;;  %v148_v4 = vld [vmem:[#allocation8 + $0xd8] sm:$0xff]  ;;  %v214_v11 = vld [vmem:[#allocation8 + $0x2e8] sm:$0xff] }
  0x9d   :  { %v3362_v10 = vpack.c.bf16 %v239_v2, %v223_v1  ;;  %v3380_v12 = vpack.c.bf16 %v148_v4, %v132_v3  ;;  %v131_v13 = vld [vmem:[#allocation8 + $0x50] sm:$0xff]  ;;  %v164_v15 = vld [vmem:[#allocation8 + $0x158] sm:$0xff]  ;;  %v3404_v18 = vpack.c.bf16 %v214_v11, %v198_v9  ;;  %v230_v21 = vld [vmem:[#allocation8 + $0x368] sm:$0xff] }
  0x9e   :  { %3359 = vmatpush1.bf16.msra.mxu1 %v3358_v61  ;;  %v147_v14 = vld [vmem:[#allocation8 + $0xd0] sm:$0xff]  ;;  %v180_v16 = vld [vmem:[#allocation8 + $0x1d8] sm:$0xff]  ;;  %v246_v23 = vld [vmem:[#allocation8 + $0x3e8] sm:$0xff] }
  0x9f   :  { %3347 = vmatpush1.bf16.msra.mxu0 %v3346_v5  ;;  %v3398_v5 = vpack.c.bf16 %v149_v59, %v133_v58  ;;  %3361 = vmatprep.subr.bf16.mxu1 %v3360_v63  ;;  %v3382_v22 = vpack.c.bf16 %v147_v14, %v131_v13  ;;  %v3384_v24 = vpack.c.bf16 %v180_v16, %v164_v15  ;;  %v163_v25 = vld [vmem:[#allocation8 + $0x150] sm:$0xff]  ;;  %v196_v27 = vld [vmem:[#allocation8 + $0x258] sm:$0xff]  ;;  %v903_v34 = vld [vmem:[#allocation10 + $0x8] sm:$0xff] }
  0xa0   :  { %3365 = vmatprep.subr.bf16.mxu0 %v3364_v8  ;;  %v181_v8 = vld [vmem:[#allocation8 + $0x1e0] sm:$0xff]  ;;  %v179_v26 = vld [vmem:[#allocation8 + $0x1d0] sm:$0xff]  ;;  %v212_v28 = vld [vmem:[#allocation8 + $0x2d8] sm:$0xff]  ;;  %v3408_v30 = vpack.c.bf16 %v246_v23, %v230_v21 }
  0xa1   :  { %v3402_v17 = vpack.c.bf16 %v181_v8, %v165_v7  ;;  %v3386_v35 = vpack.c.bf16 %v179_v26, %v163_v25  ;;  %v911_v36 = vld [vmem:[#allocation10 + $0x48] sm:$0xff]  ;;  %v3388_v37 = vpack.c.bf16 %v212_v28, %v196_v27  ;;  %v195_v38 = vld [vmem:[#allocation8 + $0x250] sm:$0xff]  ;;  %v228_v40 = vld [vmem:[#allocation8 + $0x358] sm:$0xff] }
  0xa2   :  { %3290 = vmatmul.mubr.msk.f32.vlgmr.msra.gmra.mrb[2].mxu0 %vm249_vm0, %v5154_v32  ;;  %3363 = vmatpush1.bf16.msra.mxu1 %v3362_v10  ;;  %v211_v39 = vld [vmem:[#allocation8 + $0x2d0] sm:$0xff]  ;;  %v244_v41 = vld [vmem:[#allocation8 + $0x3d8] sm:$0xff]  ;;  %v3428_v43 = vpack.c.bf16 %v911_v36, %v903_v34  ;;  %v919_v46 = vld [vmem:[#allocation10 + $0x88] sm:$0xff] }
  0xa3   :  { %3367 = vmatpush1.bf16.msra.mxu0 %v3366_v19  ;;  %601 = vmatprep.mubr.f32.mxu0 %v5013_v0  ;;  %v197_v19 = vld [vmem:[#allocation8 + $0x260] sm:$0xff]  ;;  %v3390_v47 = vpack.c.bf16 %v211_v39, %v195_v38  ;;  %v927_v48 = vld [vmem:[#allocation10 + $0xc8] sm:$0xff]  ;;  %v3392_v49 = vpack.c.bf16 %v244_v41, %v228_v40  ;;  %v227_v50 = vld [vmem:[#allocation8 + $0x350] sm:$0xff] }
  0xa4   :  { %3369 = vmatprep.subr.bf16.mxu0 %v3368_v20  ;;  %v213_v20 = vld [vmem:[#allocation8 + $0x2e0] sm:$0xff]  ;;  %3381 = vmatprep.subr.bf16.mxu1 %v3380_v12  ;;  %v243_v51 = vld [vmem:[#allocation8 + $0x3d0] sm:$0xff]  ;;  %v136_v52 = vld [vmem:[#allocation8 + $0x78] sm:$0xff]  ;;  %v3432_v55 = vpack.c.bf16 %v927_v48, %v919_v46 }
  0xa5   :  { %v3406_v29 = vpack.c.bf16 %v213_v20, %v197_v19  ;;  %3291 = vmatmul.mubr.msk.f32.vlgmr.msra.gmra.mrb[2].mxu1 %vm249_vm0, %v5154_v32  ;;  %v152_v53 = vld [vmem:[#allocation8 + $0xf8] sm:$0xff]  ;;  %v3394_v58 = vpack.c.bf16 %v243_v51, %v227_v50  ;;  %v135_v60 = vld [vmem:[#allocation8 + $0x70] sm:$0xff]  ;;  %v907_v1 = vld [vmem:[#allocation10 + $0x28] sm:$0xff] }
  0xa6   :  { %3383 = vmatpush1.bf16.msra.mxu1 %v3382_v22  ;;  %672 = vmatprep.mubr.f32.mxu1 %v5013_v0  ;;  %v3412_v59 = vpack.c.bf16 %v152_v53, %v136_v52  ;;  %v151_v61 = vld [vmem:[#allocation8 + $0xf0] sm:$0xff]  ;;  %v168_v62 = vld [vmem:[#allocation8 + $0x178] sm:$0xff]  ;;  %v915_v2 = vld [vmem:[#allocation10 + $0x68] sm:$0xff] }
  0xa7   :  { %3371 = vmatpush1.bf16.msra.mxu0 %v3370_v31  ;;  %v229_v31 = vld [vmem:[#allocation8 + $0x360] sm:$0xff]  ;;  %3385 = vmatprep.subr.bf16.mxu1 %v3384_v24  ;;  %v184_v63 = vld [vmem:[#allocation8 + $0x1f8] sm:$0xff]  ;;  %v3414_v4 = vpack.c.bf16 %v151_v61, %v135_v60  ;;  %v183_v9 = vld [vmem:[#allocation8 + $0x1f0] sm:$0xff]  ;;  %v3444_v10 = vpack.c.bf16 %v915_v2, %v907_v1 }
  0xa8   :  { %3373 = vmatprep.subr.bf16.mxu0 %v3372_v33  ;;  %v245_v33 = vld [vmem:[#allocation8 + $0x3e0] sm:$0xff]  ;;  %v3416_v8 = vpack.c.bf16 %v184_v63, %v168_v62  ;;  %v923_v11 = vld [vmem:[#allocation10 + $0xa8] sm:$0xff]  ;;  %v200_v13 = vld [vmem:[#allocation8 + $0x278] sm:$0xff] }
  0xa9   :  { %v3410_v42 = vpack.c.bf16 %v245_v33, %v229_v31  ;;  %v914_v7 = vld [vmem:[#allocation10 + $0x60] sm:$0xff]  ;;  %v931_v12 = vld [vmem:[#allocation10 + $0xe8] sm:$0xff]  ;;  %v216_v14 = vld [vmem:[#allocation8 + $0x2f8] sm:$0xff] }
  0xaa   :  { %3387 = vmatpush1.bf16.msra.mxu1 %v3386_v35  ;;  %v5174_v15 = vld [vmem:[#allocation5] sm:$0xff]  ;;  %v3448_v19 = vpack.c.bf16 %v931_v12, %v923_v11  ;;  %v922_v20 = vld [vmem:[#allocation10 + $0xa0] sm:$0xff]  ;;  %v3420_v22 = vpack.c.bf16 %v216_v14, %v200_v13  ;;  %v215_v23 = vld [vmem:[#allocation8 + $0x2f0] sm:$0xff] }
  0xab   :  { %3375 = vmatpush1.bf16.msra.mxu0 %v3374_v44  ;;  %v902_v44 = vld [vmem:[#allocation10] sm:$0xff]  ;;  %3389 = vmatprep.subr.bf16.mxu1 %v3388_v37  ;;  %v1223_v24 = vld [vmem:[#allocation13 + $0x8] sm:$0xff]  ;;  %v232_v26 = vld [vmem:[#allocation8 + $0x378] sm:$0xff] }
  0xac   :  { %3377 = vmatprep.subr.bf16.mxu0 %v3376_v45  ;;  %v910_v45 = vld [vmem:[#allocation10 + $0x40] sm:$0xff]  ;;  %v1227_v25 = vld [vmem:[#allocation13 + $0x28] sm:$0xff]  ;;  %v248_v27 = vld [vmem:[#allocation8 + $0x3f8] sm:$0xff] }
  0xad   :  { %v3430_v54 = vpack.c.bf16 %v910_v45, %v902_v44  ;;  %v930_v21 = vld [vmem:[#allocation10 + $0xe0] sm:$0xff]  ;;  %v3424_v31 = vpack.c.bf16 %v248_v27, %v232_v26  ;;  %v231_v33 = vld [vmem:[#allocation8 + $0x370] sm:$0xff]  ;;  %v905_v35 = vld [vmem:[#allocation10 + $0x18] sm:$0xff] }
  0xae   :  { %3391 = vmatpush1.bf16.msra.mxu1 %v3390_v47  ;;  %v3450_v28 = vpack.c.bf16 %v930_v21, %v922_v20  ;;  %v247_v34 = vld [vmem:[#allocation8 + $0x3f0] sm:$0xff]  ;;  %v913_v36 = vld [vmem:[#allocation10 + $0x58] sm:$0xff]  ;;  %v1222_v62 = vld [vmem:[#allocation13] sm:$0xff] }
  0xaf   :  { %3379 = vmatpush1.bf16.msra.mxu0 %v3378_v56  ;;  %v918_v56 = vld [vmem:[#allocation10 + $0x80] sm:$0xff]  ;;  %3393 = vmatprep.subr.bf16.mxu1 %v3392_v49  ;;  %v3426_v37 = vpack.c.bf16 %v247_v34, %v231_v33  ;;  %v3436_v38 = vpack.c.bf16 %v913_v36, %v905_v35  ;;  %v904_v39 = vld [vmem:[#allocation10 + $0x10] sm:$0xff]  ;;  %v921_v41 = vld [vmem:[#allocation10 + $0x98] sm:$0xff] }
  0xb0   :  { %3397 = vmatprep.subr.bf16.mxu0 %v3396_v57  ;;  %v926_v57 = vld [vmem:[#allocation10 + $0xc0] sm:$0xff]  ;;  %v912_v40 = vld [vmem:[#allocation10 + $0x50] sm:$0xff]  ;;  %v909_v47 = vld [vmem:[#allocation10 + $0x38] sm:$0xff] }
  0xb1   :  { %v3434_v3 = vpack.c.bf16 %v926_v57, %v918_v56  ;;  %v920_v45 = vld [vmem:[#allocation10 + $0x90] sm:$0xff]  ;;  %v917_v48 = vld [vmem:[#allocation10 + $0x78] sm:$0xff]  ;;  %v1226_v63 = vld [vmem:[#allocation13 + $0x20] sm:$0xff] }
  0xb2   :  { %3292 = vmatmul.mubr.msk.f32.vlgmr.msra.gmra.mrb[4].mxu0 %vm249_vm0, %v5154_v32  ;;  %3395 = vmatpush1.bf16.msra.mxu1 %v3394_v58  ;;  %v928_v46 = vld [vmem:[#allocation10 + $0xd0] sm:$0xff]  ;;  %v3452_v50 = vpack.c.bf16 %v917_v48, %v909_v47  ;;  %v925_v53 = vld [vmem:[#allocation10 + $0xb8] sm:$0xff]  ;;  %v5195_v2 = vpack.c.bf16 %v1226_v63, %v1222_v62  ;;  %v1247_v27 = vld [vmem:[#allocation13 + $0xc8] sm:$0xff] }
  0xb3   :  { %3399 = vmatpush1.bf16.msra.mxu0 %v3398_v5  ;;  %743 = vmatprep.mubr.f32.mxu0 %v5013_v0  ;;  %v167_v5 = vld [vmem:[#allocation8 + $0x170] sm:$0xff]  ;;  %v3442_v49 = vpack.c.bf16 %v928_v46, %v920_v45  ;;  %v1229_v60 = vld [vmem:[#allocation13 + $0x38] sm:$0xff]  ;;  %v1246_v34 = vld [vmem:[#allocation13 + $0xc0] sm:$0xff] }
  0xb4   :  { %3401 = vmatprep.subr.bf16.mxu0 %v3400_v6  ;;  %v906_v6 = vld [vmem:[#allocation10 + $0x20] sm:$0xff]  ;;  %3413 = vmatprep.subr.bf16.mxu1 %v3412_v59  ;;  %v908_v51 = vld [vmem:[#allocation10 + $0x30] sm:$0xff]  ;;  %v1225_v59 = vld [vmem:[#allocation13 + $0x18] sm:$0xff] }
  0xb5   :  { %3293 = vmatmul.mubr.msk.f32.vlgmr.msra.gmra.mrb[4].mxu1 %vm249_vm0, %v5154_v32  ;;  %v3446_v16 = vpack.c.bf16 %v914_v7, %v906_v6  ;;  %v916_v52 = vld [vmem:[#allocation10 + $0x70] sm:$0xff]  ;;  %v5193_v61 = vpack.c.bf16 %v1229_v60, %v1225_v59  ;;  %v1235_v6 = vld [vmem:[#allocation13 + $0x68] sm:$0xff]  ;;  %v1233_v7 = vld [vmem:[#allocation13 + $0x58] sm:$0xff] }
  0xb6   :  { %3415 = vmatpush1.bf16.msra.mxu1 %v3414_v4  ;;  %814 = vmatprep.mubr.f32.mxu1 %v5013_v0  ;;  %v924_v57 = vld [vmem:[#allocation10 + $0xb0] sm:$0xff]  ;;  %v1245_v20 = vld [vmem:[#allocation13 + $0xb8] sm:$0xff]  ;;  %v1250_v36 = vld [vmem:[#allocation13 + $0xe0] sm:$0xff] }
  0xb7   :  { %3403 = vmatpush1.bf16.msra.mxu0 %v3402_v17  ;;  %v3418_v17 = vpack.c.bf16 %v183_v9, %v167_v5  ;;  %3417 = vmatprep.subr.bf16.mxu1 %v3416_v8  ;;  %v932_v58 = vld [vmem:[#allocation10 + $0xf0] sm:$0xff]  ;;  %v1231_v5 = vld [vmem:[#allocation13 + $0x48] sm:$0xff]  ;;  %v1237_v8 = vld [vmem:[#allocation13 + $0x78] sm:$0xff] }
  0xb8   :  { %3405 = vmatprep.subr.bf16.mxu0 %v3404_v18  ;;  %v199_v18 = vld [vmem:[#allocation8 + $0x270] sm:$0xff]  ;;  %v1230_v9 = vld [vmem:[#allocation13 + $0x40] sm:$0xff]  ;;  %v5205_v11 = vpack.c.bf16 %v1237_v8, %v1233_v7  ;;  %v1253_v33 = vld [vmem:[#allocation13 + $0xf8] sm:$0xff] }
  0xb9   :  { %v1224_v1 = vld [vmem:[#allocation13 + $0x10] sm:$0xff]  ;;  %v1261_v45 = vld [vmem:[#allocation13 + $0x138] sm:$0xff]  ;;  %v1254_v48 = vld [vmem:[#allocation13 + $0x100] sm:$0xff] }
  0xba   :  { %3419 = vmatpush1.bf16.msra.mxu1 %v3418_v17  ;;  %v1232_v13 = vld [vmem:[#allocation13 + $0x50] sm:$0xff]  ;;  %v1262_v59 = vld [vmem:[#allocation13 + $0x140] sm:$0xff]  ;;  %v1273_v7 = vld [vmem:[#allocation13 + $0x198] sm:$0xff] }
  0xbb   :  { %3407 = vmatpush1.bf16.msra.mxu0 %v3406_v29  ;;  %v3422_v29 = vpack.c.bf16 %v215_v23, %v199_v18  ;;  %3421 = vmatprep.subr.bf16.mxu1 %v3420_v22  ;;  %v1236_v14 = vld [vmem:[#allocation13 + $0x70] sm:$0xff]  ;;  %v1243_v18 = vld [vmem:[#allocation13 + $0xa8] sm:$0xff]  ;;  %v1238_v22 = vld [vmem:[#allocation13 + $0x80] sm:$0xff] }
  0xbc   :  { %3409 = vmatprep.subr.bf16.mxu0 %v3408_v30  ;;  %v5182_v30 = vpack.c.bf16 %v1227_v25, %v1223_v24  ;;  %v5211_v17 = vpack.c.bf16 %v1236_v14, %v1232_v13  ;;  %v1242_v23 = vld [vmem:[#allocation13 + $0xa0] sm:$0xff]  ;;  %v1240_v24 = vld [vmem:[#allocation13 + $0x90] sm:$0xff]  ;;  %v1277_v8 = vld [vmem:[#allocation13 + $0x1b8] sm:$0xff] }
  0xbd   :  { %v5219_v25 = vpack.c.bf16 %v1242_v23, %v1238_v22  ;;  %v1244_v26 = vld [vmem:[#allocation13 + $0xb0] sm:$0xff]  ;;  %v1266_v60 = vld [vmem:[#allocation13 + $0x160] sm:$0xff]  ;;  %v1283_v22 = vld [vmem:[#allocation13 + $0x1e8] sm:$0xff] }
  0xbe   :  { %3423 = vmatpush1.bf16.msra.mxu1 %v3422_v29  ;;  %v5225_v35 = vpack.c.bf16 %v1244_v26, %v1240_v24  ;;  %v5255_v62 = vpack.c.bf16 %v1266_v60, %v1262_v59  ;;  %v1264_v63 = vld [vmem:[#allocation13 + $0x150] sm:$0xff]  ;;  %v1270_v13 = vld [vmem:[#allocation13 + $0x180] sm:$0xff]  ;;  %v1281_v24 = vld [vmem:[#allocation13 + $0x1d8] sm:$0xff] }
  0xbf   :  { %3411 = vmatpush1.bf16.msra.mxu0 %v3410_v42  ;;  %3425 = vmatprep.subr.bf16.mxu1 %v3424_v31  ;;  %v929_v42 = vld [vmem:[#allocation10 + $0xd8] sm:$0xff]  ;;  %v1274_v14 = vld [vmem:[#allocation13 + $0x1a0] sm:$0xff]  ;;  %v1295_v59 = vld [vmem:[#allocation13 + $0x248] sm:$0xff] }
  0xc0   :  { %3429 = vmatprep.subr.bf16.mxu0 %v3428_v43  ;;  %v3438_v43 = vpack.c.bf16 %v912_v40, %v904_v39  ;;  %v3440_v44 = vpack.c.bf16 %v929_v42, %v921_v41  ;;  %v1249_v31 = vld [vmem:[#allocation13 + $0xd8] sm:$0xff]  ;;  %v5231_v39 = vpack.c.bf16 %v1250_v36, %v1246_v34  ;;  %v1252_v40 = vld [vmem:[#allocation13 + $0xf0] sm:$0xff]  ;;  %v1255_v41 = vld [vmem:[#allocation13 + $0x108] sm:$0xff] }
  0xc1   :  { %v1259_v42 = vld [vmem:[#allocation13 + $0x128] sm:$0xff]  ;;  %v1285_v26 = vld [vmem:[#allocation13 + $0x1f8] sm:$0xff] }
  0xc2   :  { %3294 = vmatmul.mubr.msk.f32.vlgmr.msra.gmra.mrb[6].mxu0 %vm249_vm0, %v5154_v32  ;;  %3427 = vmatpush1.bf16.msra.mxu1 %v3426_v37  ;;  %v1248_v37 = vld [vmem:[#allocation13 + $0xd0] sm:$0xff]  ;;  %v5277_v34 = vpack.c.bf16 %v1285_v26, %v1281_v24  ;;  %v1299_v60 = vld [vmem:[#allocation13 + $0x268] sm:$0xff]  ;;  %v1305_v24 = vld [vmem:[#allocation13 + $0x298] sm:$0xff] }
  0xc3   :  { %3431 = vmatpush1.bf16.msra.mxu0 %v3430_v54  ;;  %1002 = vmatprep.mubr.f32.mxu0 %v5013_v0  ;;  %v933_v54 = vld [vmem:[#allocation10 + $0xf8] sm:$0xff]  ;;  %v5237_v46 = vpack.c.bf16 %v1252_v40, %v1248_v37  ;;  %v1284_v37 = vld [vmem:[#allocation13 + $0x1f0] sm:$0xff]  ;;  %v1287_v40 = vld [vmem:[#allocation13 + $0x208] sm:$0xff] }
  0xc4   :  { %3433 = vmatprep.subr.bf16.mxu0 %v3432_v55  ;;  %3437 = vmatprep.subr.bf16.mxu1 %v3436_v38  ;;  %v3454_v55 = vpack.c.bf16 %v916_v52, %v908_v51  ;;  %v3456_v56 = vpack.c.bf16 %v933_v54, %v925_v53  ;;  %v5229_v38 = vpack.c.bf16 %v1253_v33, %v1249_v31  ;;  %v1260_v52 = vld [vmem:[#allocation13 + $0x130] sm:$0xff]  ;;  %v1263_v54 = vld [vmem:[#allocation13 + $0x148] sm:$0xff]  ;;  %v1282_v31 = vld [vmem:[#allocation13 + $0x1e0] sm:$0xff] }
  0xc5   :  { %3295 = vmatmul.mubr.msk.f32.vlgmr.msra.gmra.mrb[6].mxu1 %vm249_vm0, %v5154_v32  ;;  %v3458_v32 = vpack.c.bf16 %v932_v58, %v924_v57  ;;  %v1269_v58 = vld [vmem:[#allocation13 + $0x178] sm:$0xff]  ;;  %v1280_v33 = vld [vmem:[#allocation13 + $0x1d0] sm:$0xff] }
  0xc6   :  { %3439 = vmatpush1.bf16.msra.mxu1 %v3438_v43  ;;  %1073 = vmatprep.mubr.f32.mxu1 %v5013_v0  ;;  %v5234_v43 = vpack.c.bf16 %v1259_v42, %v1255_v41  ;;  %v1291_v41 = vld [vmem:[#allocation13 + $0x228] sm:$0xff]  ;;  %v1309_v26 = vld [vmem:[#allocation13 + $0x2b8] sm:$0xff] }
  0xc7   :  { %3435 = vmatpush1.bf16.msra.mxu0 %v3434_v3  ;;  %3441 = vmatprep.subr.bf16.mxu1 %v3440_v44  ;;  %v1228_v3 = vld [vmem:[#allocation13 + $0x30] sm:$0xff]  ;;  %v1257_v44 = vld [vmem:[#allocation13 + $0x118] sm:$0xff]  ;;  %v5282_v42 = vpack.c.bf16 %v1291_v41, %v1287_v40 }
  0xc8   :  { %3445 = vmatprep.subr.bf16.mxu0 %v3444_v10  ;;  %v5197_v4 = vpack.c.bf16 %v1228_v3, %v1224_v1  ;;  %v1234_v10 = vld [vmem:[#allocation13 + $0x60] sm:$0xff]  ;;  %v5241_v47 = vpack.c.bf16 %v1261_v45, %v1257_v44  ;;  %v1268_v1 = vld [vmem:[#allocation13 + $0x170] sm:$0xff]  ;;  %v1271_v3 = vld [vmem:[#allocation13 + $0x188] sm:$0xff] }
  0xc9   :  { %v5207_v12 = vpack.c.bf16 %v1234_v10, %v1230_v9  ;;  %v5265_v10 = vpack.c.bf16 %v1277_v8, %v1273_v7  ;;  %6384 = vst [vmem:[#allocation20_spill] sm:$0xff] %v5282_v42  ;;  %v1289_v44 = vld [vmem:[#allocation13 + $0x218] sm:$0xff]  ;;  %v1298_v7 = vld [vmem:[#allocation13 + $0x260] sm:$0xff]  ;;  %v1304_v40 = vld [vmem:[#allocation13 + $0x290] sm:$0xff] }
  0xca   :  { %3296 = vmatmul.mubr.msk.f32.vlgmr.msra.gmra.mrb[8].mxu0 %vm934_vm1, %v5174_v15  ;;  %3443 = vmatpush1.bf16.msra.mxu1 %v3442_v49  ;;  %v1258_v49 = vld [vmem:[#allocation13 + $0x120] sm:$0xff]  ;;  %v1293_v45 = vld [vmem:[#allocation13 + $0x238] sm:$0xff] }
  0xcb   :  { %3447 = vmatpush1.bf16.msra.mxu0 %v3446_v16  ;;  %1144 = vmatprep.mubr.f32.mxu0 %v5013_v0  ;;  %v1239_v16 = vld [vmem:[#allocation13 + $0x88] sm:$0xff]  ;;  %v5244_v51 = vpack.c.bf16 %v1258_v49, %v1254_v48  ;;  %v5285_v48 = vpack.c.bf16 %v1284_v37, %v1280_v33  ;;  %v5289_v49 = vpack.c.bf16 %v1293_v45, %v1289_v44  ;;  %v1302_v33 = vld [vmem:[#allocation13 + $0x280] sm:$0xff]  ;;  %v1308_v44 = vld [vmem:[#allocation13 + $0x2b0] sm:$0xff] }
  0xcc   :  { %3449 = vmatprep.subr.bf16.mxu0 %v3448_v19  ;;  %3453 = vmatprep.subr.bf16.mxu1 %v3452_v50  ;;  %v1241_v19 = vld [vmem:[#allocation13 + $0x98] sm:$0xff]  ;;  %v1256_v50 = vld [vmem:[#allocation13 + $0x110] sm:$0xff]  ;;  %v1306_v37 = vld [vmem:[#allocation13 + $0x2a0] sm:$0xff] }
  0xcd   :  { %3297 = vmatmul.mubr.msk.f32.vlgmr.msra.gmra.mrb[8].mxu1 %vm934_vm1, %v5174_v15  ;;  %v5217_v21 = vpack.c.bf16 %v1245_v20, %v1241_v19  ;;  %v5247_v53 = vpack.c.bf16 %v1260_v52, %v1256_v50  ;;  %v1276_v19 = vld [vmem:[#allocation13 + $0x1b0] sm:$0xff]  ;;  %v1279_v20 = vld [vmem:[#allocation13 + $0x1c8] sm:$0xff]  ;;  %6385 = vst [vmem:[#allocation21_spill] sm:$0xff] %v5285_v48  ;;  %6386 = vst [vmem:[#allocation22_spill] sm:$0xff] %v5289_v49  ;;  %v5315_v41 = vpack.c.bf16 %v1306_v37, %v1302_v33 }
  0xce   :  { %3455 = vmatpush1.bf16.msra.mxu1 %v3454_v55  ;;  %1215 = vmatprep.mubr.f32.mxu1 %v5013_v0  ;;  %v5201_v0 = vpack.c.bf16 %v1235_v6, %v1231_v5  ;;  %v1267_v55 = vld [vmem:[#allocation13 + $0x168] sm:$0xff]  ;;  %v5259_v5 = vpack.c.bf16 %v1268_v1, %v1264_v63  ;;  %v5270_v23 = vpack.c.bf16 %v1283_v22, %v1279_v20  ;;  %v1286_v50 = vld [vmem:[#allocation13 + $0x200] sm:$0xff]  ;;  %v1297_v63 = vld [vmem:[#allocation13 + $0x258] sm:$0xff] }
  0xcf   :  { %3451 = vmatpush1.bf16.msra.mxu0 %v3450_v28  ;;  %3457 = vmatprep.subr.bf16.mxu1 %v3456_v56  ;;  %v1251_v28 = vld [vmem:[#allocation13 + $0xe8] sm:$0xff]  ;;  %v1265_v56 = vld [vmem:[#allocation13 + $0x158] sm:$0xff]  ;;  %v5251_v57 = vpack.c.bf16 %v1267_v55, %v1263_v54  ;;  %v1290_v52 = vld [vmem:[#allocation13 + $0x220] sm:$0xff]  ;;  %v5299_v1 = vpack.c.bf16 %v1299_v60, %v1295_v59  ;;  %6395 = vst [vmem:[#allocation31_spill] sm:$0xff] %v5315_v41 }
  0xd0   :  { %3461 = vmatprep.subr.bf16.mxu0 %v5182_v30  ;;  %v5222_v29 = vpack.c.bf16 %v1251_v28, %v1247_v27  ;;  %v1275_v6 = vld [vmem:[#allocation13 + $0x1a8] sm:$0xff]  ;;  %v1278_v27 = vld [vmem:[#allocation13 + $0x1c0] sm:$0xff]  ;;  %v1288_v54 = vld [vmem:[#allocation13 + $0x210] sm:$0xff]  ;;  %v5292_v55 = vpack.c.bf16 %v1290_v52, %v1286_v50  ;;  %v5321_v60 = vpack.c.bf16 %v1308_v44, %v1304_v40 }
  0xd1   :  { %v5263_v9 = vpack.c.bf16 %v1275_v6, %v1271_v3  ;;  %v5279_v36 = vpack.c.bf16 %v1282_v31, %v1278_v27  ;;  %6389 = vst [vmem:[#allocation25_spill] sm:$0xff] %v5299_v1  ;;  %v1301_v3 = vld [vmem:[#allocation13 + $0x278] sm:$0xff]  ;;  %v1294_v6 = vld [vmem:[#allocation13 + $0x240] sm:$0xff]  ;;  %v1307_v22 = vld [vmem:[#allocation13 + $0x2a8] sm:$0xff]  ;;  %v5313_v31 = vpack.c.bf16 %v1309_v26, %v1305_v24 }
  0xd2   :  { %3298 = vmatmul.mubr.msk.f32.vlgmr.msra.gmra.mrb[10].mxu0 %vm934_vm1, %v5174_v15  ;;  %3459 = vmatpush1.bf16.msra.mxu1 %v3458_v32  ;;  %v5253_v32 = vpack.c.bf16 %v1269_v58, %v1265_v56  ;;  %6387 = vst [vmem:[#allocation23_spill] sm:$0xff] %v5292_v55  ;;  %v1292_v56 = vld [vmem:[#allocation13 + $0x230] sm:$0xff]  ;;  %v5301_v8 = vpack.c.bf16 %v1301_v3, %v1297_v63  ;;  %v1311_v45 = vld [vmem:[#allocation13 + $0x2c8] sm:$0xff]  ;;  %v1310_v59 = vld [vmem:[#allocation13 + $0x2c0] sm:$0xff] }
  0xd3   :  { %3589 = vmatprep.subr.bf16.mxu1 %v5193_v61  ;;  %3463 = vmatpush1.bf16.msra.mxu0 %v5195_v2  ;;  %v5295_v58 = vpack.c.bf16 %v1292_v56, %v1288_v54  ;;  %6394 = vst [vmem:[#allocation30_spill] sm:$0xff] %v5313_v31  ;;  %v1315_v50 = vld [vmem:[#allocation13 + $0x2e8] sm:$0xff]  ;;  %v1313_v54 = vld [vmem:[#allocation13 + $0x2d8] sm:$0xff]  ;;  %6397 = vst [vmem:[#allocation33_spill] sm:$0xff] %v5321_v60 }
  0xd4   :  { %3465 = vmatprep.subr.bf16.mxu0 %v5201_v0  ;;  %6390 = vst [vmem:[#allocation26_spill] sm:$0xff] %v5301_v8  ;;  %v5318_v52 = vpack.c.bf16 %v1315_v50, %v1311_v45  ;;  %v1317_v56 = vld [vmem:[#allocation13 + $0x2f8] sm:$0xff]  ;;  %v1314_v63 = vld [vmem:[#allocation13 + $0x2e0] sm:$0xff]  ;;  %v1312_v3 = vld [vmem:[#allocation13 + $0x2d0] sm:$0xff] }
  0xd5   :  { %3299 = vmatmul.mubr.msk.f32.vlgmr.msra.gmra.mrb[10].mxu1 %vm934_vm1, %v5174_v15  ;;  %v5215_v15 = vpack.c.bf16 %v1243_v18, %v1239_v16  ;;  %v1272_v16 = vld [vmem:[#allocation13 + $0x190] sm:$0xff]  ;;  %v5267_v18 = vpack.c.bf16 %v1274_v14, %v1270_v13  ;;  %6388 = vst [vmem:[#allocation24_spill] sm:$0xff] %v5295_v58  ;;  %v5303_v13 = vpack.c.bf16 %v1298_v7, %v1294_v6  ;;  %v1321_v24 = vld [vmem:[#allocation13 + $0x318] sm:$0xff]  ;;  %v1318_v40 = vld [vmem:[#allocation13 + $0x300] sm:$0xff] }
  0xd6   :  { %3591 = vmatpush1.bf16.msra.mxu1 %v5197_v4  ;;  %v5273_v28 = vpack.c.bf16 %v1276_v19, %v1272_v16  ;;  %v1296_v14 = vld [vmem:[#allocation13 + $0x250] sm:$0xff]  ;;  %v1303_v19 = vld [vmem:[#allocation13 + $0x288] sm:$0xff]  ;;  %6396 = vst [vmem:[#allocation32_spill] sm:$0xff] %v5318_v52  ;;  %v5325_v6 = vpack.c.bf16 %v1317_v56, %v1313_v54  ;;  %v5327_v7 = vpack.c.bf16 %v1314_v63, %v1310_v59  ;;  %v1325_v26 = vld [vmem:[#allocation13 + $0x338] sm:$0xff] }
  0xd7   :  { %3593 = vmatprep.subr.bf16.mxu1 %v5205_v11  ;;  %3467 = vmatpush1.bf16.msra.mxu0 %v5207_v12  ;;  %6391 = vst [vmem:[#allocation27_spill] sm:$0xff] %v5303_v13  ;;  %v1300_v16 = vld [vmem:[#allocation13 + $0x270] sm:$0xff]  ;;  %v5311_v27 = vpack.c.bf16 %v1307_v22, %v1303_v19  ;;  %v1323_v19 = vld [vmem:[#allocation13 + $0x328] sm:$0xff]  ;;  %v5337_v37 = vpack.c.bf16 %v1325_v26, %v1321_v24  ;;  %v1322_v44 = vld [vmem:[#allocation13 + $0x320] sm:$0xff] }
  0xd8   :  { %3469 = vmatprep.subr.bf16.mxu0 %v5215_v15  ;;  %v5307_v20 = vpack.c.bf16 %v1300_v16, %v1296_v14  ;;  %6398 = vst [vmem:[#allocation34_spill] sm:$0xff] %v5325_v6  ;;  %6399 = vst [vmem:[#allocation35_spill] sm:$0xff] %v5327_v7  ;;  %v1316_v14 = vld [vmem:[#allocation13 + $0x2f0] sm:$0xff]  ;;  %v1319_v16 = vld [vmem:[#allocation13 + $0x308] sm:$0xff]  ;;  %v5340_v50 = vpack.c.bf16 %v1322_v44, %v1318_v40 }
  0xd9   :  { %6393 = vst [vmem:[#allocation29_spill] sm:$0xff] %v5311_v27  ;;  %v5330_v22 = vpack.c.bf16 %v1323_v19, %v1319_v16  ;;  %v5333_v33 = vpack.c.bf16 %v1316_v14, %v1312_v3  ;;  %6402 = vst [vmem:[#allocation38_spill] sm:$0xff] %v5337_v37  ;;  %v1320_v45 = vld [vmem:[#allocation13 + $0x310] sm:$0xff]  ;;  %v1327_v59 = vld [vmem:[#allocation13 + $0x348] sm:$0xff] }
  0xda   :  { %3595 = vmatpush1.bf16.msra.mxu1 %v5211_v17  ;;  %6392 = vst [vmem:[#allocation28_spill] sm:$0xff] %v5307_v20  ;;  %6403 = vst [vmem:[#allocation39_spill] sm:$0xff] %v5340_v50  ;;  %v1324_v54 = vld [vmem:[#allocation13 + $0x330] sm:$0xff]  ;;  %v1331_v63 = vld [vmem:[#allocation13 + $0x368] sm:$0xff] }
  0xdb   :  { %3597 = vmatprep.subr.bf16.mxu1 %v5217_v21  ;;  %3471 = vmatpush1.bf16.msra.mxu0 %v5219_v25  ;;  %6400 = vst [vmem:[#allocation36_spill] sm:$0xff] %v5330_v22  ;;  %6401 = vst [vmem:[#allocation37_spill] sm:$0xff] %v5333_v33  ;;  %v5343_v56 = vpack.c.bf16 %v1324_v54, %v1320_v45  ;;  %v1329_v3 = vld [vmem:[#allocation13 + $0x358] sm:$0xff]  ;;  %v5347_v14 = vpack.c.bf16 %v1331_v63, %v1327_v59  ;;  %v1326_v19 = vld [vmem:[#allocation13 + $0x340] sm:$0xff] }
  0xdc   :  { %3473 = vmatprep.subr.bf16.mxu0 %v5222_v29  ;;  %v1333_v16 = vld [vmem:[#allocation13 + $0x378] sm:$0xff]  ;;  %v1330_v24 = vld [vmem:[#allocation13 + $0x360] sm:$0xff]  ;;  %v1328_v44 = vld [vmem:[#allocation13 + $0x350] sm:$0xff] }
  0xdd   :  { %6404 = vst [vmem:[#allocation40_spill] sm:$0xff] %v5343_v56  ;;  %6405 = vst [vmem:[#allocation41_spill] sm:$0xff] %v5347_v14  ;;  %v5349_v26 = vpack.c.bf16 %v1333_v16, %v1329_v3  ;;  %v5351_v40 = vpack.c.bf16 %v1330_v24, %v1326_v19  ;;  %v1335_v45 = vld [vmem:[#allocation13 + $0x388] sm:$0xff]  ;;  %v1341_v59 = vld [vmem:[#allocation13 + $0x3b8] sm:$0xff] }
  0xde   :  { %3599 = vmatpush1.bf16.msra.mxu1 %v5225_v35  ;;  %v1334_v16 = vld [vmem:[#allocation13 + $0x380] sm:$0xff]  ;;  %v1336_v24 = vld [vmem:[#allocation13 + $0x390] sm:$0xff] }
  0xdf   :  { %3601 = vmatprep.subr.bf16.mxu1 %v5229_v38  ;;  %3475 = vmatpush1.bf16.msra.mxu0 %v5231_v39  ;;  %6406 = vst [vmem:[#allocation42_spill] sm:$0xff] %v5349_v26  ;;  %6407 = vst [vmem:[#allocation43_spill] sm:$0xff] %v5351_v40  ;;  %v1338_v19 = vld [vmem:[#allocation13 + $0x3a0] sm:$0xff] }
  0xe0   :  { %3477 = vmatprep.subr.bf16.mxu0 %v5234_v43 }
  0xe2   :  { %3603 = vmatpush1.bf16.msra.mxu1 %v5237_v46 }
  0xe3   :  { %3605 = vmatprep.subr.bf16.mxu1 %v5241_v47  ;;  %3479 = vmatpush1.bf16.msra.mxu0 %v5244_v51 }
  0xe4   :  { %3481 = vmatprep.subr.bf16.mxu0 %v5251_v57 }
  0xe6   :  { %3607 = vmatpush1.bf16.msra.mxu1 %v5247_v53 }
  0xe7   :  { %3609 = vmatprep.subr.bf16.mxu1 %v5253_v32  ;;  %3483 = vmatpush1.bf16.msra.mxu0 %v5255_v62 }
  0xe8   :  { %3485 = vmatprep.subr.bf16.mxu0 %v5263_v9 }
  0xea   :  { %3611 = vmatpush1.bf16.msra.mxu1 %v5259_v5 }
  0xeb   :  { %3613 = vmatprep.subr.bf16.mxu1 %v5265_v10  ;;  %3487 = vmatpush1.bf16.msra.mxu0 %v5267_v18 }
  0xec   :  { %3489 = vmatprep.subr.bf16.mxu0 %v5270_v23 }
  0xee   :  { %3615 = vmatpush1.bf16.msra.mxu1 %v5273_v28 }
  0xef   :  { %3617 = vmatprep.subr.bf16.mxu1 %v5277_v34  ;;  %3491 = vmatpush1.bf16.msra.mxu0 %v5279_v36 }
  0xf0   :  { %3493 = vmatprep.subr.bf16.mxu0 %v5282_v42 }
  0xf2   :  { %3619 = vmatpush1.bf16.msra.mxu1 %v5285_v48 }
  0xf3   :  { %3621 = vmatprep.subr.bf16.mxu1 %v5289_v49  ;;  %3495 = vmatpush1.bf16.msra.mxu0 %v5292_v55 }
  0xf4   :  { %3497 = vmatprep.subr.bf16.mxu0 %v5299_v1 }
  0xf6   :  { %3623 = vmatpush1.bf16.msra.mxu1 %v5295_v58 }
  0xf7   :  { %3625 = vmatprep.subr.bf16.mxu1 %v5301_v8  ;;  %3499 = vmatpush1.bf16.msra.mxu0 %v5303_v13 }
  0xf8   :  { %3501 = vmatprep.subr.bf16.mxu0 %v5311_v27  ;;  %v1367_v27 = vld [vmem:[#allocation13 + $0x488] sm:$0xff] }
  0xfa   :  { %3627 = vmatpush1.bf16.msra.mxu1 %v5307_v20 }
  0xfb   :  { %3629 = vmatprep.subr.bf16.mxu1 %v5313_v31  ;;  %3503 = vmatpush1.bf16.msra.mxu0 %v5315_v41  ;;  %v1364_v31 = vld [vmem:[#allocation13 + $0x470] sm:$0xff] }
  0xfc   :  { %3505 = vmatprep.subr.bf16.mxu0 %v5318_v52  ;;  %v1361_v52 = vld [vmem:[#allocation13 + $0x458] sm:$0xff] }
  0xfe   :  { %3631 = vmatpush1.bf16.msra.mxu1 %v5321_v60  ;;  %v1365_v60 = vld [vmem:[#allocation13 + $0x478] sm:$0xff] }
  0xff   :  { %3633 = vmatprep.subr.bf16.mxu1 %v5325_v6  ;;  %3507 = vmatpush1.bf16.msra.mxu0 %v5327_v7  ;;  %v1363_v6 = vld [vmem:[#allocation13 + $0x468] sm:$0xff] }
 0x100   :  { %3509 = vmatprep.subr.bf16.mxu0 %v5330_v22  ;;  %v1332_v22 = vld [vmem:[#allocation13 + $0x370] sm:$0xff] }
 0x101   :  { %v5355_v54 = vpack.c.bf16 %v1332_v22, %v1328_v44  ;;  %v1340_v22 = vld [vmem:[#allocation13 + $0x3b0] sm:$0xff] }
 0x102   :  { %3635 = vmatpush1.bf16.msra.mxu1 %v5333_v33  ;;  %v5367_v44 = vpack.c.bf16 %v1340_v22, %v1336_v24  ;;  %v1351_v22 = vld [vmem:[#allocation13 + $0x408] sm:$0xff]  ;;  %v1356_v33 = vld [vmem:[#allocation13 + $0x430] sm:$0xff] }
 0x103   :  { %3637 = vmatprep.subr.bf16.mxu1 %v5337_v37  ;;  %3511 = vmatpush1.bf16.msra.mxu0 %v5340_v50  ;;  %6408 = vst [vmem:[#allocation44_spill] sm:$0xff] %v5355_v54  ;;  %v1339_v50 = vld [vmem:[#allocation13 + $0x3a8] sm:$0xff]  ;;  %v1337_v37 = vld [vmem:[#allocation13 + $0x398] sm:$0xff] }
 0x104   :  { %3513 = vmatprep.subr.bf16.mxu0 %v5347_v14  ;;  %v5359_v63 = vpack.c.bf16 %v1339_v50, %v1335_v45  ;;  %v5361_v3 = vpack.c.bf16 %v1341_v59, %v1337_v37  ;;  %6412 = vst [vmem:[#allocation48_spill] sm:$0xff] %v5367_v44  ;;  %v1343_v50 = vld [vmem:[#allocation13 + $0x3c8] sm:$0xff]  ;;  %v1345_v37 = vld [vmem:[#allocation13 + $0x3d8] sm:$0xff]  ;;  %v1346_v14 = vld [vmem:[#allocation13 + $0x3e0] sm:$0xff] }
 0x105   :  { %v1347_v45 = vld [vmem:[#allocation13 + $0x3e8] sm:$0xff] }
 0x106   :  { %3639 = vmatpush1.bf16.msra.mxu1 %v5343_v56  ;;  %6409 = vst [vmem:[#allocation45_spill] sm:$0xff] %v5359_v63  ;;  %6410 = vst [vmem:[#allocation46_spill] sm:$0xff] %v5361_v3  ;;  %v5364_v56 = vpack.c.bf16 %v1338_v19, %v1334_v16  ;;  %v5371_v59 = vpack.c.bf16 %v1347_v45, %v1343_v50  ;;  %v1344_v19 = vld [vmem:[#allocation13 + $0x3d0] sm:$0xff]  ;;  %v1355_v50 = vld [vmem:[#allocation13 + $0x428] sm:$0xff] }
 0x107   :  { %3641 = vmatprep.subr.bf16.mxu1 %v5349_v26  ;;  %3515 = vmatpush1.bf16.msra.mxu0 %v5351_v40  ;;  %v1349_v40 = vld [vmem:[#allocation13 + $0x3f8] sm:$0xff]  ;;  %v1342_v26 = vld [vmem:[#allocation13 + $0x3c0] sm:$0xff]  ;;  %v5383_v45 = vpack.c.bf16 %v1355_v50, %v1351_v22 }
 0x108   :  { %3517 = vmatprep.subr.bf16.mxu0 %v5359_v63  ;;  %6411 = vst [vmem:[#allocation47_spill] sm:$0xff] %v5364_v56  ;;  %6413 = vst [vmem:[#allocation49_spill] sm:$0xff] %v5371_v59  ;;  %v5373_v63 = vpack.c.bf16 %v1349_v40, %v1345_v37  ;;  %v5375_v16 = vpack.c.bf16 %v1346_v14, %v1342_v26  ;;  %v1353_v40 = vld [vmem:[#allocation13 + $0x418] sm:$0xff] }
 0x109   :  { %6417 = vst [vmem:[#allocation53_spill] sm:$0xff] %v5383_v45  ;;  %v1357_v37 = vld [vmem:[#allocation13 + $0x438] sm:$0xff] }
 0x10a   :  { %3643 = vmatpush1.bf16.msra.mxu1 %v5355_v54  ;;  %6414 = vst [vmem:[#allocation50_spill] sm:$0xff] %v5373_v63  ;;  %6415 = vst [vmem:[#allocation51_spill] sm:$0xff] %v5375_v16  ;;  %v1348_v54 = vld [vmem:[#allocation13 + $0x3f0] sm:$0xff]  ;;  %v5385_v14 = vpack.c.bf16 %v1357_v37, %v1353_v40 }
 0x10b   :  { %3645 = vmatprep.subr.bf16.mxu1 %v5361_v3  ;;  %3519 = vmatpush1.bf16.msra.mxu0 %v5364_v56  ;;  %v5379_v24 = vpack.c.bf16 %v1348_v54, %v1344_v19  ;;  %v821_v19 = vlaneseq }
 0x10c   :  { %3521 = vmatprep.subr.bf16.mxu0 %v5371_v59  ;;  %6418 = vst [vmem:[#allocation54_spill] sm:$0xff] %v5385_v14 }
 0x10d   :  { %6416 = vst [vmem:[#allocation52_spill] sm:$0xff] %v5379_v24 }
 0x10e   :  { %3647 = vmatpush1.bf16.msra.mxu1 %v5367_v44 }
 0x10f   :  { %3649 = vmatprep.subr.bf16.mxu1 %v5373_v63  ;;  %3523 = vmatpush1.bf16.msra.mxu0 %v5375_v16  ;;  %v5394_v16 = vshrl.u32 %v821_v19, 7  ;;  %v5396_v63 = vld [vmem:[#allocation7 + $0x10] sm:$0x3f] }
 0x110   :  { %3525 = vmatprep.subr.bf16.mxu0 %v5383_v45 }
 0x111   :  { %6421 = vst [vmem:[#allocation57_spill] sm:$0xff] %v5394_v16  ;;  %v5399_v22 = vsub.s32 1, %v5394_v16  ;;  %v5412_v19 = vsub.s32 2, %v5394_v16 }
 0x112   :  { %3651 = vmatpush1.bf16.msra.mxu1 %v5379_v24 }
 0x113   :  { %3653 = vmatprep.subr.bf16.mxu1 %v5385_v14  ;;  %6422 = vst [vmem:[#allocation58_spill] sm:$0xff] %v5399_v22  ;;  %v832_v37 = vrot.slane %v5396_v63, %v5399_v22  ;;  %6427 = vst [vmem:[#allocation63_spill] sm:$0xff] %v5412_v19 }
 0x165   :  { %v5390_v26 = vpop.f32.mrb[0].mxu0 }
 0x166   :  { %6419 = vst [vmem:[#allocation55_spill] sm:$0xff] %v5390_v26  ;;  %v5392_v54 = vpop.f32.mrb[1].mxu0 }
 0x167   :  { %6420 = vst [vmem:[#allocation56_spill] sm:$0xff] %v5392_v54 }
 0x168   :  { %v390_v14 = vpop.f32.mrb[0].mxu1 }
 0x169   :  { %v5407_v45 = vadd.f32 %v832_v37, %v390_v14  ;;  %v5409_v26 = vpop.f32.mrb[1].mxu1  ;;  %v5429_v37 = vsub.s32 0, %v5394_v16  ;;  %v1359_v16 = vld [vmem:[#allocation13 + $0x448] sm:$0xff] }
 0x16a   :  { %6426 = vst [vmem:[#allocation62_spill] sm:$0xff] %v5409_v26  ;;  %v117_v26 = vld [vmem:[#allocation7 + $0x8] sm:$0x3f]  ;;  %v5443_v41 = vpack.c.bf16 %v1363_v6, %v1359_v16  ;;  %v1366_v6 = vld [vmem:[#allocation13 + $0x480] sm:$0xff] }
 0x16b   :  { %6425 = vst [vmem:[#allocation61_spill] sm:$0xff] %v5407_v45  ;;  %v116_v45 = vld [vmem:[#allocation7] sm:$0x3f] }
 0x16c   :  { %6439 = vst [vmem:[#allocation75_spill] sm:$0xff] %v5443_v41 }
 0x175   :  { %v5401_v50 = vpop.f32.mrb[2].mxu0 }
 0x176   :  { %6423 = vst [vmem:[#allocation59_spill] sm:$0xff] %v5401_v50  ;;  %v5403_v40 = vpop.f32.mrb[3].mxu0  ;;  %v852_v50 = vrot.slane %v5396_v63, %v5412_v19  ;;  %v1485_v19 = vrot.slane %v117_v26, %v5429_v37 }
 0x177   :  { %6424 = vst [vmem:[#allocation60_spill] sm:$0xff] %v5403_v40 }
 0x178   :  { %v532_v59 = vpop.f32.mrb[2].mxu1 }
 0x179   :  { %v5420_v40 = vadd.f32 %v852_v50, %v532_v59  ;;  %v5422_v44 = vpop.f32.mrb[3].mxu1 }
 0x17a   :  { %6431 = vst [vmem:[#allocation67_spill] sm:$0xff] %v5422_v44  ;;  %v1350_v44 = vld [vmem:[#allocation13 + $0x400] sm:$0xff] }
 0x17b   :  { %6430 = vst [vmem:[#allocation66_spill] sm:$0xff] %v5420_v40 }
 0x185   :  { %v5414_v54 = vpop.f32.mrb[4].mxu0 }
 0x186   :  { %6428 = vst [vmem:[#allocation64_spill] sm:$0xff] %v5414_v54  ;;  %v5416_v24 = vpop.f32.mrb[5].mxu0  ;;  %v1481_v54 = vrot.slane %v116_v45, %v5429_v37 }
 0x187   :  { %6429 = vst [vmem:[#allocation65_spill] sm:$0xff] %v5416_v24 }
 0x188   :  { %v5432_v24 = vpop.f32.mrb[4].mxu1 }
 0x189   :  { %6434 = vst [vmem:[#allocation70_spill] sm:$0xff] %v5432_v24  ;;  %v5435_v56 = vpop.f32.mrb[5].mxu1 }
 0x18a   :  { %6435 = vst [vmem:[#allocation71_spill] sm:$0xff] %v5435_v56  ;;  %v1358_v56 = vld [vmem:[#allocation13 + $0x440] sm:$0xff] }
 0x195   :  { %v5424_v22 = vpop.f32.mrb[6].mxu0 }
 0x196   :  { %6432 = vst [vmem:[#allocation68_spill] sm:$0xff] %v5424_v22  ;;  %v5426_v14 = vpop.f32.mrb[7].mxu0  ;;  %v1354_v22 = vld [vmem:[#allocation13 + $0x420] sm:$0xff] }
 0x197   :  { %6433 = vst [vmem:[#allocation69_spill] sm:$0xff] %v5426_v14  ;;  %v1352_v14 = vld [vmem:[#allocation13 + $0x410] sm:$0xff]  ;;  %v5437_v24 = vpack.c.bf16 %v1354_v22, %v1350_v44  ;;  %v1371_v44 = vld [vmem:[#allocation13 + $0x4a8] sm:$0xff]  ;;  %v1373_v22 = vld [vmem:[#allocation13 + $0x4b8] sm:$0xff] }
 0x198   :  { %v5439_v26 = vpack.c.bf16 %v1356_v33, %v1352_v14  ;;  %v1369_v33 = vld [vmem:[#allocation13 + $0x498] sm:$0xff]  ;;  %v1368_v14 = vld [vmem:[#allocation13 + $0x490] sm:$0xff] }
 0x199   :  { %6436 = vst [vmem:[#allocation72_spill] sm:$0xff] %v5437_v24  ;;  %v5463_v16 = vpack.c.bf16 %v1373_v22, %v1369_v33  ;;  %v1376_v22 = vld [vmem:[#allocation13 + $0x4d0] sm:$0xff] }
 0x19a   :  { %6437 = vst [vmem:[#allocation73_spill] sm:$0xff] %v5439_v26 }
 0x19b   :  { %6444 = vst [vmem:[#allocation80_spill] sm:$0xff] %v5463_v16 }
 0x19d   :  { %v1004_v59 = vpop.f32.mrb[8].mxu0 }
 0x19e   :  { %v1494_v50 = vadd.f32 %v1481_v54, %v1004_v59  ;;  %v1006_v40 = vpop.f32.mrb[9].mxu0  ;;  %v1362_v54 = vld [vmem:[#allocation13 + $0x460] sm:$0xff] }
 0x19f   :  { %v1495_v3 = vadd.f32 %v1485_v19, %v1006_v40  ;;  %v5445_v40 = vpack.c.bf16 %v1365_v60, %v1361_v52  ;;  %v1360_v19 = vld [vmem:[#allocation13 + $0x450] sm:$0xff]  ;;  %v5455_v52 = vpack.c.bf16 %v1362_v54, %v1358_v56  ;;  %v1374_v54 = vld [vmem:[#allocation13 + $0x4c0] sm:$0xff] }
 0x1a0   :  { %v1502_v7 = vmul.f32 0.2, %v1494_v50  ;;  %vm1498_vm2 = vcmp.ge.f32.partialorder %v1494_v50, 0.0  ;;  %v5457_v60 = vpack.c.bf16 %v1364_v31, %v1360_v19  ;;  %v1378_v19 = vld [vmem:[#allocation13 + $0x4e0] sm:$0xff] }
 0x1a1   :  { %v1503_v45 = vmul.f32 0.2, %v1495_v3  ;;  %vm1499_vm3 = vcmp.ge.f32.partialorder %v1495_v3, 0.0  ;;  %6440 = vst [vmem:[#allocation76_spill] sm:$0xff] %v5445_v40  ;;  %6441 = vst [vmem:[#allocation77_spill] sm:$0xff] %v5455_v52 }
 0x1a2   :  { %v5449_v20 = vsel %vm1498_vm2, %v1494_v50, %v1502_v7  ;;  %6442 = vst [vmem:[#allocation78_spill] sm:$0xff] %v5457_v60  ;;  %v5461_v7 = vpack.c.bf16 %v1371_v44, %v1367_v27  ;;  %v1372_v50 = vld [vmem:[#allocation13 + $0x4b0] sm:$0xff]  ;;  %v5471_v27 = vpop.f32.mrb[6].mxu1 }
 0x1a3   :  { %v5441_v59 = vsel %vm1499_vm3, %v1495_v3, %v1503_v45  ;;  %v1370_v3 = vld [vmem:[#allocation13 + $0x4a0] sm:$0xff]  ;;  %v1375_v45 = vld [vmem:[#allocation13 + $0x4c8] sm:$0xff]  ;;  %v5469_v56 = vpack.c.bf16 %v1372_v50, %v1368_v14  ;;  %6447 = vst [vmem:[#allocation83_spill] sm:$0xff] %v5471_v27  ;;  %v1389_v14 = vld [vmem:[#allocation13 + $0x538] sm:$0xff]  ;;  %v5483_v27 = vpack.c.bf16 %v1378_v19, %v1374_v54 }
 0x1a4   :  { %6438 = vst [vmem:[#allocation74_spill] sm:$0xff] %v5441_v59  ;;  %1574 = vmatprep.mubr.f32.mxu0 %v5441_v59  ;;  %1716 = vmatprep.mubr.f32.mxu1 %v5441_v59  ;;  %6443 = vst [vmem:[#allocation79_spill] sm:$0xff] %v5461_v7  ;;  %v1377_v59 = vld [vmem:[#allocation13 + $0x4d8] sm:$0xff]  ;;  %v5467_v31 = vpack.c.bf16 %v1370_v3, %v1366_v6  ;;  %v1387_v6 = vld [vmem:[#allocation13 + $0x528] sm:$0xff] }
 0x1a5   :  { %1575 = vmatmul.mubr.f32.vlgmr.msra.gmra.mrb[12].mxu0 %v5449_v20  ;;  %1717 = vmatmul.mubr.f32.vlgmr.msra.gmra.mrb[12].mxu1 %v5449_v20  ;;  %6446 = vst [vmem:[#allocation82_spill] sm:$0xff] %v5469_v56  ;;  %v1385_v3 = vld [vmem:[#allocation13 + $0x518] sm:$0xff]  ;;  %6451 = vst [vmem:[#allocation87_spill] sm:$0xff] %v5483_v27  ;;  %v1395_v54 = vld [vmem:[#allocation13 + $0x568] sm:$0xff] }
 0x1a6   :  { %3527 = vmatpush1.bf16.msra.mxu0 %v5437_v24  ;;  %3655 = vmatpush1.bf16.msra.mxu1 %v5439_v26  ;;  %v1379_v24 = vld [vmem:[#allocation13 + $0x4e8] sm:$0xff]  ;;  %v1381_v26 = vld [vmem:[#allocation13 + $0x4f8] sm:$0xff]  ;;  %6445 = vst [vmem:[#allocation81_spill] sm:$0xff] %v5467_v31 }
 0x1a7   :  { %3529 = vmatprep.subr.bf16.mxu0 %v5443_v41  ;;  %3657 = vmatprep.subr.bf16.mxu1 %v5445_v40  ;;  %v5475_v44 = vpack.c.bf16 %v1379_v24, %v1375_v45  ;;  %v5477_v33 = vpack.c.bf16 %v1381_v26, %v1377_v59  ;;  %v1383_v40 = vld [vmem:[#allocation13 + $0x508] sm:$0xff]  ;;  %v119_v50 = vld [vmem:[#allocation7 + $0x18] sm:$0x3f]  ;;  %v1382_v24 = vld [vmem:[#allocation13 + $0x500] sm:$0xff]  ;;  %v5491_v45 = vpack.c.bf16 %v1389_v14, %v1385_v3 }
 0x1a8   :  { %v1386_v26 = vld [vmem:[#allocation13 + $0x520] sm:$0xff]  ;;  %v5489_v59 = vpack.c.bf16 %v1387_v6, %v1383_v40  ;;  %v1391_v41 = vld [vmem:[#allocation13 + $0x548] sm:$0xff]  ;;  %v1393_v19 = vld [vmem:[#allocation13 + $0x558] sm:$0xff] }
 0x1a9   :  { %6448 = vst [vmem:[#allocation84_spill] sm:$0xff] %v5475_v44  ;;  %6449 = vst [vmem:[#allocation85_spill] sm:$0xff] %v5477_v33  ;;  %v1390_v6 = vld [vmem:[#allocation13 + $0x540] sm:$0xff] }
 0x1aa   :  { %3531 = vmatpush1.bf16.msra.mxu0 %v5455_v52  ;;  %3659 = vmatpush1.bf16.msra.mxu1 %v5457_v60  ;;  %v1380_v52 = vld [vmem:[#allocation13 + $0x4f0] sm:$0xff]  ;;  %v5479_v60 = vpop.f32.mrb[7].mxu1  ;;  %6453 = vst [vmem:[#allocation89_spill] sm:$0xff] %v5489_v59  ;;  %6454 = vst [vmem:[#allocation90_spill] sm:$0xff] %v5491_v45  ;;  %v1394_v3 = vld [vmem:[#allocation13 + $0x560] sm:$0xff] }
 0x1ab   :  { %3533 = vmatprep.subr.bf16.mxu0 %v5461_v7  ;;  %3661 = vmatprep.subr.bf16.mxu1 %v5463_v16  ;;  %6450 = vst [vmem:[#allocation86_spill] sm:$0xff] %v5479_v60  ;;  %v5485_v16 = vpack.c.bf16 %v1380_v52, %v1376_v22  ;;  %v1384_v60 = vld [vmem:[#allocation13 + $0x510] sm:$0xff]  ;;  %v1397_v52 = vld [vmem:[#allocation13 + $0x578] sm:$0xff]  ;;  %v1493_v22 = vrot.slane %v119_v50, %v5429_v37  ;;  %v1075_v14 = vpop.f32.mrb[8].mxu1 }
 0x1ac   :  { %v1388_v7 = vld [vmem:[#allocation13 + $0x530] sm:$0xff] }
 0x1ad   :  { %6452 = vst [vmem:[#allocation88_spill] sm:$0xff] %v5485_v16  ;;  %v5500_v40 = vpack.c.bf16 %v1388_v7, %v1384_v60  ;;  %v1396_v50 = vld [vmem:[#allocation13 + $0x570] sm:$0xff]  ;;  %v1401_v60 = vld [vmem:[#allocation13 + $0x598] sm:$0xff] }
 0x1ae   :  { %3535 = vmatpush1.bf16.msra.mxu0 %v5467_v31  ;;  %3663 = vmatpush1.bf16.msra.mxu1 %v5469_v56  ;;  %v1489_v56 = vrot.slane %v5396_v63, %v5429_v37  ;;  %v5504_v63 = vpack.c.bf16 %v1395_v54, %v1391_v41  ;;  %v1392_v37 = vld [vmem:[#allocation13 + $0x550] sm:$0xff]  ;;  %v1405_v7 = vld [vmem:[#allocation13 + $0x5b8] sm:$0xff]  ;;  %v1398_v54 = vld [vmem:[#allocation13 + $0x580] sm:$0xff] }
 0x1af   :  { %3537 = vmatprep.subr.bf16.mxu0 %v5475_v44  ;;  %3665 = vmatprep.subr.bf16.mxu1 %v5477_v33  ;;  %v5498_v33 = vpack.c.bf16 %v1386_v26, %v1382_v24  ;;  %6456 = vst [vmem:[#allocation92_spill] sm:$0xff] %v5500_v40  ;;  %v5506_v44 = vpack.c.bf16 %v1397_v52, %v1393_v19  ;;  %v1077_v24 = vpop.f32.mrb[9].mxu1  ;;  %v1403_v26 = vld [vmem:[#allocation13 + $0x5a8] sm:$0xff]  ;;  %v1402_v19 = vld [vmem:[#allocation13 + $0x5a0] sm:$0xff] }
 0x1b0   :  { %6457 = vst [vmem:[#allocation93_spill] sm:$0xff] %v5504_v63  ;;  %v5508_v31 = vadd.f32 %v1489_v56, %v1075_v14  ;;  %v5514_v41 = vpack.c.bf16 %v1396_v50, %v1392_v37  ;;  %v5520_v14 = vpack.c.bf16 %v1405_v7, %v1401_v60  ;;  %v1410_v60 = vld [vmem:[#allocation13 + $0x5e0] sm:$0xff] }
 0x1b1   :  { %6455 = vst [vmem:[#allocation91_spill] sm:$0xff] %v5498_v33  ;;  %6458 = vst [vmem:[#allocation94_spill] sm:$0xff] %v5506_v44 }
 0x1b2   :  { %3539 = vmatpush1.bf16.msra.mxu0 %v5483_v27  ;;  %3667 = vmatpush1.bf16.msra.mxu1 %v5485_v16  ;;  %v1399_v27 = vld [vmem:[#allocation13 + $0x588] sm:$0xff]  ;;  %v1497_v16 = vadd.f32 %v1493_v22, %v1077_v24  ;;  %6460 = vst [vmem:[#allocation96_spill] sm:$0xff] %v5514_v41  ;;  %6462 = vst [vmem:[#allocation98_spill] sm:$0xff] %v5520_v14  ;;  %v1400_v22 = vld [vmem:[#allocation13 + $0x590] sm:$0xff]  ;;  %vm1500_vm5 = vcmp.ge.f32.partialorder %v5508_v31, 0.0 }
 0x1b3   :  { %3541 = vmatprep.subr.bf16.mxu0 %v5489_v59  ;;  %3669 = vmatprep.subr.bf16.mxu1 %v5491_v45  ;;  %v5512_v59 = vpack.c.bf16 %v1394_v3, %v1390_v6  ;;  %v5518_v56 = vpack.c.bf16 %v1403_v26, %v1399_v27  ;;  %v1404_v24 = vld [vmem:[#allocation13 + $0x5b0] sm:$0xff]  ;;  %v1409_v6 = vld [vmem:[#allocation13 + $0x5d8] sm:$0xff]  ;;  %v5528_v27 = vpack.c.bf16 %v1402_v19, %v1398_v54  ;;  %v1406_v26 = vld [vmem:[#allocation13 + $0x5c0] sm:$0xff] }
 0x1b4   :  { %v1505_v52 = vmul.f32 0.2, %v1497_v16  ;;  %vm1501_vm4 = vcmp.ge.f32.partialorder %v1497_v16, 0.0  ;;  %v1413_v3 = vld [vmem:[#allocation13 + $0x5f8] sm:$0xff]  ;;  %v5530_v50 = vpack.c.bf16 %v1404_v24, %v1400_v22  ;;  %v5540_v54 = vpack.c.bf16 %v1410_v60, %v1406_v26  ;;  %v1414_v22 = vld [vmem:[#allocation13 + $0x600] sm:$0xff] }
 0x1b5   :  { %6459 = vst [vmem:[#allocation95_spill] sm:$0xff] %v5512_v59  ;;  %6461 = vst [vmem:[#allocation97_spill] sm:$0xff] %v5518_v56  ;;  %v5536_v7 = vpack.c.bf16 %v1413_v3, %v1409_v6  ;;  %v1417_v45 = vld [vmem:[#allocation13 + $0x618] sm:$0xff]  ;;  %v1418_v24 = vld [vmem:[#allocation13 + $0x620] sm:$0xff] }
 0x1b6   :  { %3543 = vmatpush1.bf16.msra.mxu0 %v5498_v33  ;;  %3671 = vmatpush1.bf16.msra.mxu1 %v5500_v40  ;;  %v1407_v33 = vld [vmem:[#allocation13 + $0x5c8] sm:$0xff]  ;;  %v5522_v37 = vsel %vm1501_vm4, %v1497_v16, %v1505_v52  ;;  %6463 = vst [vmem:[#allocation99_spill] sm:$0xff] %v5528_v27  ;;  %6464 = vst [vmem:[#allocation100_spill] sm:$0xff] %v5530_v50  ;;  %v1408_v52 = vld [vmem:[#allocation13 + $0x5d0] sm:$0xff] }
 0x1b7   :  { %3545 = vmatprep.subr.bf16.mxu0 %v5504_v63  ;;  %3673 = vmatprep.subr.bf16.mxu1 %v5506_v44  ;;  %v1411_v40 = vld [vmem:[#allocation13 + $0x5e8] sm:$0xff]  ;;  %6466 = vst [vmem:[#allocation102_spill] sm:$0xff] %v5536_v7  ;;  %v1412_v44 = vld [vmem:[#allocation13 + $0x5f0] sm:$0xff]  ;;  %6467 = vst [vmem:[#allocation103_spill] sm:$0xff] %v5540_v54 }
 0x1b8   :  { %1645 = vmatprep.mubr.f32.mxu0 %v5522_v37  ;;  %1787 = vmatprep.mubr.f32.mxu1 %v5522_v37  ;;  %v5534_v16 = vpack.c.bf16 %v1411_v40, %v1407_v33  ;;  %v1415_v63 = vld [vmem:[#allocation13 + $0x608] sm:$0xff]  ;;  %v5542_v19 = vpack.c.bf16 %v1412_v44, %v1408_v52  ;;  %v1416_v6 = vld [vmem:[#allocation13 + $0x610] sm:$0xff]  ;;  %v5552_v44 = vpack.c.bf16 %v1418_v24, %v1414_v22  ;;  %v1422_v60 = vld [vmem:[#allocation13 + $0x640] sm:$0xff] }
 0x1b9   :  { %v1420_v3 = vld [vmem:[#allocation13 + $0x630] sm:$0xff]  ;;  %v1426_v52 = vld [vmem:[#allocation13 + $0x660] sm:$0xff] }
 0x1ba   :  { %3547 = vmatpush1.bf16.msra.mxu0 %v5512_v59  ;;  %3675 = vmatpush1.bf16.msra.mxu1 %v5514_v41  ;;  %6465 = vst [vmem:[#allocation101_spill] sm:$0xff] %v5534_v16  ;;  %v1419_v59 = vld [vmem:[#allocation13 + $0x628] sm:$0xff]  ;;  %v1421_v41 = vld [vmem:[#allocation13 + $0x638] sm:$0xff]  ;;  %6468 = vst [vmem:[#allocation104_spill] sm:$0xff] %v5542_v19  ;;  %v5554_v26 = vpack.c.bf16 %v1420_v3, %v1416_v6  ;;  %v5564_v22 = vpack.c.bf16 %v1426_v52, %v1422_v60 }
 0x1bb   :  { %3549 = vmatprep.subr.bf16.mxu0 %v5518_v56  ;;  %3677 = vmatprep.subr.bf16.mxu1 %v5520_v14  ;;  %v5546_v33 = vpack.c.bf16 %v1419_v59, %v1415_v63  ;;  %v5548_v40 = vpack.c.bf16 %v1421_v41, %v1417_v45  ;;  %v1423_v14 = vld [vmem:[#allocation13 + $0x648] sm:$0xff]  ;;  %v1425_v56 = vld [vmem:[#allocation13 + $0x658] sm:$0xff]  ;;  %6471 = vst [vmem:[#allocation107_spill] sm:$0xff] %v5552_v44  ;;  %v1424_v63 = vld [vmem:[#allocation13 + $0x650] sm:$0xff] }
 0x1bc   :  { %6472 = vst [vmem:[#allocation108_spill] sm:$0xff] %v5554_v26  ;;  %v1428_v41 = vld [vmem:[#allocation13 + $0x670] sm:$0xff]  ;;  %6475 = vst [vmem:[#allocation111_spill] sm:$0xff] %v5564_v22  ;;  %v1430_v6 = vld [vmem:[#allocation13 + $0x680] sm:$0xff] }
 0x1bd   :  { %6469 = vst [vmem:[#allocation105_spill] sm:$0xff] %v5546_v33  ;;  %6470 = vst [vmem:[#allocation106_spill] sm:$0xff] %v5548_v40  ;;  %v5566_v24 = vpack.c.bf16 %v1428_v41, %v1424_v63  ;;  %v1434_v3 = vld [vmem:[#allocation13 + $0x6a0] sm:$0xff] }
 0x1be   :  { %3551 = vmatpush1.bf16.msra.mxu0 %v5528_v27  ;;  %3679 = vmatpush1.bf16.msra.mxu1 %v5530_v50  ;;  %v1427_v27 = vld [vmem:[#allocation13 + $0x668] sm:$0xff]  ;;  %v1429_v50 = vld [vmem:[#allocation13 + $0x678] sm:$0xff]  ;;  %v5576_v60 = vpack.c.bf16 %v1434_v3, %v1430_v6  ;;  %v1438_v63 = vld [vmem:[#allocation13 + $0x6c0] sm:$0xff] }
 0x1bf   :  { %3553 = vmatprep.subr.bf16.mxu0 %v5534_v16  ;;  %3681 = vmatprep.subr.bf16.mxu1 %v5536_v7  ;;  %v5558_v59 = vpack.c.bf16 %v1427_v27, %v1423_v14  ;;  %v5560_v45 = vpack.c.bf16 %v1429_v50, %v1425_v56  ;;  %v1431_v7 = vld [vmem:[#allocation13 + $0x688] sm:$0xff]  ;;  %v1433_v16 = vld [vmem:[#allocation13 + $0x698] sm:$0xff]  ;;  %6476 = vst [vmem:[#allocation112_spill] sm:$0xff] %v5566_v24  ;;  %v1432_v27 = vld [vmem:[#allocation13 + $0x690] sm:$0xff] }
 0x1c0   :  { %v1436_v50 = vld [vmem:[#allocation13 + $0x6b0] sm:$0xff]  ;;  %6479 = vst [vmem:[#allocation115_spill] sm:$0xff] %v5576_v60  ;;  %v1442_v41 = vld [vmem:[#allocation13 + $0x6e0] sm:$0xff] }
 0x1c1   :  { %6473 = vst [vmem:[#allocation109_spill] sm:$0xff] %v5558_v59  ;;  %6474 = vst [vmem:[#allocation110_spill] sm:$0xff] %v5560_v45  ;;  %v5578_v52 = vpack.c.bf16 %v1436_v50, %v1432_v27  ;;  %v5588_v6 = vpack.c.bf16 %v1442_v41, %v1438_v63  ;;  %v1446_v27 = vld [vmem:[#allocation13 + $0x700] sm:$0xff] }
 0x1c2   :  { %3555 = vmatpush1.bf16.msra.mxu0 %v5540_v54  ;;  %3683 = vmatpush1.bf16.msra.mxu1 %v5542_v19  ;;  %v1435_v54 = vld [vmem:[#allocation13 + $0x6a8] sm:$0xff]  ;;  %v1437_v19 = vld [vmem:[#allocation13 + $0x6b8] sm:$0xff]  ;;  %v1450_v50 = vld [vmem:[#allocation13 + $0x720] sm:$0xff] }
 0x1c3   :  { %3557 = vmatprep.subr.bf16.mxu0 %v5546_v33  ;;  %3685 = vmatprep.subr.bf16.mxu1 %v5548_v40  ;;  %v5570_v56 = vpack.c.bf16 %v1435_v54, %v1431_v7  ;;  %v5572_v14 = vpack.c.bf16 %v1437_v19, %v1433_v16  ;;  %v1439_v40 = vld [vmem:[#allocation13 + $0x6c8] sm:$0xff]  ;;  %v1441_v33 = vld [vmem:[#allocation13 + $0x6d8] sm:$0xff]  ;;  %6480 = vst [vmem:[#allocation116_spill] sm:$0xff] %v5578_v52  ;;  %v1440_v54 = vld [vmem:[#allocation13 + $0x6d0] sm:$0xff] }
 0x1c4   :  { %v1444_v19 = vld [vmem:[#allocation13 + $0x6f0] sm:$0xff]  ;;  %6483 = vst [vmem:[#allocation119_spill] sm:$0xff] %v5588_v6  ;;  %v5600_v63 = vpack.c.bf16 %v1450_v50, %v1446_v27 }
 0x1c5   :  { %6477 = vst [vmem:[#allocation113_spill] sm:$0xff] %v5570_v56  ;;  %6478 = vst [vmem:[#allocation114_spill] sm:$0xff] %v5572_v14  ;;  %v5590_v3 = vpack.c.bf16 %v1444_v19, %v1440_v54  ;;  %v1454_v54 = vld [vmem:[#allocation13 + $0x740] sm:$0xff] }
 0x1c6   :  { %3559 = vmatpush1.bf16.msra.mxu0 %v5552_v44  ;;  %3687 = vmatpush1.bf16.msra.mxu1 %v5554_v26  ;;  %v1443_v44 = vld [vmem:[#allocation13 + $0x6e8] sm:$0xff]  ;;  %v1445_v26 = vld [vmem:[#allocation13 + $0x6f8] sm:$0xff]  ;;  %6487 = vst [vmem:[#allocation123_spill] sm:$0xff] %v5600_v63  ;;  %v1458_v19 = vld [vmem:[#allocation13 + $0x760] sm:$0xff] }
 0x1c7   :  { %3561 = vmatprep.subr.bf16.mxu0 %v5558_v59  ;;  %3689 = vmatprep.subr.bf16.mxu1 %v5560_v45  ;;  %v5582_v16 = vpack.c.bf16 %v1443_v44, %v1439_v40  ;;  %v5584_v7 = vpack.c.bf16 %v1445_v26, %v1441_v33  ;;  %v1447_v45 = vld [vmem:[#allocation13 + $0x708] sm:$0xff]  ;;  %v1449_v59 = vld [vmem:[#allocation13 + $0x718] sm:$0xff]  ;;  %6484 = vst [vmem:[#allocation120_spill] sm:$0xff] %v5590_v3  ;;  %v1448_v44 = vld [vmem:[#allocation13 + $0x710] sm:$0xff] }
 0x1c8   :  { %v1452_v26 = vld [vmem:[#allocation13 + $0x730] sm:$0xff]  ;;  %v5612_v27 = vpack.c.bf16 %v1458_v19, %v1454_v54 }
 0x1c9   :  { %6481 = vst [vmem:[#allocation117_spill] sm:$0xff] %v5582_v16  ;;  %6482 = vst [vmem:[#allocation118_spill] sm:$0xff] %v5584_v7  ;;  %v5602_v41 = vpack.c.bf16 %v1452_v26, %v1448_v44  ;;  %v1462_v44 = vld [vmem:[#allocation13 + $0x780] sm:$0xff] }
 0x1ca   :  { %3563 = vmatpush1.bf16.msra.mxu0 %v5564_v22  ;;  %3691 = vmatpush1.bf16.msra.mxu1 %v5566_v24  ;;  %v1451_v22 = vld [vmem:[#allocation13 + $0x728] sm:$0xff]  ;;  %v1453_v24 = vld [vmem:[#allocation13 + $0x738] sm:$0xff]  ;;  %6491 = vst [vmem:[#allocation127_spill] sm:$0xff] %v5612_v27  ;;  %v1466_v26 = vld [vmem:[#allocation13 + $0x7a0] sm:$0xff] }
 0x1cb   :  { %3565 = vmatprep.subr.bf16.mxu0 %v5570_v56  ;;  %3693 = vmatprep.subr.bf16.mxu1 %v5572_v14  ;;  %v5594_v33 = vpack.c.bf16 %v1451_v22, %v1447_v45  ;;  %v5596_v40 = vpack.c.bf16 %v1453_v24, %v1449_v59  ;;  %v1455_v14 = vld [vmem:[#allocation13 + $0x748] sm:$0xff]  ;;  %v1457_v56 = vld [vmem:[#allocation13 + $0x758] sm:$0xff]  ;;  %6488 = vst [vmem:[#allocation124_spill] sm:$0xff] %v5602_v41  ;;  %v1456_v22 = vld [vmem:[#allocation13 + $0x750] sm:$0xff] }
 0x1cc   :  { %v1460_v24 = vld [vmem:[#allocation13 + $0x770] sm:$0xff]  ;;  %v5624_v54 = vpack.c.bf16 %v1466_v26, %v1462_v44 }
 0x1cd   :  { %6485 = vst [vmem:[#allocation121_spill] sm:$0xff] %v5594_v33  ;;  %6486 = vst [vmem:[#allocation122_spill] sm:$0xff] %v5596_v40  ;;  %v5614_v50 = vpack.c.bf16 %v1460_v24, %v1456_v22  ;;  %v1470_v22 = vld [vmem:[#allocation13 + $0x7c0] sm:$0xff]  ;;  %v1476_v24 = vld [vmem:[#allocation13 + $0x7f0] sm:$0xff] }
 0x1ce   :  { %3567 = vmatpush1.bf16.msra.mxu0 %v5576_v60  ;;  %3695 = vmatpush1.bf16.msra.mxu1 %v5578_v52  ;;  %v1459_v60 = vld [vmem:[#allocation13 + $0x768] sm:$0xff]  ;;  %v1461_v52 = vld [vmem:[#allocation13 + $0x778] sm:$0xff]  ;;  %6495 = vst [vmem:[#allocation131_spill] sm:$0xff] %v5624_v54 }
 0x1cf   :  { %3569 = vmatprep.subr.bf16.mxu0 %v5582_v16  ;;  %3697 = vmatprep.subr.bf16.mxu1 %v5584_v7  ;;  %v5606_v59 = vpack.c.bf16 %v1459_v60, %v1455_v14  ;;  %v5608_v45 = vpack.c.bf16 %v1461_v52, %v1457_v56  ;;  %v1463_v7 = vld [vmem:[#allocation13 + $0x788] sm:$0xff]  ;;  %v1465_v16 = vld [vmem:[#allocation13 + $0x798] sm:$0xff]  ;;  %6492 = vst [vmem:[#allocation128_spill] sm:$0xff] %v5614_v50  ;;  %v1464_v60 = vld [vmem:[#allocation13 + $0x790] sm:$0xff] }
 0x1d0   :  { %v1468_v52 = vld [vmem:[#allocation13 + $0x7b0] sm:$0xff] }
 0x1d1   :  { %6489 = vst [vmem:[#allocation125_spill] sm:$0xff] %v5606_v59  ;;  %6490 = vst [vmem:[#allocation126_spill] sm:$0xff] %v5608_v45  ;;  %v5626_v19 = vpack.c.bf16 %v1468_v52, %v1464_v60  ;;  %v6504_v60 = vld [vmem:[#allocation31_spill] sm:$0xff]  ;;  %v6505_v52 = vld [vmem:[#allocation33_spill] sm:$0xff] }
 0x1d2   :  { %3571 = vmatpush1.bf16.msra.mxu0 %v5588_v6  ;;  %3699 = vmatpush1.bf16.msra.mxu1 %v5590_v3  ;;  %v1467_v6 = vld [vmem:[#allocation13 + $0x7a8] sm:$0xff]  ;;  %v1469_v3 = vld [vmem:[#allocation13 + $0x7b8] sm:$0xff] }
 0x1d3   :  { %3573 = vmatprep.subr.bf16.mxu0 %v5594_v33  ;;  %3701 = vmatprep.subr.bf16.mxu1 %v5596_v40  ;;  %v5618_v56 = vpack.c.bf16 %v1467_v6, %v1463_v7  ;;  %v5620_v14 = vpack.c.bf16 %v1469_v3, %v1465_v16  ;;  %v1471_v40 = vld [vmem:[#allocation13 + $0x7c8] sm:$0xff]  ;;  %v1473_v33 = vld [vmem:[#allocation13 + $0x7d8] sm:$0xff]  ;;  %6496 = vst [vmem:[#allocation132_spill] sm:$0xff] %v5626_v19  ;;  %v1474_v6 = vld [vmem:[#allocation13 + $0x7e0] sm:$0xff] }
 0x1d4   :  { %v1472_v3 = vld [vmem:[#allocation13 + $0x7d0] sm:$0xff]  ;;  %v5636_v44 = vpack.c.bf16 %v1474_v6, %v1470_v22  ;;  %v6506_v22 = vld [vmem:[#allocation32_spill] sm:$0xff] }
 0x1d5   :  { %6493 = vst [vmem:[#allocation129_spill] sm:$0xff] %v5618_v56  ;;  %6494 = vst [vmem:[#allocation130_spill] sm:$0xff] %v5620_v14  ;;  %v5638_v26 = vpack.c.bf16 %v1476_v24, %v1472_v3  ;;  %v6507_v6 = vld [vmem:[#allocation34_spill] sm:$0xff]  ;;  %v6508_v3 = vld [vmem:[#allocation35_spill] sm:$0xff] }
 0x1d6   :  { %3575 = vmatpush1.bf16.msra.mxu0 %v5600_v63  ;;  %3703 = vmatpush1.bf16.msra.mxu1 %v5602_v41  ;;  %v1475_v63 = vld [vmem:[#allocation13 + $0x7e8] sm:$0xff]  ;;  %v1477_v41 = vld [vmem:[#allocation13 + $0x7f8] sm:$0xff]  ;;  %6499 = vst [vmem:[#allocation135_spill] sm:$0xff] %v5636_v44 }
 0x1d7   :  { %3577 = vmatprep.subr.bf16.mxu0 %v5606_v59  ;;  %3705 = vmatprep.subr.bf16.mxu1 %v5608_v45  ;;  %v5630_v16 = vpack.c.bf16 %v1475_v63, %v1471_v40  ;;  %v5632_v7 = vpack.c.bf16 %v1477_v41, %v1473_v33  ;;  %6500 = vst [vmem:[#allocation136_spill] sm:$0xff] %v5638_v26  ;;  %v1504_v40 = vmul.f32 0.2, %v5508_v31  ;;  %v6502_v63 = vld [vmem:[#allocation29_spill] sm:$0xff]  ;;  %v6503_v41 = vld [vmem:[#allocation30_spill] sm:$0xff] }
 0x1d8   :  { %v6509_v24 = vld [vmem:[#allocation37_spill] sm:$0xff] }
 0x1d9   :  { %6497 = vst [vmem:[#allocation133_spill] sm:$0xff] %v5630_v16  ;;  %6498 = vst [vmem:[#allocation134_spill] sm:$0xff] %v5632_v7  ;;  %v5649_v33 = vsel %vm1500_vm5, %v5508_v31, %v1504_v40  ;;  %v6501_v31 = vld [vmem:[#allocation28_spill] sm:$0xff] }
 0x1da   :  { %3579 = vmatpush1.bf16.msra.mxu0 %v5612_v27  ;;  %3707 = vmatpush1.bf16.msra.mxu1 %v5614_v50  ;;  %v6510_v40 = vld [vmem:[#allocation36_spill] sm:$0xff] }
 0x1db   :  { %3581 = vmatprep.subr.bf16.mxu0 %v5618_v56  ;;  %3709 = vmatprep.subr.bf16.mxu1 %v5620_v14 }
 0x1de   :  { %3583 = vmatpush1.bf16.msra.mxu0 %v5624_v54  ;;  %3711 = vmatpush1.bf16.msra.mxu1 %v5626_v19 }
 0x1df   :  { %3585 = vmatprep.subr.bf16.mxu0 %v5630_v16  ;;  %3713 = vmatprep.subr.bf16.mxu1 %v5632_v7 }
 0x1e2   :  { %3587 = vmatpush1.bf16.msra.mxu0 %v5636_v44  ;;  %3715 = vmatpush1.bf16.msra.mxu1 %v5638_v26 }
 0x1e3   :  { %3717 = vmatprep.subr.bf16.mxu0 %v5182_v30  ;;  %3845 = vmatprep.subr.bf16.mxu1 %v5193_v61 }
 0x1e5   :  { %1646 = vmatmul.mubr.f32.vlgmr.msra.gmra.mrb[12].mxu0 %v5649_v33  ;;  %1788 = vmatmul.mubr.f32.vlgmr.msra.gmra.mrb[12].mxu1 %v5649_v33 }
 0x1e6   :  { %3719 = vmatpush1.bf16.msra.mxu0 %v5195_v2  ;;  %3847 = vmatpush1.bf16.msra.mxu1 %v5197_v4 }
 0x1e7   :  { %3721 = vmatprep.subr.bf16.mxu0 %v5201_v0  ;;  %3849 = vmatprep.subr.bf16.mxu1 %v5205_v11 }
 0x1ea   :  { %3723 = vmatpush1.bf16.msra.mxu0 %v5207_v12  ;;  %3851 = vmatpush1.bf16.msra.mxu1 %v5211_v17 }
 0x1eb   :  { %3725 = vmatprep.subr.bf16.mxu0 %v5215_v15  ;;  %3853 = vmatprep.subr.bf16.mxu1 %v5217_v21 }
 0x1ee   :  { %3727 = vmatpush1.bf16.msra.mxu0 %v5219_v25  ;;  %3855 = vmatpush1.bf16.msra.mxu1 %v5225_v35 }
 0x1ef   :  { %3729 = vmatprep.subr.bf16.mxu0 %v5222_v29  ;;  %3857 = vmatprep.subr.bf16.mxu1 %v5229_v38 }
 0x1f2   :  { %3731 = vmatpush1.bf16.msra.mxu0 %v5231_v39  ;;  %3859 = vmatpush1.bf16.msra.mxu1 %v5237_v46 }
 0x1f3   :  { %3733 = vmatprep.subr.bf16.mxu0 %v5234_v43  ;;  %3861 = vmatprep.subr.bf16.mxu1 %v5241_v47 }
 0x1f6   :  { %3735 = vmatpush1.bf16.msra.mxu0 %v5244_v51  ;;  %3863 = vmatpush1.bf16.msra.mxu1 %v5247_v53 }
 0x1f7   :  { %3737 = vmatprep.subr.bf16.mxu0 %v5251_v57  ;;  %3865 = vmatprep.subr.bf16.mxu1 %v5253_v32 }
 0x1fa   :  { %3739 = vmatpush1.bf16.msra.mxu0 %v5255_v62  ;;  %3867 = vmatpush1.bf16.msra.mxu1 %v5259_v5 }
 0x1fb   :  { %3741 = vmatprep.subr.bf16.mxu0 %v5263_v9  ;;  %3869 = vmatprep.subr.bf16.mxu1 %v5265_v10 }
 0x1fe   :  { %3743 = vmatpush1.bf16.msra.mxu0 %v5267_v18  ;;  %3871 = vmatpush1.bf16.msra.mxu1 %v5273_v28 }
 0x1ff   :  { %3745 = vmatprep.subr.bf16.mxu0 %v5270_v23  ;;  %3873 = vmatprep.subr.bf16.mxu1 %v5277_v34 }
 0x202   :  { %3747 = vmatpush1.bf16.msra.mxu0 %v5279_v36  ;;  %3875 = vmatpush1.bf16.msra.mxu1 %v5285_v48 }
 0x203   :  { %3749 = vmatprep.subr.bf16.mxu0 %v5282_v42  ;;  %3877 = vmatprep.subr.bf16.mxu1 %v5289_v49 }
 0x206   :  { %3751 = vmatpush1.bf16.msra.mxu0 %v5292_v55  ;;  %3879 = vmatpush1.bf16.msra.mxu1 %v5295_v58  ;;  %v2125_v58 = vld [vmem:[#allocation11 + $0xb8] sm:$0xff] }
 0x207   :  { %3753 = vmatprep.subr.bf16.mxu0 %v5299_v1  ;;  %3881 = vmatprep.subr.bf16.mxu1 %v5301_v8  ;;  %v6528_v8 = vld [vmem:[#allocation74_spill] sm:$0xff]  ;;  %v6537_v1 = vld [vmem:[#allocation81_spill] sm:$0xff] }
 0x20a   :  { %3755 = vmatpush1.bf16.msra.mxu0 %v5303_v13  ;;  %3883 = vmatpush1.bf16.msra.mxu1 %v6501_v31  ;;  %v6511_v13 = vld [vmem:[#allocation38_spill] sm:$0xff]  ;;  %v6512_v31 = vld [vmem:[#allocation39_spill] sm:$0xff] }
 0x20b   :  { %3757 = vmatprep.subr.bf16.mxu0 %v6502_v63  ;;  %3885 = vmatprep.subr.bf16.mxu1 %v6503_v41  ;;  %v6513_v63 = vld [vmem:[#allocation40_spill] sm:$0xff]  ;;  %v6514_v41 = vld [vmem:[#allocation41_spill] sm:$0xff] }
 0x20e   :  { %3759 = vmatpush1.bf16.msra.mxu0 %v6504_v60  ;;  %3887 = vmatpush1.bf16.msra.mxu1 %v6505_v52  ;;  %v6515_v60 = vld [vmem:[#allocation42_spill] sm:$0xff]  ;;  %v6516_v52 = vld [vmem:[#allocation43_spill] sm:$0xff] }
 0x20f   :  { %3761 = vmatprep.subr.bf16.mxu0 %v6506_v22  ;;  %3889 = vmatprep.subr.bf16.mxu1 %v6507_v6  ;;  %v6517_v22 = vld [vmem:[#allocation44_spill] sm:$0xff]  ;;  %v6518_v6 = vld [vmem:[#allocation45_spill] sm:$0xff] }
 0x212   :  { %3763 = vmatpush1.bf16.msra.mxu0 %v6508_v3  ;;  %3891 = vmatpush1.bf16.msra.mxu1 %v6509_v24  ;;  %v6519_v3 = vld [vmem:[#allocation46_spill] sm:$0xff]  ;;  %v6520_v24 = vld [vmem:[#allocation47_spill] sm:$0xff] }
 0x213   :  { %3765 = vmatprep.subr.bf16.mxu0 %v6510_v40  ;;  %3893 = vmatprep.subr.bf16.mxu1 %v6511_v13  ;;  %v6521_v40 = vld [vmem:[#allocation48_spill] sm:$0xff]  ;;  %v6522_v13 = vld [vmem:[#allocation49_spill] sm:$0xff] }
 0x216   :  { %3767 = vmatpush1.bf16.msra.mxu0 %v6512_v31  ;;  %3895 = vmatpush1.bf16.msra.mxu1 %v6513_v63  ;;  %v6523_v31 = vld [vmem:[#allocation50_spill] sm:$0xff]  ;;  %v6524_v63 = vld [vmem:[#allocation51_spill] sm:$0xff] }
 0x217   :  { %3769 = vmatprep.subr.bf16.mxu0 %v6514_v41  ;;  %3897 = vmatprep.subr.bf16.mxu1 %v6515_v60  ;;  %v6525_v41 = vld [vmem:[#allocation52_spill] sm:$0xff]  ;;  %v6526_v60 = vld [vmem:[#allocation53_spill] sm:$0xff] }
 0x21a   :  { %3771 = vmatpush1.bf16.msra.mxu0 %v6516_v52  ;;  %3899 = vmatpush1.bf16.msra.mxu1 %v6517_v22  ;;  %v6527_v52 = vld [vmem:[#allocation54_spill] sm:$0xff] }
 0x21b   :  { %3773 = vmatprep.subr.bf16.mxu0 %v6518_v6  ;;  %3901 = vmatprep.subr.bf16.mxu1 %v6519_v3 }
 0x21e   :  { %3775 = vmatpush1.bf16.msra.mxu0 %v6520_v24  ;;  %3903 = vmatpush1.bf16.msra.mxu1 %v6521_v40 }
 0x21f   :  { %3777 = vmatprep.subr.bf16.mxu0 %v6522_v13  ;;  %3905 = vmatprep.subr.bf16.mxu1 %v6523_v31 }
 0x222   :  { %3779 = vmatpush1.bf16.msra.mxu0 %v6524_v63  ;;  %3907 = vmatpush1.bf16.msra.mxu1 %v6525_v41  ;;  %v6536_v63 = vld [vmem:[#allocation80_spill] sm:$0xff] }
 0x223   :  { %3781 = vmatprep.subr.bf16.mxu0 %v6526_v60  ;;  %3909 = vmatprep.subr.bf16.mxu1 %v6527_v52  ;;  %v6534_v60 = vld [vmem:[#allocation78_spill] sm:$0xff] }
 0x2b8   :  { %v1647_v22 = vpop.f32.mrb[12].mxu0  ;;  %v5717_v6 = vpop.f32.mrb[12].mxu1 }
 0x2b9   :  { %v5720_v3 = vsub.f32 %v5449_v20, %v1647_v22  ;;  %v1649_v24 = vpop.f32.mrb[13].mxu0  ;;  %v1791_v40 = vpop.f32.mrb[13].mxu1  ;;  %v6529_v22 = vld [vmem:[#allocation72_spill] sm:$0xff] }
 0x2ba   :  { %v5723_v13 = vsub.f32 %v6528_v8, %v1649_v24  ;;  %v5726_v31 = vsub.f32 %v5522_v37, %v1791_v40  ;;  %v6530_v8 = vld [vmem:[#allocation73_spill] sm:$0xff]  ;;  %v6531_v37 = vld [vmem:[#allocation75_spill] sm:$0xff]  ;;  %v6532_v24 = vld [vmem:[#allocation76_spill] sm:$0xff] }
 0x2bb   :  { %v1798_v52 = vmul.f32 %v5720_v3, %v5720_v3  ;;  %v6533_v40 = vld [vmem:[#allocation77_spill] sm:$0xff] }
 0x2bc   :  { %v1799_v41 = vmul.f32 %v5723_v13, %v5723_v13  ;;  %v1801_v20 = vmul.f32 %v5726_v31, %v5726_v31 }
 0x2be   :  { %1866 = vmatprep.mubr.f32.mxu0 %v1799_v41  ;;  %2008 = vmatprep.mubr.f32.mxu1 %v1799_v41  ;;  %v6535_v41 = vld [vmem:[#allocation79_spill] sm:$0xff] }
 0x2bf   :  { %1867 = vmatmul.mubr.f32.vlgmr.msra.gmra.mrb[14].mxu0 %v1798_v52  ;;  %2009 = vmatmul.mubr.f32.vlgmr.msra.gmra.mrb[14].mxu1 %v1798_v52  ;;  %v6538_v52 = vld [vmem:[#allocation82_spill] sm:$0xff] }
 0x2c0   :  { %3783 = vmatpush1.bf16.msra.mxu0 %v6529_v22  ;;  %3911 = vmatpush1.bf16.msra.mxu1 %v6530_v8  ;;  %v6539_v22 = vld [vmem:[#allocation84_spill] sm:$0xff]  ;;  %v6540_v8 = vld [vmem:[#allocation85_spill] sm:$0xff] }
 0x2c1   :  { %1937 = vmatprep.mubr.f32.mxu0 %v1801_v20  ;;  %2079 = vmatprep.mubr.f32.mxu1 %v1801_v20  ;;  %v6541_v20 = vld [vmem:[#allocation87_spill] sm:$0xff] }
 0x2c2   :  { %3785 = vmatprep.subr.bf16.mxu0 %v6531_v37  ;;  %3913 = vmatprep.subr.bf16.mxu1 %v6532_v24  ;;  %v6542_v37 = vld [vmem:[#allocation88_spill] sm:$0xff]  ;;  %v6543_v24 = vld [vmem:[#allocation89_spill] sm:$0xff] }
 0x2c4   :  { %3787 = vmatpush1.bf16.msra.mxu0 %v6533_v40  ;;  %3915 = vmatpush1.bf16.msra.mxu1 %v6534_v60  ;;  %v6544_v40 = vld [vmem:[#allocation90_spill] sm:$0xff]  ;;  %v6545_v60 = vld [vmem:[#allocation91_spill] sm:$0xff] }
 0x2c5   :  { %3789 = vmatprep.subr.bf16.mxu0 %v6535_v41  ;;  %3917 = vmatprep.subr.bf16.mxu1 %v6536_v63  ;;  %v6546_v41 = vld [vmem:[#allocation92_spill] sm:$0xff]  ;;  %v6547_v63 = vld [vmem:[#allocation93_spill] sm:$0xff] }
 0x2c8   :  { %3791 = vmatpush1.bf16.msra.mxu0 %v6537_v1  ;;  %3919 = vmatpush1.bf16.msra.mxu1 %v6538_v52  ;;  %v6548_v1 = vld [vmem:[#allocation94_spill] sm:$0xff]  ;;  %v6549_v52 = vld [vmem:[#allocation95_spill] sm:$0xff] }
 0x2c9   :  { %3793 = vmatprep.subr.bf16.mxu0 %v6539_v22  ;;  %3921 = vmatprep.subr.bf16.mxu1 %v6540_v8  ;;  %v6550_v22 = vld [vmem:[#allocation96_spill] sm:$0xff]  ;;  %v6551_v8 = vld [vmem:[#allocation97_spill] sm:$0xff] }
 0x2cc   :  { %3795 = vmatpush1.bf16.msra.mxu0 %v6541_v20  ;;  %3923 = vmatpush1.bf16.msra.mxu1 %v6542_v37  ;;  %v6552_v20 = vld [vmem:[#allocation98_spill] sm:$0xff]  ;;  %v6553_v37 = vld [vmem:[#allocation99_spill] sm:$0xff] }
 0x2cd   :  { %3797 = vmatprep.subr.bf16.mxu0 %v6543_v24  ;;  %3925 = vmatprep.subr.bf16.mxu1 %v6544_v40  ;;  %v6554_v24 = vld [vmem:[#allocation100_spill] sm:$0xff]  ;;  %v6555_v40 = vld [vmem:[#allocation101_spill] sm:$0xff] }
 0x2d0   :  { %3799 = vmatpush1.bf16.msra.mxu0 %v6545_v60  ;;  %3927 = vmatpush1.bf16.msra.mxu1 %v6546_v41  ;;  %v6556_v60 = vld [vmem:[#allocation102_spill] sm:$0xff]  ;;  %v6557_v41 = vld [vmem:[#allocation103_spill] sm:$0xff] }
 0x2d1   :  { %3801 = vmatprep.subr.bf16.mxu0 %v6547_v63  ;;  %3929 = vmatprep.subr.bf16.mxu1 %v6548_v1  ;;  %v6558_v63 = vld [vmem:[#allocation104_spill] sm:$0xff]  ;;  %v6559_v1 = vld [vmem:[#allocation105_spill] sm:$0xff] }
 0x2d4   :  { %3803 = vmatpush1.bf16.msra.mxu0 %v6549_v52  ;;  %3931 = vmatpush1.bf16.msra.mxu1 %v6550_v22  ;;  %v6560_v52 = vld [vmem:[#allocation106_spill] sm:$0xff]  ;;  %v6561_v22 = vld [vmem:[#allocation107_spill] sm:$0xff] }
 0x2d5   :  { %3805 = vmatprep.subr.bf16.mxu0 %v6551_v8  ;;  %3933 = vmatprep.subr.bf16.mxu1 %v6552_v20  ;;  %v6562_v8 = vld [vmem:[#allocation108_spill] sm:$0xff]  ;;  %v6563_v20 = vld [vmem:[#allocation109_spill] sm:$0xff] }
 0x2d8   :  { %3807 = vmatpush1.bf16.msra.mxu0 %v6553_v37  ;;  %3935 = vmatpush1.bf16.msra.mxu1 %v6554_v24  ;;  %v6564_v37 = vld [vmem:[#allocation110_spill] sm:$0xff]  ;;  %v6565_v24 = vld [vmem:[#allocation111_spill] sm:$0xff] }
 0x2d9   :  { %3809 = vmatprep.subr.bf16.mxu0 %v6555_v40  ;;  %3937 = vmatprep.subr.bf16.mxu1 %v6556_v60  ;;  %v6566_v40 = vld [vmem:[#allocation112_spill] sm:$0xff]  ;;  %v6567_v60 = vld [vmem:[#allocation113_spill] sm:$0xff] }
 0x2dc   :  { %3811 = vmatpush1.bf16.msra.mxu0 %v6557_v41  ;;  %3939 = vmatpush1.bf16.msra.mxu1 %v6558_v63  ;;  %v6568_v41 = vld [vmem:[#allocation114_spill] sm:$0xff]  ;;  %v6569_v63 = vld [vmem:[#allocation115_spill] sm:$0xff] }
 0x2dd   :  { %3813 = vmatprep.subr.bf16.mxu0 %v6559_v1  ;;  %3941 = vmatprep.subr.bf16.mxu1 %v6560_v52  ;;  %v6570_v1 = vld [vmem:[#allocation116_spill] sm:$0xff]  ;;  %v6571_v52 = vld [vmem:[#allocation117_spill] sm:$0xff] }
 0x2e0   :  { %3815 = vmatpush1.bf16.msra.mxu0 %v6561_v22  ;;  %3943 = vmatpush1.bf16.msra.mxu1 %v6562_v8  ;;  %v6572_v22 = vld [vmem:[#allocation118_spill] sm:$0xff]  ;;  %v6573_v8 = vld [vmem:[#allocation119_spill] sm:$0xff] }
 0x2e1   :  { %3817 = vmatprep.subr.bf16.mxu0 %v6563_v20  ;;  %3945 = vmatprep.subr.bf16.mxu1 %v6564_v37  ;;  %v6574_v20 = vld [vmem:[#allocation120_spill] sm:$0xff]  ;;  %v6575_v37 = vld [vmem:[#allocation121_spill] sm:$0xff] }
 0x2e4   :  { %3819 = vmatpush1.bf16.msra.mxu0 %v6565_v24  ;;  %3947 = vmatpush1.bf16.msra.mxu1 %v6566_v40  ;;  %v6576_v24 = vld [vmem:[#allocation122_spill] sm:$0xff]  ;;  %v6577_v40 = vld [vmem:[#allocation123_spill] sm:$0xff] }
 0x2e5   :  { %3821 = vmatprep.subr.bf16.mxu0 %v6567_v60  ;;  %3949 = vmatprep.subr.bf16.mxu1 %v6568_v41  ;;  %v6578_v60 = vld [vmem:[#allocation124_spill] sm:$0xff]  ;;  %v2121_v41 = vld [vmem:[#allocation11 + $0x98] sm:$0xff] }
 0x2e8   :  { %3823 = vmatpush1.bf16.msra.mxu0 %v6569_v63  ;;  %3951 = vmatpush1.bf16.msra.mxu1 %v6570_v1  ;;  %v2123_v63 = vld [vmem:[#allocation11 + $0xa8] sm:$0xff] }
 0x2e9   :  { %3825 = vmatprep.subr.bf16.mxu0 %v6571_v52  ;;  %3953 = vmatprep.subr.bf16.mxu1 %v6572_v22  ;;  %v2115_v22 = vld [vmem:[#allocation11 + $0x68] sm:$0xff]  ;;  %v2113_v52 = vld [vmem:[#allocation11 + $0x58] sm:$0xff] }
 0x2ec   :  { %3827 = vmatpush1.bf16.msra.mxu0 %v6573_v8  ;;  %3955 = vmatpush1.bf16.msra.mxu1 %v6574_v20  ;;  %v2103_v20 = vld [vmem:[#allocation11 + $0x8] sm:$0xff]  ;;  %v2105_v8 = vld [vmem:[#allocation11 + $0x18] sm:$0xff] }
 0x2ed   :  { %3829 = vmatprep.subr.bf16.mxu0 %v6575_v37  ;;  %3957 = vmatprep.subr.bf16.mxu1 %v6576_v24  ;;  %v2107_v37 = vld [vmem:[#allocation11 + $0x28] sm:$0xff]  ;;  %v2109_v24 = vld [vmem:[#allocation11 + $0x38] sm:$0xff] }
 0x2f0   :  { %3831 = vmatpush1.bf16.msra.mxu0 %v6577_v40  ;;  %3959 = vmatpush1.bf16.msra.mxu1 %v6578_v60  ;;  %v2102_v60 = vld [vmem:[#allocation11] sm:$0xff]  ;;  %v2111_v40 = vld [vmem:[#allocation11 + $0x48] sm:$0xff] }
 0x2f1   :  { %3833 = vmatprep.subr.bf16.mxu0 %v5606_v59  ;;  %3961 = vmatprep.subr.bf16.mxu1 %v5608_v45  ;;  %v2106_v59 = vld [vmem:[#allocation11 + $0x20] sm:$0xff]  ;;  %v5794_v45 = vsub.f32 %v5649_v33, %v5717_v6 }
 0x2f2   :  { %v2110_v33 = vld [vmem:[#allocation11 + $0x40] sm:$0xff] }
 0x2f3   :  { %v2114_v6 = vld [vmem:[#allocation11 + $0x60] sm:$0xff] }
 0x2f4   :  { %3835 = vmatpush1.bf16.msra.mxu0 %v5612_v27  ;;  %3963 = vmatpush1.bf16.msra.mxu1 %v5614_v50  ;;  %v2104_v50 = vld [vmem:[#allocation11 + $0x10] sm:$0xff] }
 0x2f5   :  { %3837 = vmatprep.subr.bf16.mxu0 %v5618_v56  ;;  %3965 = vmatprep.subr.bf16.mxu1 %v5620_v14  ;;  %v3972_v56 = vpack.c.bf16 %v2107_v37, %v2103_v20  ;;  %v4100_v14 = vpack.c.bf16 %v2109_v24, %v2105_v8  ;;  %v2108_v27 = vld [vmem:[#allocation11 + $0x30] sm:$0xff]  ;;  %v3976_v8 = vpack.c.bf16 %v2115_v22, %v2111_v40  ;;  %v2127_v40 = vld [vmem:[#allocation11 + $0xc8] sm:$0xff] }
 0x2f6   :  { %v4102_v1 = vpack.c.bf16 %v2108_v27, %v2104_v50  ;;  %v2112_v24 = vld [vmem:[#allocation11 + $0x50] sm:$0xff]  ;;  %v2118_v50 = vld [vmem:[#allocation11 + $0x80] sm:$0xff] }
 0x2f7   :  { %v2116_v20 = vld [vmem:[#allocation11 + $0x70] sm:$0xff] }
 0x2f8   :  { %3839 = vmatpush1.bf16.msra.mxu0 %v5624_v54  ;;  %3967 = vmatpush1.bf16.msra.mxu1 %v5626_v19  ;;  %v2117_v54 = vld [vmem:[#allocation11 + $0x78] sm:$0xff]  ;;  %v3974_v19 = vpack.c.bf16 %v2106_v59, %v2102_v60  ;;  %v3978_v59 = vpack.c.bf16 %v2114_v6, %v2110_v33  ;;  %v4106_v27 = vpack.c.bf16 %v2116_v20, %v2112_v24  ;;  %v2122_v60 = vld [vmem:[#allocation11 + $0xa0] sm:$0xff]  ;;  %v2120_v22 = vld [vmem:[#allocation11 + $0x90] sm:$0xff] }
 0x2f9   :  { %3841 = vmatprep.subr.bf16.mxu0 %v5630_v16  ;;  %3969 = vmatprep.subr.bf16.mxu1 %v5632_v7  ;;  %v1800_v16 = vmul.f32 %v5794_v45, %v5794_v45  ;;  %v4104_v37 = vpack.c.bf16 %v2117_v54, %v2113_v52  ;;  %v2119_v7 = vld [vmem:[#allocation11 + $0x88] sm:$0xff]  ;;  %v2124_v54 = vld [vmem:[#allocation11 + $0xb0] sm:$0xff]  ;;  %v3982_v55 = vpack.c.bf16 %v2122_v60, %v2118_v50 }
 0x2fa   :  { %v2131_v52 = vld [vmem:[#allocation11 + $0xe8] sm:$0xff] }
 0x2fb   :  { %v3984_v33 = vpack.c.bf16 %v2131_v52, %v2127_v40 }
 0x2fc   :  { %3843 = vmatpush1.bf16.msra.mxu0 %v5636_v44  ;;  %3971 = vmatpush1.bf16.msra.mxu1 %v5638_v26  ;;  %v2129_v26 = vld [vmem:[#allocation11 + $0xd8] sm:$0xff] }
 0x2fd   :  { %3973 = vmatprep.subr.bf16.mxu0 %v3972_v56  ;;  %4101 = vmatprep.subr.bf16.mxu1 %v4100_v14  ;;  %v3980_v56 = vpack.c.bf16 %v2123_v63, %v2119_v7  ;;  %v4108_v14 = vpack.c.bf16 %v2125_v58, %v2121_v41  ;;  %v2133_v44 = vld [vmem:[#allocation11 + $0xf8] sm:$0xff]  ;;  %v2135_v7 = vld [vmem:[#allocation11 + $0x108] sm:$0xff] }
 0x2fe   :  { %v4112_v6 = vpack.c.bf16 %v2133_v44, %v2129_v26  ;;  %v2139_v58 = vld [vmem:[#allocation11 + $0x128] sm:$0xff]  ;;  %v2137_v63 = vld [vmem:[#allocation11 + $0x118] sm:$0xff] }
 0x2ff   :  { %1938 = vmatmul.mubr.f32.vlgmr.msra.gmra.mrb[14].mxu0 %v1800_v16  ;;  %2080 = vmatmul.mubr.f32.vlgmr.msra.gmra.mrb[14].mxu1 %v1800_v16  ;;  %v4110_v16 = vpack.c.bf16 %v2124_v54, %v2120_v22  ;;  %v2141_v41 = vld [vmem:[#allocation11 + $0x138] sm:$0xff]  ;;  %v3988_v50 = vpack.c.bf16 %v2139_v58, %v2135_v7  ;;  %v2143_v22 = vld [vmem:[#allocation11 + $0x148] sm:$0xff] }
 0x300   :  { %3975 = vmatpush1.bf16.msra.mxu0 %v3974_v19  ;;  %4103 = vmatpush1.bf16.msra.mxu1 %v4102_v1  ;;  %v2126_v19 = vld [vmem:[#allocation11 + $0xc0] sm:$0xff]  ;;  %v4116_v60 = vpack.c.bf16 %v2141_v41, %v2137_v63  ;;  %v2147_v44 = vld [vmem:[#allocation11 + $0x168] sm:$0xff]  ;;  %v2145_v26 = vld [vmem:[#allocation11 + $0x158] sm:$0xff] }
 0x301   :  { %3977 = vmatprep.subr.bf16.mxu0 %v3976_v8  ;;  %4105 = vmatprep.subr.bf16.mxu1 %v4104_v37  ;;  %v2130_v1 = vld [vmem:[#allocation11 + $0xe0] sm:$0xff]  ;;  %v2128_v8 = vld [vmem:[#allocation11 + $0xd0] sm:$0xff]  ;;  %v2149_v54 = vld [vmem:[#allocation11 + $0x178] sm:$0xff] }
 0x302   :  { %v2132_v37 = vld [vmem:[#allocation11 + $0xf0] sm:$0xff]  ;;  %v3986_v24 = vpack.c.bf16 %v2130_v1, %v2126_v19  ;;  %v3992_v19 = vpack.c.bf16 %v2147_v44, %v2143_v22  ;;  %v4120_v1 = vpack.c.bf16 %v2149_v54, %v2145_v26  ;;  %v2153_v7 = vld [vmem:[#allocation11 + $0x198] sm:$0xff] }
 0x303   :  { %v4114_v20 = vpack.c.bf16 %v2132_v37, %v2128_v8  ;;  %v2151_v8 = vld [vmem:[#allocation11 + $0x188] sm:$0xff]  ;;  %v2157_v58 = vld [vmem:[#allocation11 + $0x1b8] sm:$0xff] }
 0x304   :  { %3979 = vmatpush1.bf16.msra.mxu0 %v3978_v59  ;;  %4107 = vmatpush1.bf16.msra.mxu1 %v4106_v27  ;;  %v2134_v59 = vld [vmem:[#allocation11 + $0x100] sm:$0xff]  ;;  %v2155_v37 = vld [vmem:[#allocation11 + $0x1a8] sm:$0xff]  ;;  %v2161_v22 = vld [vmem:[#allocation11 + $0x1d8] sm:$0xff] }
 0x305   :  { %3981 = vmatprep.subr.bf16.mxu0 %v3980_v56  ;;  %4109 = vmatprep.subr.bf16.mxu1 %v4108_v14  ;;  %v2138_v27 = vld [vmem:[#allocation11 + $0x120] sm:$0xff]  ;;  %v2136_v56 = vld [vmem:[#allocation11 + $0x110] sm:$0xff]  ;;  %v2165_v44 = vld [vmem:[#allocation11 + $0x1f8] sm:$0xff] }
 0x306   :  { %v2140_v14 = vld [vmem:[#allocation11 + $0x130] sm:$0xff]  ;;  %v3990_v40 = vpack.c.bf16 %v2138_v27, %v2134_v59  ;;  %v3996_v59 = vpack.c.bf16 %v2155_v37, %v2151_v8  ;;  %v4124_v27 = vpack.c.bf16 %v2157_v58, %v2153_v7  ;;  %v2169_v8 = vld [vmem:[#allocation11 + $0x218] sm:$0xff] }
 0x307   :  { %v4118_v52 = vpack.c.bf16 %v2140_v14, %v2136_v56  ;;  %v2159_v56 = vld [vmem:[#allocation11 + $0x1c8] sm:$0xff]  ;;  %v2173_v37 = vld [vmem:[#allocation11 + $0x238] sm:$0xff] }
 0x308   :  { %3983 = vmatpush1.bf16.msra.mxu0 %v3982_v55  ;;  %4111 = vmatpush1.bf16.msra.mxu1 %v4110_v16  ;;  %v2142_v55 = vld [vmem:[#allocation11 + $0x140] sm:$0xff]  ;;  %v2163_v14 = vld [vmem:[#allocation11 + $0x1e8] sm:$0xff] }
 0x309   :  { %3985 = vmatprep.subr.bf16.mxu0 %v3984_v33  ;;  %4113 = vmatprep.subr.bf16.mxu1 %v4112_v6  ;;  %v2146_v16 = vld [vmem:[#allocation11 + $0x160] sm:$0xff]  ;;  %v2144_v33 = vld [vmem:[#allocation11 + $0x150] sm:$0xff] }
 0x30a   :  { %v2148_v6 = vld [vmem:[#allocation11 + $0x170] sm:$0xff]  ;;  %v3994_v63 = vpack.c.bf16 %v2146_v16, %v2142_v55  ;;  %v4000_v55 = vpack.c.bf16 %v2163_v14, %v2159_v56  ;;  %v4128_v16 = vpack.c.bf16 %v2165_v44, %v2161_v22  ;;  %v2177_v56 = vld [vmem:[#allocation11 + $0x258] sm:$0xff] }
 0x30b   :  { %v4122_v41 = vpack.c.bf16 %v2148_v6, %v2144_v33  ;;  %v2167_v33 = vld [vmem:[#allocation11 + $0x208] sm:$0xff]  ;;  %v2181_v14 = vld [vmem:[#allocation11 + $0x278] sm:$0xff] }
 0x30c   :  { %3987 = vmatpush1.bf16.msra.mxu0 %v3986_v24  ;;  %4115 = vmatpush1.bf16.msra.mxu1 %v4114_v20  ;;  %v2150_v24 = vld [vmem:[#allocation11 + $0x180] sm:$0xff]  ;;  %v2171_v6 = vld [vmem:[#allocation11 + $0x228] sm:$0xff] }
 0x30d   :  { %3989 = vmatprep.subr.bf16.mxu0 %v3988_v50  ;;  %4117 = vmatprep.subr.bf16.mxu1 %v4116_v60  ;;  %v2154_v20 = vld [vmem:[#allocation11 + $0x1a0] sm:$0xff]  ;;  %v2152_v50 = vld [vmem:[#allocation11 + $0x190] sm:$0xff] }
 0x30e   :  { %v2156_v60 = vld [vmem:[#allocation11 + $0x1b0] sm:$0xff]  ;;  %v3998_v26 = vpack.c.bf16 %v2154_v20, %v2150_v24  ;;  %v4004_v24 = vpack.c.bf16 %v2171_v6, %v2167_v33  ;;  %v4132_v20 = vpack.c.bf16 %v2173_v37, %v2169_v8  ;;  %v2185_v33 = vld [vmem:[#allocation11 + $0x298] sm:$0xff] }
 0x30f   :  { %v4126_v54 = vpack.c.bf16 %v2156_v60, %v2152_v50  ;;  %v2175_v50 = vld [vmem:[#allocation11 + $0x248] sm:$0xff]  ;;  %v2189_v6 = vld [vmem:[#allocation11 + $0x2b8] sm:$0xff] }
 0x310   :  { %3991 = vmatpush1.bf16.msra.mxu0 %v3990_v40  ;;  %4119 = vmatpush1.bf16.msra.mxu1 %v4118_v52  ;;  %v2158_v40 = vld [vmem:[#allocation11 + $0x1c0] sm:$0xff]  ;;  %v2179_v60 = vld [vmem:[#allocation11 + $0x268] sm:$0xff] }
 0x311   :  { %3993 = vmatprep.subr.bf16.mxu0 %v3992_v19  ;;  %4121 = vmatprep.subr.bf16.mxu1 %v4120_v1  ;;  %v2162_v52 = vld [vmem:[#allocation11 + $0x1e0] sm:$0xff]  ;;  %v2160_v19 = vld [vmem:[#allocation11 + $0x1d0] sm:$0xff] }
 0x312   :  { %v2164_v1 = vld [vmem:[#allocation11 + $0x1f0] sm:$0xff]  ;;  %v4002_v7 = vpack.c.bf16 %v2162_v52, %v2158_v40  ;;  %v4008_v40 = vpack.c.bf16 %v2179_v60, %v2175_v50  ;;  %v4136_v52 = vpack.c.bf16 %v2181_v14, %v2177_v56  ;;  %v2191_v50 = vld [vmem:[#allocation11 + $0x2c8] sm:$0xff]  ;;  %v2193_v56 = vld [vmem:[#allocation11 + $0x2d8] sm:$0xff] }
 0x313   :  { %v4130_v58 = vpack.c.bf16 %v2164_v1, %v2160_v19  ;;  %v2183_v19 = vld [vmem:[#allocation11 + $0x288] sm:$0xff] }
 0x314   :  { %3995 = vmatpush1.bf16.msra.mxu0 %v3994_v63  ;;  %4123 = vmatpush1.bf16.msra.mxu1 %v4122_v41  ;;  %v2166_v63 = vld [vmem:[#allocation11 + $0x200] sm:$0xff]  ;;  %v2187_v1 = vld [vmem:[#allocation11 + $0x2a8] sm:$0xff] }
 0x315   :  { %3997 = vmatprep.subr.bf16.mxu0 %v3996_v59  ;;  %4125 = vmatprep.subr.bf16.mxu1 %v4124_v27  ;;  %v2170_v41 = vld [vmem:[#allocation11 + $0x220] sm:$0xff]  ;;  %v2168_v59 = vld [vmem:[#allocation11 + $0x210] sm:$0xff]  ;;  %v2195_v60 = vld [vmem:[#allocation11 + $0x2e8] sm:$0xff] }
 0x316   :  { %v2172_v27 = vld [vmem:[#allocation11 + $0x230] sm:$0xff]  ;;  %v4006_v22 = vpack.c.bf16 %v2170_v41, %v2166_v63  ;;  %v4140_v63 = vpack.c.bf16 %v2189_v6, %v2185_v33  ;;  %v2186_v41 = vld [vmem:[#allocation11 + $0x2a0] sm:$0xff]  ;;  %v4016_v14 = vpack.c.bf16 %v2195_v60, %v2191_v50  ;;  %v2201_v33 = vld [vmem:[#allocation11 + $0x318] sm:$0xff] }
 0x317   :  { %v4134_v44 = vpack.c.bf16 %v2172_v27, %v2168_v59  ;;  %v2209_v50 = vld [vmem:[#allocation11 + $0x358] sm:$0xff] }
 0x318   :  { %3999 = vmatpush1.bf16.msra.mxu0 %v3998_v26  ;;  %4127 = vmatpush1.bf16.msra.mxu1 %v4126_v54  ;;  %v2174_v26 = vld [vmem:[#allocation11 + $0x240] sm:$0xff]  ;;  %v2213_v60 = vld [vmem:[#allocation11 + $0x378] sm:$0xff] }
 0x319   :  { %4001 = vmatprep.subr.bf16.mxu0 %v4000_v55  ;;  %4129 = vmatprep.subr.bf16.mxu1 %v4128_v16  ;;  %v2178_v54 = vld [vmem:[#allocation11 + $0x260] sm:$0xff]  ;;  %v2176_v55 = vld [vmem:[#allocation11 + $0x250] sm:$0xff] }
 0x31a   :  { %v2180_v16 = vld [vmem:[#allocation11 + $0x270] sm:$0xff]  ;;  %v4010_v8 = vpack.c.bf16 %v2178_v54, %v2174_v26  ;;  %v2194_v26 = vld [vmem:[#allocation11 + $0x2e0] sm:$0xff] }
 0x31b   :  { %v4138_v37 = vpack.c.bf16 %v2180_v16, %v2176_v55  ;;  %v2196_v55 = vld [vmem:[#allocation11 + $0x2f0] sm:$0xff] }
 0x31c   :  { %4003 = vmatpush1.bf16.msra.mxu0 %v4002_v7  ;;  %4131 = vmatpush1.bf16.msra.mxu1 %v4130_v58  ;;  %v2182_v7 = vld [vmem:[#allocation11 + $0x280] sm:$0xff]  ;;  %v4012_v58 = vpack.c.bf16 %v2187_v1, %v2183_v19  ;;  %v2199_v19 = vld [vmem:[#allocation11 + $0x308] sm:$0xff] }
 0x31d   :  { %4005 = vmatprep.subr.bf16.mxu0 %v4004_v24  ;;  %4133 = vmatprep.subr.bf16.mxu1 %v4132_v20  ;;  %v2184_v24 = vld [vmem:[#allocation11 + $0x290] sm:$0xff]  ;;  %v4014_v59 = vpack.c.bf16 %v2186_v41, %v2182_v7  ;;  %v2203_v1 = vld [vmem:[#allocation11 + $0x328] sm:$0xff]  ;;  %v2202_v7 = vld [vmem:[#allocation11 + $0x320] sm:$0xff] }
 0x31e   :  { %v2188_v20 = vld [vmem:[#allocation11 + $0x2b0] sm:$0xff]  ;;  %v4020_v6 = vpack.c.bf16 %v2203_v1, %v2199_v19  ;;  %v2217_v1 = vld [vmem:[#allocation11 + $0x398] sm:$0xff] }
 0x31f   :  { %v4142_v27 = vpack.c.bf16 %v2188_v20, %v2184_v24  ;;  %v2200_v41 = vld [vmem:[#allocation11 + $0x310] sm:$0xff]  ;;  %v2207_v20 = vld [vmem:[#allocation11 + $0x348] sm:$0xff] }
 0x320   :  { %4007 = vmatpush1.bf16.msra.mxu0 %v4006_v22  ;;  %4135 = vmatpush1.bf16.msra.mxu1 %v4134_v44  ;;  %v2197_v22 = vld [vmem:[#allocation11 + $0x2f8] sm:$0xff]  ;;  %v2190_v44 = vld [vmem:[#allocation11 + $0x2c0] sm:$0xff]  ;;  %v2204_v24 = vld [vmem:[#allocation11 + $0x330] sm:$0xff] }
 0x321   :  { %4009 = vmatprep.subr.bf16.mxu0 %v4008_v40  ;;  %4137 = vmatprep.subr.bf16.mxu1 %v4136_v52  ;;  %v4144_v54 = vpack.c.bf16 %v2197_v22, %v2193_v56  ;;  %v4018_v40 = vpack.c.bf16 %v2194_v26, %v2190_v44  ;;  %v2192_v52 = vld [vmem:[#allocation11 + $0x2d0] sm:$0xff]  ;;  %v2206_v22 = vld [vmem:[#allocation11 + $0x340] sm:$0xff] }
 0x322   :  { %v4146_v16 = vpack.c.bf16 %v2196_v55, %v2192_v52  ;;  %v2210_v44 = vld [vmem:[#allocation11 + $0x360] sm:$0xff]  ;;  %v2208_v26 = vld [vmem:[#allocation11 + $0x350] sm:$0xff]  ;;  %v2215_v52 = vld [vmem:[#allocation11 + $0x388] sm:$0xff] }
 0x323   :  { %v2219_v55 = vld [vmem:[#allocation11 + $0x3a8] sm:$0xff] }
 0x324   :  { %4011 = vmatpush1.bf16.msra.mxu0 %v4010_v8  ;;  %4139 = vmatpush1.bf16.msra.mxu1 %v4138_v37  ;;  %v2205_v8 = vld [vmem:[#allocation11 + $0x338] sm:$0xff]  ;;  %v2198_v37 = vld [vmem:[#allocation11 + $0x300] sm:$0xff]  ;;  %v4028_v19 = vpack.c.bf16 %v2219_v55, %v2215_v52  ;;  %v2235_v52 = vld [vmem:[#allocation11 + $0x428] sm:$0xff] }
 0x325   :  { %4013 = vmatprep.subr.bf16.mxu0 %v4012_v58  ;;  %4141 = vmatprep.subr.bf16.mxu1 %v4140_v63  ;;  %v4148_v58 = vpack.c.bf16 %v2205_v8, %v2201_v33  ;;  %v4022_v63 = vpack.c.bf16 %v2202_v7, %v2198_v37  ;;  %v2221_v33 = vld [vmem:[#allocation11 + $0x3b8] sm:$0xff]  ;;  %v2218_v37 = vld [vmem:[#allocation11 + $0x3a0] sm:$0xff]  ;;  %v2216_v7 = vld [vmem:[#allocation11 + $0x390] sm:$0xff] }
 0x326   :  { %v4156_v8 = vpack.c.bf16 %v2221_v33, %v2217_v1  ;;  %v2233_v55 = vld [vmem:[#allocation11 + $0x418] sm:$0xff] }
 0x328   :  { %4015 = vmatpush1.bf16.msra.mxu0 %v4014_v59  ;;  %4143 = vmatpush1.bf16.msra.mxu1 %v4142_v27  ;;  %v4150_v59 = vpack.c.bf16 %v2204_v24, %v2200_v41  ;;  %v2211_v27 = vld [vmem:[#allocation11 + $0x368] sm:$0xff] }
 0x329   :  { %4017 = vmatprep.subr.bf16.mxu0 %v4016_v14  ;;  %4145 = vmatprep.subr.bf16.mxu1 %v4144_v54  ;;  %v4024_v56 = vpack.c.bf16 %v2211_v27, %v2207_v20  ;;  %v4152_v14 = vpack.c.bf16 %v2213_v60, %v2209_v50  ;;  %v4026_v54 = vpack.c.bf16 %v2210_v44, %v2206_v22  ;;  %v2223_v41 = vld [vmem:[#allocation11 + $0x3c8] sm:$0xff]  ;;  %v2225_v20 = vld [vmem:[#allocation11 + $0x3d8] sm:$0xff]  ;;  %v2222_v60 = vld [vmem:[#allocation11 + $0x3c0] sm:$0xff] }
 0x32a   :  { %v2227_v24 = vld [vmem:[#allocation11 + $0x3e8] sm:$0xff]  ;;  %v2229_v50 = vld [vmem:[#allocation11 + $0x3f8] sm:$0xff]  ;;  %v2224_v22 = vld [vmem:[#allocation11 + $0x3d0] sm:$0xff] }
 0x32b   :  { %v4032_v27 = vpack.c.bf16 %v2227_v24, %v2223_v41  ;;  %v2228_v44 = vld [vmem:[#allocation11 + $0x3f0] sm:$0xff]  ;;  %v5802_v24 = vld [vmem:[#allocation7] sm:$0x3f] }
 0x32c   :  { %4019 = vmatpush1.bf16.msra.mxu0 %v4018_v40  ;;  %4147 = vmatpush1.bf16.msra.mxu1 %v4146_v16  ;;  %v2212_v40 = vld [vmem:[#allocation11 + $0x370] sm:$0xff]  ;;  %6579 = vst [vmem:[#allocation74_spill] sm:$0xff] %v5802_v24 }
 0x32d   :  { %4021 = vmatprep.subr.bf16.mxu0 %v4020_v6  ;;  %4149 = vmatprep.subr.bf16.mxu1 %v4148_v58  ;;  %v4154_v16 = vpack.c.bf16 %v2212_v40, %v2208_v26  ;;  %v2214_v6 = vld [vmem:[#allocation11 + $0x380] sm:$0xff]  ;;  %v2220_v58 = vld [vmem:[#allocation11 + $0x3b0] sm:$0xff]  ;;  %v2231_v40 = vld [vmem:[#allocation11 + $0x408] sm:$0xff] }
 0x330   :  { %4023 = vmatpush1.bf16.msra.mxu0 %v4022_v63  ;;  %4151 = vmatpush1.bf16.msra.mxu1 %v4150_v59  ;;  %v4030_v63 = vpack.c.bf16 %v2218_v37, %v2214_v6  ;;  %v4158_v59 = vpack.c.bf16 %v2220_v58, %v2216_v7 }
 0x331   :  { %4025 = vmatprep.subr.bf16.mxu0 %v4024_v56  ;;  %4153 = vmatprep.subr.bf16.mxu1 %v4152_v14  ;;  %v2226_v56 = vld [vmem:[#allocation11 + $0x3e0] sm:$0xff]  ;;  %v4160_v14 = vpack.c.bf16 %v2229_v50, %v2225_v20  ;;  %v6580_v20 = vld [vmem:[#allocation58_spill] sm:$0xff] }
 0x332   :  { %v4034_v26 = vpack.c.bf16 %v2226_v56, %v2222_v60  ;;  %v6582_v60 = vld [vmem:[#allocation63_spill] sm:$0xff] }
 0x333   :  { %v844_v56 = vrot.slane %v5802_v24, %v6582_v60 }
 0x334   :  { %4027 = vmatpush1.bf16.msra.mxu0 %v4026_v54  ;;  %4155 = vmatpush1.bf16.msra.mxu1 %v4154_v16  ;;  %v4162_v54 = vpack.c.bf16 %v2228_v44, %v2224_v22  ;;  %v4036_v16 = vpack.c.bf16 %v2235_v52, %v2231_v40  ;;  %v5812_v22 = vld [vmem:[#allocation7 + $0x18] sm:$0x3f] }
 0x335   :  { %4029 = vmatprep.subr.bf16.mxu0 %v4028_v19  ;;  %4157 = vmatprep.subr.bf16.mxu1 %v4156_v8  ;;  %v2237_v19 = vld [vmem:[#allocation11 + $0x438] sm:$0xff]  ;;  %6583 = vst [vmem:[#allocation63_spill] sm:$0xff] %v5812_v22  ;;  %v836_v44 = vrot.slane %v5812_v22, %v6580_v20 }
 0x336   :  { %v4164_v1 = vpack.c.bf16 %v2237_v19, %v2233_v55  ;;  %v856_v19 = vrot.slane %v5812_v22, %v6582_v60  ;;  %v6589_v22 = vld [vmem:[#allocation60_spill] sm:$0xff] }
 0x338   :  { %4031 = vmatpush1.bf16.msra.mxu0 %v4030_v63  ;;  %4159 = vmatpush1.bf16.msra.mxu1 %v4158_v59  ;;  %v824_v59 = vrot.slane %v5802_v24, %v6580_v20  ;;  %v6588_v24 = vld [vmem:[#allocation61_spill] sm:$0xff] }
 0x339   :  { %4033 = vmatprep.subr.bf16.mxu0 %v4032_v27  ;;  %4161 = vmatprep.subr.bf16.mxu1 %v4160_v14  ;;  %v5806_v27 = vld [vmem:[#allocation7 + $0x8] sm:$0x3f] }
 0x33a   :  { %6581 = vst [vmem:[#allocation58_spill] sm:$0xff] %v5806_v27  ;;  %v828_v50 = vrot.slane %v5806_v27, %v6580_v20  ;;  %v848_v52 = vrot.slane %v5806_v27, %v6582_v60  ;;  %v6587_v20 = vld [vmem:[#allocation62_spill] sm:$0xff] }
 0x33b   :  { %v2232_v27 = vld [vmem:[#allocation11 + $0x410] sm:$0xff] }
 0x33c   :  { %4035 = vmatpush1.bf16.msra.mxu0 %v4034_v26  ;;  %4163 = vmatpush1.bf16.msra.mxu1 %v4162_v54  ;;  %v6584_v54 = vld [vmem:[#allocation55_spill] sm:$0xff] }
 0x33d   :  { %4037 = vmatprep.subr.bf16.mxu0 %v4036_v16  ;;  %4165 = vmatprep.subr.bf16.mxu1 %v4164_v1  ;;  %v837_v40 = vadd.f32 %v824_v59, %v6584_v54  ;;  %v840_v59 = vadd.f32 %v836_v44, %v6587_v20  ;;  %v2234_v54 = vld [vmem:[#allocation11 + $0x420] sm:$0xff] }
 0x3d2   :  { %v1939_v33 = vpop.f32.mrb[14].mxu0  ;;  %v2081_v6 = vpop.f32.mrb[14].mxu1 }
 0x3d3   :  { %v4744_v8 = vadd.f32 1e-08, %v1939_v33  ;;  %v4746_v37 = vadd.f32 1e-08, %v2081_v6  ;;  %v1941_v7 = vpop.f32.mrb[15].mxu0  ;;  %v2083_v58 = vpop.f32.mrb[15].mxu1 }
 0x3d4   :  { %v4745_v63 = vadd.f32 1e-08, %v1941_v7  ;;  %v4747_v41 = vadd.f32 1e-08, %v2083_v58  ;;  %v6585_v6 = vld [vmem:[#allocation56_spill] sm:$0xff] }
 0x3d5   :  { %4791 = vrsqrt.f32 %v4744_v8  ;;  %v838_v8 = vadd.f32 %v828_v50, %v6585_v6  ;;  %v2239_v50 = vld [vmem:[#allocation11 + $0x448] sm:$0xff]  ;;  %v6590_v6 = vld [vmem:[#allocation67_spill] sm:$0xff] }
 0x3d6   :  { %4793 = vrsqrt.f32 %v4746_v37  ;;  %v6586_v37 = vld [vmem:[#allocation59_spill] sm:$0xff] }
 0x3d7   :  { %4795 = vrsqrt.f32 %v4745_v63  ;;  %v857_v7 = vadd.f32 %v844_v56, %v6586_v37  ;;  %v860_v56 = vadd.f32 %v856_v19, %v6590_v6  ;;  %v2257_v6 = vld [vmem:[#allocation11 + $0x4d8] sm:$0xff] }
 0x3d8   :  { %4797 = vrsqrt.f32 %v4747_v41  ;;  %v2230_v41 = vld [vmem:[#allocation11 + $0x400] sm:$0xff] }
 0x3d9   :  { %v4038_v42 = vpack.c.bf16 %v2234_v54, %v2230_v41  ;;  %v2250_v54 = vld [vmem:[#allocation11 + $0x4a0] sm:$0xff] }
 0x3df   :  { %v4792_v14 = vpop.eup %4791 }
 0x3e0   :  { %v4794_v26 = vpop.eup %4793  ;;  %v2090_v55 = vmul.f32 %v4792_v14, %v5720_v3  ;;  %v2236_v3 = vld [vmem:[#allocation11 + $0x430] sm:$0xff] }
 0x3e1   :  { %v4796_v16 = vpop.eup %4795  ;;  %v2092_v1 = vmul.f32 %v4794_v26, %v5794_v45  ;;  %v858_v45 = vadd.f32 %v848_v52, %v6589_v22  ;;  %v4166_v48 = vpack.c.bf16 %v2236_v3, %v2232_v27  ;;  %v2244_v22 = vld [vmem:[#allocation11 + $0x470] sm:$0xff]  ;;  %v2247_v52 = vld [vmem:[#allocation11 + $0x488] sm:$0xff]  ;;  %v2246_v27 = vld [vmem:[#allocation11 + $0x480] sm:$0xff] }
 0x3e2   :  { %v4798_v33 = vpop.eup %4797  ;;  %v2091_v58 = vmul.f32 %v4796_v16, %v5723_v13  ;;  %v2094_v63 = vmul.f32 %v2090_v55, %v837_v40  ;;  %v2243_v13 = vld [vmem:[#allocation11 + $0x468] sm:$0xff]  ;;  %v2241_v40 = vld [vmem:[#allocation11 + $0x458] sm:$0xff]  ;;  %v6591_v16 = vld [vmem:[#allocation66_spill] sm:$0xff] }
 0x3e3   :  { %v2093_v14 = vmul.f32 %v4798_v33, %v5726_v31  ;;  %v2096_v60 = vmul.f32 %v2092_v1, %v6588_v24  ;;  %v2245_v55 = vld [vmem:[#allocation11 + $0x478] sm:$0xff]  ;;  %v2238_v31 = vld [vmem:[#allocation11 + $0x440] sm:$0xff]  ;;  %v2240_v1 = vld [vmem:[#allocation11 + $0x450] sm:$0xff] }
 0x3e4   :  { %v2095_v26 = vmul.f32 %v2091_v58, %v838_v8  ;;  %v2098_v49 = vadd.f32 %v2094_v63, %v857_v7  ;;  %v2242_v33 = vld [vmem:[#allocation11 + $0x460] sm:$0xff]  ;;  %v4040_v8 = vpack.c.bf16 %v2243_v13, %v2239_v50  ;;  %v4168_v19 = vpack.c.bf16 %v2245_v55, %v2241_v40  ;;  %v2251_v7 = vld [vmem:[#allocation11 + $0x4a8] sm:$0xff]  ;;  %v2249_v58 = vld [vmem:[#allocation11 + $0x498] sm:$0xff] }
 0x3e5   :  { %v2097_v37 = vmul.f32 %v2093_v14, %v840_v59  ;;  %v5832_v44 = vadd.f32 %v2096_v60, %v6591_v16  ;;  %v2253_v63 = vld [vmem:[#allocation11 + $0x4b8] sm:$0xff]  ;;  %v4042_v59 = vpack.c.bf16 %v2242_v33, %v2238_v31  ;;  %v4170_v41 = vpack.c.bf16 %v2244_v22, %v2240_v1  ;;  %v2248_v60 = vld [vmem:[#allocation11 + $0x490] sm:$0xff]  ;;  %v2259_v50 = vld [vmem:[#allocation11 + $0x4e8] sm:$0xff] }
 0x3e6   :  { %v2099_v20 = vadd.f32 %v2095_v26, %v858_v45  ;;  %v4044_v3 = vpack.c.bf16 %v2251_v7, %v2247_v52  ;;  %v4172_v14 = vpack.c.bf16 %v2253_v63, %v2249_v58  ;;  %v2252_v45 = vld [vmem:[#allocation11 + $0x4b0] sm:$0xff]  ;;  %v2255_v26 = vld [vmem:[#allocation11 + $0x4c8] sm:$0xff]  ;;  %v2265_v33 = vld [vmem:[#allocation11 + $0x518] sm:$0xff] }
 0x3e7   :  { %v2101_v24 = vadd.f32 %v2097_v37, %v860_v56  ;;  %v2261_v56 = vld [vmem:[#allocation11 + $0x4f8] sm:$0xff]  ;;  %v2258_v37 = vld [vmem:[#allocation11 + $0x4e0] sm:$0xff]  ;;  %v4048_v13 = vpack.c.bf16 %v2259_v50, %v2255_v26  ;;  %v2256_v55 = vld [vmem:[#allocation11 + $0x4d0] sm:$0xff] }
 0x3e8   :  { %2438 = vmatprep.mubr.f32.mxu0 %v2099_v20  ;;  %2580 = vmatprep.mubr.f32.mxu1 %v2099_v20  ;;  %v4176_v40 = vpack.c.bf16 %v2261_v56, %v2257_v6  ;;  %v2260_v16 = vld [vmem:[#allocation11 + $0x4f0] sm:$0xff]  ;;  %v2263_v20 = vld [vmem:[#allocation11 + $0x508] sm:$0xff]  ;;  %v2262_v52 = vld [vmem:[#allocation11 + $0x500] sm:$0xff] }
 0x3e9   :  { %2439 = vmatmul.mubr.f32.vlgmr.msra.gmra.mrb[10].mxu0 %v2098_v49  ;;  %2581 = vmatmul.mubr.f32.vlgmr.msra.gmra.mrb[10].mxu1 %v2098_v49  ;;  %v2254_v49 = vld [vmem:[#allocation11 + $0x4c0] sm:$0xff]  ;;  %v2267_v31 = vld [vmem:[#allocation11 + $0x528] sm:$0xff]  ;;  %v4178_v22 = vpack.c.bf16 %v2260_v16, %v2256_v55  ;;  %v2264_v58 = vld [vmem:[#allocation11 + $0x510] sm:$0xff] }
 0x3ea   :  { %4039 = vmatpush1.bf16.msra.mxu0 %v4038_v42  ;;  %4167 = vmatpush1.bf16.msra.mxu1 %v4166_v48  ;;  %v4046_v42 = vpack.c.bf16 %v2250_v54, %v2246_v27  ;;  %v4174_v48 = vpack.c.bf16 %v2252_v45, %v2248_v60  ;;  %v4050_v1 = vpack.c.bf16 %v2258_v37, %v2254_v49  ;;  %v2268_v63 = vld [vmem:[#allocation11 + $0x530] sm:$0xff]  ;;  %v2273_v27 = vld [vmem:[#allocation11 + $0x558] sm:$0xff]  ;;  %v2270_v60 = vld [vmem:[#allocation11 + $0x540] sm:$0xff] }
 0x3eb   :  { %2509 = vmatprep.mubr.f32.mxu0 %v2101_v24  ;;  %2651 = vmatprep.mubr.f32.mxu1 %v2101_v24  ;;  %v2269_v24 = vld [vmem:[#allocation11 + $0x538] sm:$0xff]  ;;  %v2274_v45 = vld [vmem:[#allocation11 + $0x560] sm:$0xff]  ;;  %v2272_v6 = vld [vmem:[#allocation11 + $0x550] sm:$0xff] }
 0x3ec   :  { %4041 = vmatprep.subr.bf16.mxu0 %v4040_v8  ;;  %4169 = vmatprep.subr.bf16.mxu1 %v4168_v19  ;;  %v2266_v8 = vld [vmem:[#allocation11 + $0x520] sm:$0xff]  ;;  %v4052_v19 = vpack.c.bf16 %v2267_v31, %v2263_v20  ;;  %v4180_v7 = vpack.c.bf16 %v2269_v24, %v2265_v33  ;;  %v2277_v54 = vld [vmem:[#allocation11 + $0x578] sm:$0xff]  ;;  %v2276_v56 = vld [vmem:[#allocation11 + $0x570] sm:$0xff] }
 0x3ed   :  { %v4184_v50 = vpack.c.bf16 %v2277_v54, %v2273_v27  ;;  %v2281_v49 = vld [vmem:[#allocation11 + $0x598] sm:$0xff]  ;;  %v2278_v55 = vld [vmem:[#allocation11 + $0x580] sm:$0xff]  ;;  %v2280_v33 = vld [vmem:[#allocation11 + $0x590] sm:$0xff] }
 0x3ee   :  { %4043 = vmatpush1.bf16.msra.mxu0 %v4042_v59  ;;  %4171 = vmatpush1.bf16.msra.mxu1 %v4170_v41  ;;  %v2271_v59 = vld [vmem:[#allocation11 + $0x548] sm:$0xff]  ;;  %v2285_v37 = vld [vmem:[#allocation11 + $0x5b8] sm:$0xff]  ;;  %v2282_v16 = vld [vmem:[#allocation11 + $0x5a0] sm:$0xff] }
 0x3ef   :  { %4045 = vmatprep.subr.bf16.mxu0 %v4044_v3  ;;  %4173 = vmatprep.subr.bf16.mxu1 %v4172_v14  ;;  %v2275_v41 = vld [vmem:[#allocation11 + $0x568] sm:$0xff]  ;;  %v4054_v3 = vpack.c.bf16 %v2266_v8, %v2262_v52  ;;  %v4182_v14 = vpack.c.bf16 %v2268_v63, %v2264_v58  ;;  %v4188_v31 = vpack.c.bf16 %v2285_v37, %v2281_v49  ;;  %v2284_v24 = vld [vmem:[#allocation11 + $0x5b0] sm:$0xff]  ;;  %v2289_v52 = vld [vmem:[#allocation11 + $0x5d8] sm:$0xff] }
 0x3f0   :  { %v4056_v26 = vpack.c.bf16 %v2275_v41, %v2271_v59  ;;  %v2293_v8 = vld [vmem:[#allocation11 + $0x5f8] sm:$0xff]  ;;  %v2286_v58 = vld [vmem:[#allocation11 + $0x5c0] sm:$0xff]  ;;  %v2288_v27 = vld [vmem:[#allocation11 + $0x5d0] sm:$0xff] }
 0x3f1   :  { %v2290_v63 = vld [vmem:[#allocation11 + $0x5e0] sm:$0xff]  ;;  %v4192_v41 = vpack.c.bf16 %v2293_v8, %v2289_v52  ;;  %v2292_v54 = vld [vmem:[#allocation11 + $0x5f0] sm:$0xff] }
 0x3f2   :  { %4047 = vmatpush1.bf16.msra.mxu0 %v4046_v42  ;;  %4175 = vmatpush1.bf16.msra.mxu1 %v4174_v48  ;;  %v2279_v42 = vld [vmem:[#allocation11 + $0x588] sm:$0xff]  ;;  %v2296_v49 = vld [vmem:[#allocation11 + $0x610] sm:$0xff] }
 0x3f3   :  { %4049 = vmatprep.subr.bf16.mxu0 %v4048_v13  ;;  %4177 = vmatprep.subr.bf16.mxu1 %v4176_v40  ;;  %v2283_v48 = vld [vmem:[#allocation11 + $0x5a8] sm:$0xff]  ;;  %v4058_v13 = vpack.c.bf16 %v2274_v45, %v2270_v60  ;;  %v4186_v40 = vpack.c.bf16 %v2276_v56, %v2272_v6  ;;  %v2297_v60 = vld [vmem:[#allocation11 + $0x618] sm:$0xff]  ;;  %v2294_v6 = vld [vmem:[#allocation11 + $0x600] sm:$0xff] }
 0x3f4   :  { %v4060_v20 = vpack.c.bf16 %v2283_v48, %v2279_v42  ;;  %v2301_v45 = vld [vmem:[#allocation11 + $0x638] sm:$0xff]  ;;  %v2298_v56 = vld [vmem:[#allocation11 + $0x620] sm:$0xff]  ;;  %v2300_v37 = vld [vmem:[#allocation11 + $0x630] sm:$0xff] }
 0x3f5   :  { %v4196_v48 = vpack.c.bf16 %v2301_v45, %v2297_v60  ;;  %v2304_v52 = vld [vmem:[#allocation11 + $0x650] sm:$0xff] }
 0x3f6   :  { %4051 = vmatpush1.bf16.msra.mxu0 %v4050_v1  ;;  %4179 = vmatpush1.bf16.msra.mxu1 %v4178_v22  ;;  %v2287_v1 = vld [vmem:[#allocation11 + $0x5c8] sm:$0xff]  ;;  %v2308_v8 = vld [vmem:[#allocation11 + $0x670] sm:$0xff] }
 0x3f7   :  { %4053 = vmatprep.subr.bf16.mxu0 %v4052_v19  ;;  %4181 = vmatprep.subr.bf16.mxu1 %v4180_v7  ;;  %v2291_v22 = vld [vmem:[#allocation11 + $0x5e8] sm:$0xff]  ;;  %v4062_v19 = vpack.c.bf16 %v2282_v16, %v2278_v55  ;;  %v4190_v7 = vpack.c.bf16 %v2284_v24, %v2280_v33  ;;  %v2305_v55 = vld [vmem:[#allocation11 + $0x658] sm:$0xff]  ;;  %v2302_v33 = vld [vmem:[#allocation11 + $0x640] sm:$0xff] }
 0x3f8   :  { %v4064_v59 = vpack.c.bf16 %v2291_v22, %v2287_v1  ;;  %v2309_v16 = vld [vmem:[#allocation11 + $0x678] sm:$0xff]  ;;  %v2306_v24 = vld [vmem:[#allocation11 + $0x660] sm:$0xff]  ;;  %v2312_v60 = vld [vmem:[#allocation11 + $0x690] sm:$0xff] }
 0x3f9   :  { %v4200_v22 = vpack.c.bf16 %v2309_v16, %v2305_v55  ;;  %v2316_v45 = vld [vmem:[#allocation11 + $0x6b0] sm:$0xff] }
 0x3fa   :  { %4055 = vmatpush1.bf16.msra.mxu0 %v4054_v3  ;;  %4183 = vmatpush1.bf16.msra.mxu1 %v4182_v14  ;;  %v2295_v3 = vld [vmem:[#allocation11 + $0x608] sm:$0xff]  ;;  %v2320_v55 = vld [vmem:[#allocation11 + $0x6d0] sm:$0xff] }
 0x3fb   :  { %4057 = vmatprep.subr.bf16.mxu0 %v4056_v26  ;;  %4185 = vmatprep.subr.bf16.mxu1 %v4184_v50  ;;  %v2299_v14 = vld [vmem:[#allocation11 + $0x628] sm:$0xff]  ;;  %v4066_v26 = vpack.c.bf16 %v2290_v63, %v2286_v58  ;;  %v4194_v50 = vpack.c.bf16 %v2292_v54, %v2288_v27  ;;  %v2313_v58 = vld [vmem:[#allocation11 + $0x698] sm:$0xff]  ;;  %v2310_v27 = vld [vmem:[#allocation11 + $0x680] sm:$0xff] }
 0x3fc   :  { %v4068_v42 = vpack.c.bf16 %v2299_v14, %v2295_v3  ;;  %v2317_v63 = vld [vmem:[#allocation11 + $0x6b8] sm:$0xff]  ;;  %v2314_v54 = vld [vmem:[#allocation11 + $0x6a0] sm:$0xff]  ;;  %v2324_v16 = vld [vmem:[#allocation11 + $0x6f0] sm:$0xff] }
 0x3fd   :  { %v4204_v14 = vpack.c.bf16 %v2317_v63, %v2313_v58  ;;  %v2328_v58 = vld [vmem:[#allocation11 + $0x710] sm:$0xff] }
 0x3fe   :  { %4059 = vmatpush1.bf16.msra.mxu0 %v4058_v13  ;;  %4187 = vmatpush1.bf16.msra.mxu1 %v4186_v40  ;;  %v2303_v13 = vld [vmem:[#allocation11 + $0x648] sm:$0xff]  ;;  %v2332_v63 = vld [vmem:[#allocation11 + $0x730] sm:$0xff] }
 0x3ff   :  { %4061 = vmatprep.subr.bf16.mxu0 %v4060_v20  ;;  %4189 = vmatprep.subr.bf16.mxu1 %v4188_v31  ;;  %v2307_v40 = vld [vmem:[#allocation11 + $0x668] sm:$0xff]  ;;  %v4070_v20 = vpack.c.bf16 %v2298_v56, %v2294_v6  ;;  %v4198_v31 = vpack.c.bf16 %v2300_v37, %v2296_v49  ;;  %v2321_v6 = vld [vmem:[#allocation11 + $0x6d8] sm:$0xff]  ;;  %v2318_v49 = vld [vmem:[#allocation11 + $0x6c0] sm:$0xff] }
 0x400   :  { %v4072_v1 = vpack.c.bf16 %v2307_v40, %v2303_v13  ;;  %v2325_v56 = vld [vmem:[#allocation11 + $0x6f8] sm:$0xff]  ;;  %v2322_v37 = vld [vmem:[#allocation11 + $0x6e0] sm:$0xff] }
 0x401   :  { %v4208_v40 = vpack.c.bf16 %v2325_v56, %v2321_v6  ;;  %v2336_v6 = vld [vmem:[#allocation11 + $0x750] sm:$0xff] }
 0x402   :  { %4063 = vmatpush1.bf16.msra.mxu0 %v4062_v19  ;;  %4191 = vmatpush1.bf16.msra.mxu1 %v4190_v7  ;;  %v2311_v19 = vld [vmem:[#allocation11 + $0x688] sm:$0xff]  ;;  %v2340_v56 = vld [vmem:[#allocation11 + $0x770] sm:$0xff] }
 0x403   :  { %4065 = vmatprep.subr.bf16.mxu0 %v4064_v59  ;;  %4193 = vmatprep.subr.bf16.mxu1 %v4192_v41  ;;  %v2315_v7 = vld [vmem:[#allocation11 + $0x6a8] sm:$0xff]  ;;  %v4074_v59 = vpack.c.bf16 %v2306_v24, %v2302_v33  ;;  %v4202_v41 = vpack.c.bf16 %v2308_v8, %v2304_v52  ;;  %v2329_v33 = vld [vmem:[#allocation11 + $0x718] sm:$0xff]  ;;  %v2326_v52 = vld [vmem:[#allocation11 + $0x700] sm:$0xff] }
 0x404   :  { %v4076_v3 = vpack.c.bf16 %v2315_v7, %v2311_v19  ;;  %v2333_v24 = vld [vmem:[#allocation11 + $0x738] sm:$0xff]  ;;  %v2330_v8 = vld [vmem:[#allocation11 + $0x720] sm:$0xff] }
 0x405   :  { %v4212_v7 = vpack.c.bf16 %v2333_v24, %v2329_v33  ;;  %v2344_v33 = vld [vmem:[#allocation11 + $0x790] sm:$0xff] }
 0x406   :  { %4067 = vmatpush1.bf16.msra.mxu0 %v4066_v26  ;;  %4195 = vmatpush1.bf16.msra.mxu1 %v4194_v50  ;;  %v2319_v26 = vld [vmem:[#allocation11 + $0x6c8] sm:$0xff]  ;;  %v2348_v24 = vld [vmem:[#allocation11 + $0x7b0] sm:$0xff] }
 0x407   :  { %4069 = vmatprep.subr.bf16.mxu0 %v4068_v42  ;;  %4197 = vmatprep.subr.bf16.mxu1 %v4196_v48  ;;  %v2323_v50 = vld [vmem:[#allocation11 + $0x6e8] sm:$0xff]  ;;  %v4078_v42 = vpack.c.bf16 %v2314_v54, %v2310_v27  ;;  %v4206_v48 = vpack.c.bf16 %v2316_v45, %v2312_v60  ;;  %v2337_v27 = vld [vmem:[#allocation11 + $0x758] sm:$0xff]  ;;  %v2334_v60 = vld [vmem:[#allocation11 + $0x740] sm:$0xff] }
 0x408   :  { %v4080_v13 = vpack.c.bf16 %v2323_v50, %v2319_v26  ;;  %v2341_v54 = vld [vmem:[#allocation11 + $0x778] sm:$0xff]  ;;  %v2338_v45 = vld [vmem:[#allocation11 + $0x760] sm:$0xff] }
 0x409   :  { %v4216_v50 = vpack.c.bf16 %v2341_v54, %v2337_v27  ;;  %v2352_v27 = vld [vmem:[#allocation11 + $0x7d0] sm:$0xff] }
 0x40a   :  { %4071 = vmatpush1.bf16.msra.mxu0 %v4070_v20  ;;  %4199 = vmatpush1.bf16.msra.mxu1 %v4198_v31  ;;  %v2327_v20 = vld [vmem:[#allocation11 + $0x708] sm:$0xff]  ;;  %v2356_v54 = vld [vmem:[#allocation11 + $0x7f0] sm:$0xff] }
 0x40b   :  { %4073 = vmatprep.subr.bf16.mxu0 %v4072_v1  ;;  %4201 = vmatprep.subr.bf16.mxu1 %v4200_v22  ;;  %v2331_v31 = vld [vmem:[#allocation11 + $0x728] sm:$0xff]  ;;  %v4082_v1 = vpack.c.bf16 %v2322_v37, %v2318_v49  ;;  %v4210_v22 = vpack.c.bf16 %v2324_v16, %v2320_v55  ;;  %v2345_v49 = vld [vmem:[#allocation11 + $0x798] sm:$0xff]  ;;  %v2342_v55 = vld [vmem:[#allocation11 + $0x780] sm:$0xff] }
 0x40c   :  { %v4084_v19 = vpack.c.bf16 %v2331_v31, %v2327_v20  ;;  %v2349_v37 = vld [vmem:[#allocation11 + $0x7b8] sm:$0xff]  ;;  %v2346_v16 = vld [vmem:[#allocation11 + $0x7a0] sm:$0xff] }
 0x40d   :  { %v4220_v31 = vpack.c.bf16 %v2349_v37, %v2345_v49  ;;  %v6601_v49 = vld [vmem:[#allocation29_spill] sm:$0xff]  ;;  %v6602_v37 = vld [vmem:[#allocation30_spill] sm:$0xff] }
 0x40e   :  { %4075 = vmatpush1.bf16.msra.mxu0 %v4074_v59  ;;  %4203 = vmatpush1.bf16.msra.mxu1 %v4202_v41  ;;  %v2335_v59 = vld [vmem:[#allocation11 + $0x748] sm:$0xff] }
 0x40f   :  { %4077 = vmatprep.subr.bf16.mxu0 %v4076_v3  ;;  %4205 = vmatprep.subr.bf16.mxu1 %v4204_v14  ;;  %v2339_v41 = vld [vmem:[#allocation11 + $0x768] sm:$0xff]  ;;  %v4086_v3 = vpack.c.bf16 %v2330_v8, %v2326_v52  ;;  %v4214_v14 = vpack.c.bf16 %v2332_v63, %v2328_v58  ;;  %v2353_v52 = vld [vmem:[#allocation11 + $0x7d8] sm:$0xff]  ;;  %v2350_v58 = vld [vmem:[#allocation11 + $0x7c0] sm:$0xff] }
 0x410   :  { %v4088_v26 = vpack.c.bf16 %v2339_v41, %v2335_v59  ;;  %v2357_v8 = vld [vmem:[#allocation11 + $0x7f8] sm:$0xff]  ;;  %v2354_v41 = vld [vmem:[#allocation11 + $0x7e0] sm:$0xff] }
 0x411   :  { %v4224_v59 = vpack.c.bf16 %v2357_v8, %v2353_v52  ;;  %v6613_v52 = vld [vmem:[#allocation41_spill] sm:$0xff]  ;;  %v6614_v8 = vld [vmem:[#allocation42_spill] sm:$0xff] }
 0x412   :  { %4079 = vmatpush1.bf16.msra.mxu0 %v4078_v42  ;;  %4207 = vmatpush1.bf16.msra.mxu1 %v4206_v48  ;;  %v2343_v42 = vld [vmem:[#allocation11 + $0x788] sm:$0xff] }
 0x413   :  { %4081 = vmatprep.subr.bf16.mxu0 %v4080_v13  ;;  %4209 = vmatprep.subr.bf16.mxu1 %v4208_v40  ;;  %v2347_v48 = vld [vmem:[#allocation11 + $0x7a8] sm:$0xff]  ;;  %v4090_v13 = vpack.c.bf16 %v2338_v45, %v2334_v60  ;;  %v4218_v40 = vpack.c.bf16 %v2340_v56, %v2336_v6  ;;  %v6593_v60 = vld [vmem:[#allocation20_spill] sm:$0xff]  ;;  %v6594_v45 = vld [vmem:[#allocation22_spill] sm:$0xff] }
 0x414   :  { %v4092_v20 = vpack.c.bf16 %v2347_v48, %v2343_v42  ;;  %v6597_v6 = vld [vmem:[#allocation25_spill] sm:$0xff]  ;;  %v6598_v56 = vld [vmem:[#allocation26_spill] sm:$0xff]  ;;  %v6599_v42 = vld [vmem:[#allocation27_spill] sm:$0xff] }
 0x415   :  { %v6600_v48 = vld [vmem:[#allocation28_spill] sm:$0xff] }
 0x416   :  { %4083 = vmatpush1.bf16.msra.mxu0 %v4082_v1  ;;  %4211 = vmatpush1.bf16.msra.mxu1 %v4210_v22  ;;  %v2351_v1 = vld [vmem:[#allocation11 + $0x7c8] sm:$0xff] }
 0x417   :  { %4085 = vmatprep.subr.bf16.mxu0 %v4084_v19  ;;  %4213 = vmatprep.subr.bf16.mxu1 %v4212_v7  ;;  %v2355_v22 = vld [vmem:[#allocation11 + $0x7e8] sm:$0xff]  ;;  %v4094_v19 = vpack.c.bf16 %v2346_v16, %v2342_v55  ;;  %v4222_v7 = vpack.c.bf16 %v2348_v24, %v2344_v33  ;;  %v6605_v55 = vld [vmem:[#allocation32_spill] sm:$0xff]  ;;  %v6606_v16 = vld [vmem:[#allocation34_spill] sm:$0xff] }
 0x418   :  { %v4096_v63 = vpack.c.bf16 %v2355_v22, %v2351_v1  ;;  %v6609_v33 = vld [vmem:[#allocation36_spill] sm:$0xff]  ;;  %v6610_v24 = vld [vmem:[#allocation38_spill] sm:$0xff]  ;;  %v6611_v1 = vld [vmem:[#allocation39_spill] sm:$0xff] }
 0x419   :  { %v6612_v22 = vld [vmem:[#allocation40_spill] sm:$0xff] }
 0x41a   :  { %4087 = vmatpush1.bf16.msra.mxu0 %v4086_v3  ;;  %4215 = vmatpush1.bf16.msra.mxu1 %v4214_v14  ;;  %v4098_v3 = vpack.c.bf16 %v2354_v41, %v2350_v58  ;;  %v4226_v14 = vpack.c.bf16 %v2356_v54, %v2352_v27  ;;  %v6617_v58 = vld [vmem:[#allocation45_spill] sm:$0xff]  ;;  %v6620_v41 = vld [vmem:[#allocation48_spill] sm:$0xff]  ;;  %v6622_v54 = vld [vmem:[#allocation50_spill] sm:$0xff] }
 0x41b   :  { %4089 = vmatprep.subr.bf16.mxu0 %v4088_v26  ;;  %4217 = vmatprep.subr.bf16.mxu1 %v4216_v50  ;;  %v6595_v26 = vld [vmem:[#allocation23_spill] sm:$0xff]  ;;  %v6596_v50 = vld [vmem:[#allocation24_spill] sm:$0xff]  ;;  %v6621_v27 = vld [vmem:[#allocation49_spill] sm:$0xff] }
 0x41e   :  { %4091 = vmatpush1.bf16.msra.mxu0 %v4090_v13  ;;  %4219 = vmatpush1.bf16.msra.mxu1 %v4218_v40  ;;  %v6603_v13 = vld [vmem:[#allocation31_spill] sm:$0xff]  ;;  %v6604_v40 = vld [vmem:[#allocation33_spill] sm:$0xff] }
 0x41f   :  { %4093 = vmatprep.subr.bf16.mxu0 %v4092_v20  ;;  %4221 = vmatprep.subr.bf16.mxu1 %v4220_v31  ;;  %v6607_v20 = vld [vmem:[#allocation35_spill] sm:$0xff]  ;;  %v6608_v31 = vld [vmem:[#allocation37_spill] sm:$0xff] }
 0x422   :  { %4095 = vmatpush1.bf16.msra.mxu0 %v4094_v19  ;;  %4223 = vmatpush1.bf16.msra.mxu1 %v4222_v7  ;;  %v6615_v19 = vld [vmem:[#allocation43_spill] sm:$0xff]  ;;  %v6616_v7 = vld [vmem:[#allocation44_spill] sm:$0xff] }
 0x423   :  { %4097 = vmatprep.subr.bf16.mxu0 %v4096_v63  ;;  %4225 = vmatprep.subr.bf16.mxu1 %v4224_v59  ;;  %v6618_v63 = vld [vmem:[#allocation46_spill] sm:$0xff]  ;;  %v6619_v59 = vld [vmem:[#allocation47_spill] sm:$0xff] }
 0x426   :  { %4099 = vmatpush1.bf16.msra.mxu0 %v4098_v3  ;;  %4227 = vmatpush1.bf16.msra.mxu1 %v4226_v14  ;;  %v6623_v3 = vld [vmem:[#allocation51_spill] sm:$0xff]  ;;  %v6624_v14 = vld [vmem:[#allocation52_spill] sm:$0xff] }
 0x427   :  { %4229 = vmatprep.subr.bf16.mxu0 %v5182_v30  ;;  %4357 = vmatprep.subr.bf16.mxu1 %v5193_v61 }
 0x429   :  { %2510 = vmatmul.mubr.f32.vlgmr.msra.gmra.mrb[10].mxu0 %v5832_v44  ;;  %2652 = vmatmul.mubr.f32.vlgmr.msra.gmra.mrb[10].mxu1 %v5832_v44  ;;  %v6592_v44 = vld [vmem:[#allocation21_spill] sm:$0xff] }
 0x42a   :  { %4231 = vmatpush1.bf16.msra.mxu0 %v5195_v2  ;;  %4359 = vmatpush1.bf16.msra.mxu1 %v5197_v4 }
 0x42b   :  { %4233 = vmatprep.subr.bf16.mxu0 %v5201_v0  ;;  %4361 = vmatprep.subr.bf16.mxu1 %v5205_v11 }
 0x42e   :  { %4235 = vmatpush1.bf16.msra.mxu0 %v5207_v12  ;;  %4363 = vmatpush1.bf16.msra.mxu1 %v5211_v17 }
 0x42f   :  { %4237 = vmatprep.subr.bf16.mxu0 %v5215_v15  ;;  %4365 = vmatprep.subr.bf16.mxu1 %v5217_v21 }
 0x432   :  { %4239 = vmatpush1.bf16.msra.mxu0 %v5219_v25  ;;  %4367 = vmatpush1.bf16.msra.mxu1 %v5225_v35 }
 0x433   :  { %4241 = vmatprep.subr.bf16.mxu0 %v5222_v29  ;;  %4369 = vmatprep.subr.bf16.mxu1 %v5229_v38 }
 0x436   :  { %4243 = vmatpush1.bf16.msra.mxu0 %v5231_v39  ;;  %4371 = vmatpush1.bf16.msra.mxu1 %v5237_v46 }
 0x437   :  { %4245 = vmatprep.subr.bf16.mxu0 %v5234_v43  ;;  %4373 = vmatprep.subr.bf16.mxu1 %v5241_v47 }
 0x43a   :  { %4247 = vmatpush1.bf16.msra.mxu0 %v5244_v51  ;;  %4375 = vmatpush1.bf16.msra.mxu1 %v5247_v53 }
 0x43b   :  { %4249 = vmatprep.subr.bf16.mxu0 %v5251_v57  ;;  %4377 = vmatprep.subr.bf16.mxu1 %v5253_v32 }
 0x43e   :  { %4251 = vmatpush1.bf16.msra.mxu0 %v5255_v62  ;;  %4379 = vmatpush1.bf16.msra.mxu1 %v5259_v5 }
 0x43f   :  { %4253 = vmatprep.subr.bf16.mxu0 %v5263_v9  ;;  %4381 = vmatprep.subr.bf16.mxu1 %v5265_v10 }
 0x442   :  { %4255 = vmatpush1.bf16.msra.mxu0 %v5267_v18  ;;  %4383 = vmatpush1.bf16.msra.mxu1 %v5273_v28 }
 0x443   :  { %4257 = vmatprep.subr.bf16.mxu0 %v5270_v23  ;;  %4385 = vmatprep.subr.bf16.mxu1 %v5277_v34 }
 0x446   :  { %4259 = vmatpush1.bf16.msra.mxu0 %v5279_v36  ;;  %4387 = vmatpush1.bf16.msra.mxu1 %v6592_v44 }
 0x447   :  { %4261 = vmatprep.subr.bf16.mxu0 %v6593_v60  ;;  %4389 = vmatprep.subr.bf16.mxu1 %v6594_v45 }
 0x44a   :  { %4263 = vmatpush1.bf16.msra.mxu0 %v6595_v26  ;;  %4391 = vmatpush1.bf16.msra.mxu1 %v6596_v50 }
 0x44b   :  { %4265 = vmatprep.subr.bf16.mxu0 %v6597_v6  ;;  %4393 = vmatprep.subr.bf16.mxu1 %v6598_v56 }
 0x44e   :  { %4267 = vmatpush1.bf16.msra.mxu0 %v6599_v42  ;;  %4395 = vmatpush1.bf16.msra.mxu1 %v6600_v48 }
 0x44f   :  { %4269 = vmatprep.subr.bf16.mxu0 %v6601_v49  ;;  %4397 = vmatprep.subr.bf16.mxu1 %v6602_v37 }
 0x452   :  { %4271 = vmatpush1.bf16.msra.mxu0 %v6603_v13  ;;  %4399 = vmatpush1.bf16.msra.mxu1 %v6604_v40 }
 0x453   :  { %4273 = vmatprep.subr.bf16.mxu0 %v6605_v55  ;;  %4401 = vmatprep.subr.bf16.mxu1 %v6606_v16 }
 0x456   :  { %4275 = vmatpush1.bf16.msra.mxu0 %v6607_v20  ;;  %4403 = vmatpush1.bf16.msra.mxu1 %v6608_v31 }
 0x457   :  { %4277 = vmatprep.subr.bf16.mxu0 %v6609_v33  ;;  %4405 = vmatprep.subr.bf16.mxu1 %v6610_v24 }
 0x45a   :  { %4279 = vmatpush1.bf16.msra.mxu0 %v6611_v1  ;;  %4407 = vmatpush1.bf16.msra.mxu1 %v6612_v22 }
 0x45b   :  { %4281 = vmatprep.subr.bf16.mxu0 %v6613_v52  ;;  %4409 = vmatprep.subr.bf16.mxu1 %v6614_v8  ;;  %v6625_v8 = vld [vmem:[#allocation53_spill] sm:$0xff] }
 0x45e   :  { %4283 = vmatpush1.bf16.msra.mxu0 %v6615_v19  ;;  %4411 = vmatpush1.bf16.msra.mxu1 %v6616_v7  ;;  %v6626_v19 = vld [vmem:[#allocation54_spill] sm:$0xff]  ;;  %v6627_v7 = vld [vmem:[#allocation57_spill] sm:$0xff] }
 0x45f   :  { %4285 = vmatprep.subr.bf16.mxu0 %v6617_v58  ;;  %4413 = vmatprep.subr.bf16.mxu1 %v6618_v63  ;;  %v5903_v58 = vsub.s32 5, %v6627_v7  ;;  %v6628_v63 = vld [vmem:[#allocation74_spill] sm:$0xff] }
 0x462   :  { %4287 = vmatpush1.bf16.msra.mxu0 %v6619_v59  ;;  %4415 = vmatpush1.bf16.msra.mxu1 %v6620_v41  ;;  %v2361_v59 = vrot.slane %v6628_v63, %v5903_v58  ;;  %v6629_v41 = vld [vmem:[#allocation58_spill] sm:$0xff] }
 0x463   :  { %4289 = vmatprep.subr.bf16.mxu0 %v6621_v27  ;;  %4417 = vmatprep.subr.bf16.mxu1 %v6622_v54  ;;  %v2365_v52 = vrot.slane %v6629_v41, %v5903_v58  ;;  %v6630_v27 = vld [vmem:[#allocation63_spill] sm:$0xff] }
 0x464   :  { %v2373_v54 = vrot.slane %v6630_v27, %v5903_v58  ;;  %v6638_v27 = vld [vmem:[#allocation80_spill] sm:$0xff] }
 0x466   :  { %4291 = vmatpush1.bf16.msra.mxu0 %v6623_v3  ;;  %4419 = vmatpush1.bf16.msra.mxu1 %v6624_v14 }
 0x467   :  { %4293 = vmatprep.subr.bf16.mxu0 %v6625_v8  ;;  %4421 = vmatprep.subr.bf16.mxu1 %v6626_v19 }
 0x4fc   :  { %v2511_v22 = vpop.f32.mrb[10].mxu0  ;;  %v5911_v3 = vpop.f32.mrb[10].mxu1 }
 0x4fd   :  { %v4740_v14 = vadd.f32 %v2511_v22, %v2361_v59  ;;  %v2513_v1 = vpop.f32.mrb[11].mxu0  ;;  %v2655_v8 = vpop.f32.mrb[11].mxu1  ;;  %v6632_v22 = vld [vmem:[#allocation73_spill] sm:$0xff]  ;;  %v6637_v59 = vld [vmem:[#allocation79_spill] sm:$0xff] }
 0x4fe   :  { %v4741_v24 = vadd.f32 %v2513_v1, %v2365_v52  ;;  %v4743_v19 = vadd.f32 %v2655_v8, %v2373_v54  ;;  %v6631_v1 = vld [vmem:[#allocation72_spill] sm:$0xff]  ;;  %v6639_v54 = vld [vmem:[#allocation81_spill] sm:$0xff] }
 0x4ff   :  { %v2666_v33 = vmul.f32 0.2, %v4740_v14  ;;  %vm2662_vm6 = vcmp.ge.f32.partialorder %v4740_v14, 0.0  ;;  %v6634_v8 = vld [vmem:[#allocation76_spill] sm:$0xff] }
 0x500   :  { %v2667_v7 = vmul.f32 0.2, %v4741_v24  ;;  %vm2663_vm7 = vcmp.ge.f32.partialorder %v4741_v24, 0.0  ;;  %v2669_v31 = vmul.f32 0.2, %v4743_v19  ;;  %vm2665_vm8 = vcmp.ge.f32.partialorder %v4743_v19, 0.0 }
 0x501   :  { %v5917_v41 = vsel %vm2662_vm6, %v4740_v14, %v2666_v33  ;;  %v6635_v33 = vld [vmem:[#allocation77_spill] sm:$0xff] }
 0x502   :  { %v5913_v63 = vsel %vm2663_vm7, %v4741_v24, %v2667_v7  ;;  %v5923_v52 = vsel %vm2665_vm8, %v4743_v19, %v2669_v31  ;;  %v6633_v24 = vld [vmem:[#allocation75_spill] sm:$0xff]  ;;  %v6636_v7 = vld [vmem:[#allocation78_spill] sm:$0xff]  ;;  %v6641_v19 = vld [vmem:[#allocation84_spill] sm:$0xff] }
 0x503   :  { %2738 = vmatprep.mubr.f32.mxu0 %v5913_v63  ;;  %2880 = vmatprep.mubr.f32.mxu1 %v5913_v63  ;;  %v6640_v31 = vld [vmem:[#allocation82_spill] sm:$0xff]  ;;  %v6642_v14 = vld [vmem:[#allocation85_spill] sm:$0xff] }
 0x504   :  { %2739 = vmatmul.mubr.f32.vlgmr.msra.gmra.mrb[16].mxu0 %v5917_v41  ;;  %2881 = vmatmul.mubr.f32.vlgmr.msra.gmra.mrb[16].mxu1 %v5917_v41 }
 0x505   :  { %4295 = vmatpush1.bf16.msra.mxu0 %v6631_v1  ;;  %4423 = vmatpush1.bf16.msra.mxu1 %v6632_v22  ;;  %v6643_v22 = vld [vmem:[#allocation87_spill] sm:$0xff] }
 0x506   :  { %2809 = vmatprep.mubr.f32.mxu0 %v5923_v52  ;;  %2951 = vmatprep.mubr.f32.mxu1 %v5923_v52 }
 0x507   :  { %4297 = vmatprep.subr.bf16.mxu0 %v6633_v24  ;;  %4425 = vmatprep.subr.bf16.mxu1 %v6634_v8  ;;  %v6644_v24 = vld [vmem:[#allocation88_spill] sm:$0xff]  ;;  %v6645_v8 = vld [vmem:[#allocation89_spill] sm:$0xff] }
 0x509   :  { %4299 = vmatpush1.bf16.msra.mxu0 %v6635_v33  ;;  %4427 = vmatpush1.bf16.msra.mxu1 %v6636_v7  ;;  %v6646_v33 = vld [vmem:[#allocation90_spill] sm:$0xff]  ;;  %v6647_v7 = vld [vmem:[#allocation91_spill] sm:$0xff] }
 0x50a   :  { %4301 = vmatprep.subr.bf16.mxu0 %v6637_v59  ;;  %4429 = vmatprep.subr.bf16.mxu1 %v6638_v27  ;;  %v6648_v59 = vld [vmem:[#allocation92_spill] sm:$0xff]  ;;  %v6649_v27 = vld [vmem:[#allocation93_spill] sm:$0xff] }
 0x50d   :  { %4303 = vmatpush1.bf16.msra.mxu0 %v6639_v54  ;;  %4431 = vmatpush1.bf16.msra.mxu1 %v6640_v31  ;;  %v6650_v54 = vld [vmem:[#allocation94_spill] sm:$0xff]  ;;  %v6651_v31 = vld [vmem:[#allocation95_spill] sm:$0xff] }
 0x50e   :  { %4305 = vmatprep.subr.bf16.mxu0 %v6641_v19  ;;  %4433 = vmatprep.subr.bf16.mxu1 %v6642_v14  ;;  %v6652_v19 = vld [vmem:[#allocation96_spill] sm:$0xff]  ;;  %v6653_v14 = vld [vmem:[#allocation97_spill] sm:$0xff] }
 0x511   :  { %4307 = vmatpush1.bf16.msra.mxu0 %v6643_v22  ;;  %4435 = vmatpush1.bf16.msra.mxu1 %v6644_v24  ;;  %v6654_v22 = vld [vmem:[#allocation98_spill] sm:$0xff]  ;;  %v6655_v24 = vld [vmem:[#allocation99_spill] sm:$0xff] }
 0x512   :  { %4309 = vmatprep.subr.bf16.mxu0 %v6645_v8  ;;  %4437 = vmatprep.subr.bf16.mxu1 %v6646_v33  ;;  %v6656_v8 = vld [vmem:[#allocation100_spill] sm:$0xff]  ;;  %v6657_v33 = vld [vmem:[#allocation101_spill] sm:$0xff] }
 0x515   :  { %4311 = vmatpush1.bf16.msra.mxu0 %v6647_v7  ;;  %4439 = vmatpush1.bf16.msra.mxu1 %v6648_v59  ;;  %v6658_v7 = vld [vmem:[#allocation102_spill] sm:$0xff]  ;;  %v6659_v59 = vld [vmem:[#allocation103_spill] sm:$0xff] }
 0x516   :  { %4313 = vmatprep.subr.bf16.mxu0 %v6649_v27  ;;  %4441 = vmatprep.subr.bf16.mxu1 %v6650_v54  ;;  %v6660_v27 = vld [vmem:[#allocation104_spill] sm:$0xff]  ;;  %v6661_v54 = vld [vmem:[#allocation105_spill] sm:$0xff] }
 0x519   :  { %4315 = vmatpush1.bf16.msra.mxu0 %v6651_v31  ;;  %4443 = vmatpush1.bf16.msra.mxu1 %v6652_v19  ;;  %v6662_v31 = vld [vmem:[#allocation106_spill] sm:$0xff]  ;;  %v6663_v19 = vld [vmem:[#allocation107_spill] sm:$0xff] }
 0x51a   :  { %4317 = vmatprep.subr.bf16.mxu0 %v6653_v14  ;;  %4445 = vmatprep.subr.bf16.mxu1 %v6654_v22  ;;  %v6664_v14 = vld [vmem:[#allocation108_spill] sm:$0xff]  ;;  %v6665_v22 = vld [vmem:[#allocation109_spill] sm:$0xff] }
 0x51d   :  { %4319 = vmatpush1.bf16.msra.mxu0 %v6655_v24  ;;  %4447 = vmatpush1.bf16.msra.mxu1 %v6656_v8  ;;  %v6666_v24 = vld [vmem:[#allocation110_spill] sm:$0xff]  ;;  %v6667_v8 = vld [vmem:[#allocation111_spill] sm:$0xff] }
 0x51e   :  { %4321 = vmatprep.subr.bf16.mxu0 %v6657_v33  ;;  %4449 = vmatprep.subr.bf16.mxu1 %v6658_v7  ;;  %v6668_v33 = vld [vmem:[#allocation112_spill] sm:$0xff]  ;;  %v6669_v7 = vld [vmem:[#allocation113_spill] sm:$0xff] }
 0x521   :  { %4323 = vmatpush1.bf16.msra.mxu0 %v6659_v59  ;;  %4451 = vmatpush1.bf16.msra.mxu1 %v6660_v27  ;;  %v6670_v59 = vld [vmem:[#allocation114_spill] sm:$0xff]  ;;  %v6671_v27 = vld [vmem:[#allocation115_spill] sm:$0xff] }
 0x522   :  { %4325 = vmatprep.subr.bf16.mxu0 %v6661_v54  ;;  %4453 = vmatprep.subr.bf16.mxu1 %v6662_v31  ;;  %v6672_v54 = vld [vmem:[#allocation116_spill] sm:$0xff]  ;;  %v6673_v31 = vld [vmem:[#allocation117_spill] sm:$0xff] }
 0x525   :  { %4327 = vmatpush1.bf16.msra.mxu0 %v6663_v19  ;;  %4455 = vmatpush1.bf16.msra.mxu1 %v6664_v14  ;;  %v6674_v19 = vld [vmem:[#allocation118_spill] sm:$0xff]  ;;  %v6675_v14 = vld [vmem:[#allocation119_spill] sm:$0xff] }
 0x526   :  { %4329 = vmatprep.subr.bf16.mxu0 %v6665_v22  ;;  %4457 = vmatprep.subr.bf16.mxu1 %v6666_v24  ;;  %v6676_v22 = vld [vmem:[#allocation120_spill] sm:$0xff]  ;;  %v6677_v24 = vld [vmem:[#allocation121_spill] sm:$0xff] }
 0x529   :  { %4331 = vmatpush1.bf16.msra.mxu0 %v6667_v8  ;;  %4459 = vmatpush1.bf16.msra.mxu1 %v6668_v33  ;;  %v6678_v8 = vld [vmem:[#allocation122_spill] sm:$0xff]  ;;  %v6679_v33 = vld [vmem:[#allocation123_spill] sm:$0xff] }
 0x52a   :  { %4333 = vmatprep.subr.bf16.mxu0 %v6669_v7  ;;  %4461 = vmatprep.subr.bf16.mxu1 %v6670_v59  ;;  %v6680_v7 = vld [vmem:[#allocation124_spill] sm:$0xff]  ;;  %v6681_v59 = vld [vmem:[#allocation125_spill] sm:$0xff] }
 0x52d   :  { %4335 = vmatpush1.bf16.msra.mxu0 %v6671_v27  ;;  %4463 = vmatpush1.bf16.msra.mxu1 %v6672_v54  ;;  %v6682_v27 = vld [vmem:[#allocation126_spill] sm:$0xff] }
 0x52e   :  { %4337 = vmatprep.subr.bf16.mxu0 %v6673_v31  ;;  %4465 = vmatprep.subr.bf16.mxu1 %v6674_v19  ;;  %v5977_v54 = vld [vmem:[#allocation7 + $0x10] sm:$0x3f] }
 0x52f   :  { %6683 = vst [vmem:[#allocation55_spill] sm:$0xff] %v5977_v54  ;;  %v2369_v19 = vrot.slane %v5977_v54, %v5903_v58  ;;  %v6691_v31 = vld [vmem:[#allocation134_spill] sm:$0xff]  ;;  %v6692_v58 = vld [vmem:[#allocation135_spill] sm:$0xff]  ;;  %v6693_v54 = vld [vmem:[#allocation136_spill] sm:$0xff] }
 0x531   :  { %4339 = vmatpush1.bf16.msra.mxu0 %v6675_v14  ;;  %4467 = vmatpush1.bf16.msra.mxu1 %v6676_v22  ;;  %v6684_v14 = vld [vmem:[#allocation127_spill] sm:$0xff]  ;;  %v6685_v22 = vld [vmem:[#allocation128_spill] sm:$0xff] }
 0x532   :  { %4341 = vmatprep.subr.bf16.mxu0 %v6677_v24  ;;  %4469 = vmatprep.subr.bf16.mxu1 %v6678_v8  ;;  %v6686_v24 = vld [vmem:[#allocation129_spill] sm:$0xff]  ;;  %v6687_v8 = vld [vmem:[#allocation130_spill] sm:$0xff] }
 0x535   :  { %4343 = vmatpush1.bf16.msra.mxu0 %v6679_v33  ;;  %4471 = vmatpush1.bf16.msra.mxu1 %v6680_v7  ;;  %v4742_v33 = vadd.f32 %v5911_v3, %v2369_v19  ;;  %v6688_v7 = vld [vmem:[#allocation131_spill] sm:$0xff]  ;;  %v6731_v3 = vld [vmem:[#allocation93_spill] sm:$0xff] }
 0x536   :  { %4345 = vmatprep.subr.bf16.mxu0 %v6681_v59  ;;  %4473 = vmatprep.subr.bf16.mxu1 %v6682_v27  ;;  %v6689_v59 = vld [vmem:[#allocation132_spill] sm:$0xff]  ;;  %v6690_v27 = vld [vmem:[#allocation133_spill] sm:$0xff]  ;;  %v6737_v19 = vld [vmem:[#allocation99_spill] sm:$0xff] }
 0x537   :  { %v2668_v1 = vmul.f32 0.2, %v4742_v33  ;;  %vm2664_vm9 = vcmp.ge.f32.partialorder %v4742_v33, 0.0 }
 0x539   :  { %4347 = vmatpush1.bf16.msra.mxu0 %v6684_v14  ;;  %4475 = vmatpush1.bf16.msra.mxu1 %v6685_v22 }
 0x53a   :  { %4349 = vmatprep.subr.bf16.mxu0 %v6686_v24  ;;  %4477 = vmatprep.subr.bf16.mxu1 %v6687_v8  ;;  %v5994_v8 = vsel %vm2664_vm9, %v4742_v33, %v2668_v1  ;;  %v6734_v1 = vld [vmem:[#allocation96_spill] sm:$0xff]  ;;  %v6736_v33 = vld [vmem:[#allocation98_spill] sm:$0xff] }
 0x53d   :  { %4351 = vmatpush1.bf16.msra.mxu0 %v6688_v7  ;;  %4479 = vmatpush1.bf16.msra.mxu1 %v6689_v59 }
 0x53e   :  { %4353 = vmatprep.subr.bf16.mxu0 %v6690_v27  ;;  %4481 = vmatprep.subr.bf16.mxu1 %v6691_v31 }
 0x541   :  { %4355 = vmatpush1.bf16.msra.mxu0 %v6692_v58  ;;  %4483 = vmatpush1.bf16.msra.mxu1 %v6693_v54 }
 0x542   :  { %4485 = vmatprep.subr.bf16.mxu0 %v5182_v30  ;;  %4613 = vmatprep.subr.bf16.mxu1 %v5193_v61  ;;  %v6694_v30 = vld [vmem:[#allocation37_spill] sm:$0xff]  ;;  %v6695_v61 = vld [vmem:[#allocation36_spill] sm:$0xff] }
 0x544   :  { %2810 = vmatmul.mubr.f32.vlgmr.msra.gmra.mrb[16].mxu0 %v5994_v8  ;;  %2952 = vmatmul.mubr.f32.vlgmr.msra.gmra.mrb[16].mxu1 %v5994_v8 }
 0x545   :  { %4487 = vmatpush1.bf16.msra.mxu0 %v5195_v2  ;;  %4615 = vmatpush1.bf16.msra.mxu1 %v5197_v4  ;;  %v6696_v2 = vld [vmem:[#allocation38_spill] sm:$0xff]  ;;  %v6697_v4 = vld [vmem:[#allocation39_spill] sm:$0xff] }
 0x546   :  { %4489 = vmatprep.subr.bf16.mxu0 %v5201_v0  ;;  %4617 = vmatprep.subr.bf16.mxu1 %v5205_v11  ;;  %v6698_v0 = vld [vmem:[#allocation40_spill] sm:$0xff]  ;;  %v6699_v11 = vld [vmem:[#allocation41_spill] sm:$0xff] }
 0x549   :  { %4491 = vmatpush1.bf16.msra.mxu0 %v5207_v12  ;;  %4619 = vmatpush1.bf16.msra.mxu1 %v5211_v17  ;;  %v6700_v12 = vld [vmem:[#allocation42_spill] sm:$0xff]  ;;  %v6701_v17 = vld [vmem:[#allocation43_spill] sm:$0xff] }
 0x54a   :  { %4493 = vmatprep.subr.bf16.mxu0 %v5215_v15  ;;  %4621 = vmatprep.subr.bf16.mxu1 %v5217_v21  ;;  %v6702_v15 = vld [vmem:[#allocation44_spill] sm:$0xff]  ;;  %v6703_v21 = vld [vmem:[#allocation45_spill] sm:$0xff] }
 0x54d   :  { %4495 = vmatpush1.bf16.msra.mxu0 %v5219_v25  ;;  %4623 = vmatpush1.bf16.msra.mxu1 %v5225_v35  ;;  %v6704_v25 = vld [vmem:[#allocation46_spill] sm:$0xff]  ;;  %v6706_v35 = vld [vmem:[#allocation48_spill] sm:$0xff] }
 0x54e   :  { %4497 = vmatprep.subr.bf16.mxu0 %v5222_v29  ;;  %4625 = vmatprep.subr.bf16.mxu1 %v5229_v38  ;;  %v6705_v29 = vld [vmem:[#allocation47_spill] sm:$0xff]  ;;  %v6707_v38 = vld [vmem:[#allocation49_spill] sm:$0xff] }
 0x551   :  { %4499 = vmatpush1.bf16.msra.mxu0 %v5231_v39  ;;  %4627 = vmatpush1.bf16.msra.mxu1 %v5237_v46  ;;  %v6708_v39 = vld [vmem:[#allocation50_spill] sm:$0xff]  ;;  %v6710_v46 = vld [vmem:[#allocation52_spill] sm:$0xff] }
 0x552   :  { %4501 = vmatprep.subr.bf16.mxu0 %v5234_v43  ;;  %4629 = vmatprep.subr.bf16.mxu1 %v5241_v47  ;;  %v6709_v43 = vld [vmem:[#allocation51_spill] sm:$0xff]  ;;  %v6711_v47 = vld [vmem:[#allocation53_spill] sm:$0xff] }
 0x555   :  { %4503 = vmatpush1.bf16.msra.mxu0 %v5244_v51  ;;  %4631 = vmatpush1.bf16.msra.mxu1 %v5247_v53  ;;  %v6712_v51 = vld [vmem:[#allocation54_spill] sm:$0xff] }
 0x556   :  { %4505 = vmatprep.subr.bf16.mxu0 %v5251_v57  ;;  %4633 = vmatprep.subr.bf16.mxu1 %v5253_v32 }
 0x559   :  { %4507 = vmatpush1.bf16.msra.mxu0 %v5255_v62  ;;  %4635 = vmatpush1.bf16.msra.mxu1 %v5259_v5 }
 0x55a   :  { %4509 = vmatprep.subr.bf16.mxu0 %v5263_v9  ;;  %4637 = vmatprep.subr.bf16.mxu1 %v5265_v10 }
 0x55d   :  { %4511 = vmatpush1.bf16.msra.mxu0 %v5267_v18  ;;  %4639 = vmatpush1.bf16.msra.mxu1 %v5273_v28 }
 0x55e   :  { %4513 = vmatprep.subr.bf16.mxu0 %v5270_v23  ;;  %4641 = vmatprep.subr.bf16.mxu1 %v5277_v34  ;;  %v6713_v34 = vld [vmem:[#allocation72_spill] sm:$0xff] }
 0x561   :  { %4515 = vmatpush1.bf16.msra.mxu0 %v5279_v36  ;;  %4643 = vmatpush1.bf16.msra.mxu1 %v6592_v44  ;;  %v6714_v36 = vld [vmem:[#allocation73_spill] sm:$0xff]  ;;  %v6715_v44 = vld [vmem:[#allocation75_spill] sm:$0xff] }
 0x562   :  { %4517 = vmatprep.subr.bf16.mxu0 %v6593_v60  ;;  %4645 = vmatprep.subr.bf16.mxu1 %v6594_v45  ;;  %v6716_v60 = vld [vmem:[#allocation76_spill] sm:$0xff]  ;;  %v6717_v45 = vld [vmem:[#allocation77_spill] sm:$0xff] }
 0x565   :  { %4519 = vmatpush1.bf16.msra.mxu0 %v6595_v26  ;;  %4647 = vmatpush1.bf16.msra.mxu1 %v6596_v50  ;;  %v6718_v26 = vld [vmem:[#allocation78_spill] sm:$0xff]  ;;  %v6719_v50 = vld [vmem:[#allocation79_spill] sm:$0xff] }
 0x566   :  { %4521 = vmatprep.subr.bf16.mxu0 %v6597_v6  ;;  %4649 = vmatprep.subr.bf16.mxu1 %v6598_v56  ;;  %v6720_v6 = vld [vmem:[#allocation80_spill] sm:$0xff]  ;;  %v6721_v56 = vld [vmem:[#allocation81_spill] sm:$0xff] }
 0x569   :  { %4523 = vmatpush1.bf16.msra.mxu0 %v6599_v42  ;;  %4651 = vmatpush1.bf16.msra.mxu1 %v6600_v48  ;;  %v6722_v42 = vld [vmem:[#allocation82_spill] sm:$0xff]  ;;  %v6723_v48 = vld [vmem:[#allocation84_spill] sm:$0xff] }
 0x56a   :  { %4525 = vmatprep.subr.bf16.mxu0 %v6601_v49  ;;  %4653 = vmatprep.subr.bf16.mxu1 %v6602_v37  ;;  %v6724_v49 = vld [vmem:[#allocation85_spill] sm:$0xff]  ;;  %v6725_v37 = vld [vmem:[#allocation87_spill] sm:$0xff] }
 0x56d   :  { %4527 = vmatpush1.bf16.msra.mxu0 %v6603_v13  ;;  %4655 = vmatpush1.bf16.msra.mxu1 %v6604_v40  ;;  %v6726_v13 = vld [vmem:[#allocation88_spill] sm:$0xff]  ;;  %v6727_v40 = vld [vmem:[#allocation89_spill] sm:$0xff] }
 0x56e   :  { %4529 = vmatprep.subr.bf16.mxu0 %v6605_v55  ;;  %4657 = vmatprep.subr.bf16.mxu1 %v6606_v16  ;;  %v6728_v55 = vld [vmem:[#allocation90_spill] sm:$0xff]  ;;  %v6729_v16 = vld [vmem:[#allocation91_spill] sm:$0xff] }
 0x571   :  { %4531 = vmatpush1.bf16.msra.mxu0 %v6607_v20  ;;  %4659 = vmatpush1.bf16.msra.mxu1 %v6694_v30  ;;  %v6730_v20 = vld [vmem:[#allocation92_spill] sm:$0xff] }
 0x572   :  { %4533 = vmatprep.subr.bf16.mxu0 %v6695_v61  ;;  %4661 = vmatprep.subr.bf16.mxu1 %v6696_v2  ;;  %v6738_v30 = vld [vmem:[#allocation100_spill] sm:$0xff]  ;;  %v6739_v61 = vld [vmem:[#allocation101_spill] sm:$0xff]  ;;  %v6740_v2 = vld [vmem:[#allocation102_spill] sm:$0xff] }
 0x575   :  { %4535 = vmatpush1.bf16.msra.mxu0 %v6697_v4  ;;  %4663 = vmatpush1.bf16.msra.mxu1 %v6698_v0  ;;  %v6741_v4 = vld [vmem:[#allocation103_spill] sm:$0xff]  ;;  %v6742_v0 = vld [vmem:[#allocation104_spill] sm:$0xff] }
 0x576   :  { %4537 = vmatprep.subr.bf16.mxu0 %v6699_v11  ;;  %4665 = vmatprep.subr.bf16.mxu1 %v6700_v12  ;;  %v6743_v11 = vld [vmem:[#allocation105_spill] sm:$0xff]  ;;  %v6744_v12 = vld [vmem:[#allocation106_spill] sm:$0xff] }
 0x579   :  { %4539 = vmatpush1.bf16.msra.mxu0 %v6701_v17  ;;  %4667 = vmatpush1.bf16.msra.mxu1 %v6702_v15  ;;  %v6745_v17 = vld [vmem:[#allocation107_spill] sm:$0xff]  ;;  %v6746_v15 = vld [vmem:[#allocation108_spill] sm:$0xff] }
 0x57a   :  { %4541 = vmatprep.subr.bf16.mxu0 %v6703_v21  ;;  %4669 = vmatprep.subr.bf16.mxu1 %v6704_v25  ;;  %v6747_v21 = vld [vmem:[#allocation109_spill] sm:$0xff]  ;;  %v6748_v25 = vld [vmem:[#allocation110_spill] sm:$0xff] }
 0x57d   :  { %4543 = vmatpush1.bf16.msra.mxu0 %v6705_v29  ;;  %4671 = vmatpush1.bf16.msra.mxu1 %v6706_v35  ;;  %v6749_v29 = vld [vmem:[#allocation111_spill] sm:$0xff]  ;;  %v6750_v35 = vld [vmem:[#allocation112_spill] sm:$0xff] }
 0x57e   :  { %4545 = vmatprep.subr.bf16.mxu0 %v6707_v38  ;;  %4673 = vmatprep.subr.bf16.mxu1 %v6708_v39  ;;  %v6751_v38 = vld [vmem:[#allocation113_spill] sm:$0xff]  ;;  %v6752_v39 = vld [vmem:[#allocation114_spill] sm:$0xff] }
 0x581   :  { %4547 = vmatpush1.bf16.msra.mxu0 %v6709_v43  ;;  %4675 = vmatpush1.bf16.msra.mxu1 %v6710_v46  ;;  %v6753_v43 = vld [vmem:[#allocation115_spill] sm:$0xff]  ;;  %v6754_v46 = vld [vmem:[#allocation116_spill] sm:$0xff] }
 0x582   :  { %4549 = vmatprep.subr.bf16.mxu0 %v6711_v47  ;;  %4677 = vmatprep.subr.bf16.mxu1 %v6712_v51  ;;  %v6755_v47 = vld [vmem:[#allocation117_spill] sm:$0xff]  ;;  %v6756_v51 = vld [vmem:[#allocation118_spill] sm:$0xff] }
 0x617   :  { %v2811_v53 = vpop.f32.mrb[16].mxu0  ;;  %v6062_v57 = vpop.f32.mrb[16].mxu1 }
 0x618   :  { %v6065_v32 = vsub.f32 %v5917_v41, %v2811_v53  ;;  %v2813_v62 = vpop.f32.mrb[17].mxu0  ;;  %v2955_v5 = vpop.f32.mrb[17].mxu1  ;;  %v6733_v41 = vld [vmem:[#allocation95_spill] sm:$0xff] }
 0x619   :  { %v6068_v9 = vsub.f32 %v5913_v63, %v2813_v62  ;;  %v6071_v10 = vsub.f32 %v5923_v52, %v2955_v5  ;;  %v6732_v63 = vld [vmem:[#allocation94_spill] sm:$0xff]  ;;  %v6735_v52 = vld [vmem:[#allocation97_spill] sm:$0xff]  ;;  %v6757_v53 = vld [vmem:[#allocation119_spill] sm:$0xff] }
 0x61a   :  { %v2962_v23 = vmul.f32 %v6065_v32, %v6065_v32  ;;  %v6758_v62 = vld [vmem:[#allocation120_spill] sm:$0xff]  ;;  %v6759_v5 = vld [vmem:[#allocation121_spill] sm:$0xff] }
 0x61b   :  { %v2963_v18 = vmul.f32 %v6068_v9, %v6068_v9  ;;  %v2965_v28 = vmul.f32 %v6071_v10, %v6071_v10 }
 0x61d   :  { %3030 = vmatprep.mubr.f32.mxu0 %v2963_v18  ;;  %3172 = vmatprep.mubr.f32.mxu1 %v2963_v18  ;;  %v6760_v18 = vld [vmem:[#allocation122_spill] sm:$0xff] }
 0x61e   :  { %3031 = vmatmul.mubr.f32.vlgmr.msra.gmra.mrb[18].mxu0 %v2962_v23  ;;  %3173 = vmatmul.mubr.f32.vlgmr.msra.gmra.mrb[18].mxu1 %v2962_v23  ;;  %v6761_v23 = vld [vmem:[#allocation123_spill] sm:$0xff] }
 0x61f   :  { %4551 = vmatpush1.bf16.msra.mxu0 %v6713_v34  ;;  %4679 = vmatpush1.bf16.msra.mxu1 %v6714_v36  ;;  %v6763_v34 = vld [vmem:[#allocation125_spill] sm:$0xff]  ;;  %v6764_v36 = vld [vmem:[#allocation126_spill] sm:$0xff] }
 0x620   :  { %3101 = vmatprep.mubr.f32.mxu0 %v2965_v28  ;;  %3243 = vmatprep.mubr.f32.mxu1 %v2965_v28  ;;  %v6762_v28 = vld [vmem:[#allocation124_spill] sm:$0xff] }
 0x621   :  { %4553 = vmatprep.subr.bf16.mxu0 %v6715_v44  ;;  %4681 = vmatprep.subr.bf16.mxu1 %v6716_v60  ;;  %v6765_v44 = vld [vmem:[#allocation130_spill] sm:$0xff]  ;;  %v2960_v60 = vsub.f32 %v5994_v8, %v6062_v57  ;;  %v6766_v8 = vld [vmem:[#allocation57_spill] sm:$0xff]  ;;  %v6767_v57 = vld [vmem:[#allocation55_spill] sm:$0xff] }
 0x623   :  { %4555 = vmatpush1.bf16.msra.mxu0 %v6717_v45  ;;  %4683 = vmatpush1.bf16.msra.mxu1 %v6718_v26 }
 0x624   :  { %4557 = vmatprep.subr.bf16.mxu0 %v6719_v50  ;;  %4685 = vmatprep.subr.bf16.mxu1 %v6720_v6 }
 0x627   :  { %4559 = vmatpush1.bf16.msra.mxu0 %v6721_v56  ;;  %4687 = vmatpush1.bf16.msra.mxu1 %v6722_v42  ;;  %v4812_v42 = vld [vmem:[#allocation7 + $0x8] sm:$0x3f] }
 0x628   :  { %4561 = vmatprep.subr.bf16.mxu0 %v6723_v48  ;;  %4689 = vmatprep.subr.bf16.mxu1 %v6724_v49 }
 0x62b   :  { %4563 = vmatpush1.bf16.msra.mxu0 %v6725_v37  ;;  %4691 = vmatpush1.bf16.msra.mxu1 %v6726_v13  ;;  %v4813_v13 = vld [vmem:[#allocation7 + $0x18] sm:$0x3f] }
 0x62c   :  { %4565 = vmatprep.subr.bf16.mxu0 %v6727_v40  ;;  %4693 = vmatprep.subr.bf16.mxu1 %v6728_v55 }
 0x62f   :  { %4567 = vmatpush1.bf16.msra.mxu0 %v6729_v16  ;;  %4695 = vmatpush1.bf16.msra.mxu1 %v6730_v20  ;;  %v6768_v20 = vld [vmem:[#allocation64_spill] sm:$0xff] }
 0x630   :  { %4569 = vmatprep.subr.bf16.mxu0 %v6731_v3  ;;  %4697 = vmatprep.subr.bf16.mxu1 %v6732_v63 }
 0x633   :  { %4571 = vmatpush1.bf16.msra.mxu0 %v6733_v41  ;;  %4699 = vmatpush1.bf16.msra.mxu1 %v6734_v1 }
 0x634   :  { %4573 = vmatprep.subr.bf16.mxu0 %v6735_v52  ;;  %4701 = vmatprep.subr.bf16.mxu1 %v6736_v33  ;;  %v6769_v52 = vld [vmem:[#allocation70_spill] sm:$0xff] }
 0x637   :  { %4575 = vmatpush1.bf16.msra.mxu0 %v6737_v19  ;;  %4703 = vmatpush1.bf16.msra.mxu1 %v6738_v30 }
 0x638   :  { %4577 = vmatprep.subr.bf16.mxu0 %v6739_v61  ;;  %4705 = vmatprep.subr.bf16.mxu1 %v6740_v2  ;;  %v6770_v2 = vld [vmem:[#allocation65_spill] sm:$0xff] }
 0x63b   :  { %4579 = vmatpush1.bf16.msra.mxu0 %v6741_v4  ;;  %4707 = vmatpush1.bf16.msra.mxu1 %v6742_v0  ;;  %v6771_v0 = vld [vmem:[#allocation68_spill] sm:$0xff] }
 0x63c   :  { %4581 = vmatprep.subr.bf16.mxu0 %v6743_v11  ;;  %4709 = vmatprep.subr.bf16.mxu1 %v6744_v12 }
 0x63f   :  { %4583 = vmatpush1.bf16.msra.mxu0 %v6745_v17  ;;  %4711 = vmatpush1.bf16.msra.mxu1 %v6746_v15  ;;  %v6772_v15 = vld [vmem:[#allocation71_spill] sm:$0xff] }
 0x640   :  { %4585 = vmatprep.subr.bf16.mxu0 %v6747_v21  ;;  %4713 = vmatprep.subr.bf16.mxu1 %v6748_v25  ;;  %v6773_v25 = vld [vmem:[#allocation83_spill] sm:$0xff] }
 0x643   :  { %4587 = vmatpush1.bf16.msra.mxu0 %v6749_v29  ;;  %4715 = vmatpush1.bf16.msra.mxu1 %v6750_v35 }
 0x644   :  { %4589 = vmatprep.subr.bf16.mxu0 %v6751_v38  ;;  %4717 = vmatprep.subr.bf16.mxu1 %v6752_v39  ;;  %v6774_v38 = vld [vmem:[#allocation69_spill] sm:$0xff] }
 0x647   :  { %4591 = vmatpush1.bf16.msra.mxu0 %v6753_v43  ;;  %4719 = vmatpush1.bf16.msra.mxu1 %v6754_v46 }
 0x648   :  { %4593 = vmatprep.subr.bf16.mxu0 %v6755_v47  ;;  %4721 = vmatprep.subr.bf16.mxu1 %v6756_v51  ;;  %v6775_v47 = vld [vmem:[#allocation86_spill] sm:$0xff] }
 0x64b   :  { %4595 = vmatpush1.bf16.msra.mxu0 %v6757_v53  ;;  %4723 = vmatpush1.bf16.msra.mxu1 %v6758_v62 }
 0x64c   :  { %4597 = vmatprep.subr.bf16.mxu0 %v6759_v5  ;;  %4725 = vmatprep.subr.bf16.mxu1 %v6760_v18 }
 0x64f   :  { %4599 = vmatpush1.bf16.msra.mxu0 %v6761_v23  ;;  %4727 = vmatpush1.bf16.msra.mxu1 %v6762_v28 }
 0x650   :  { %4601 = vmatprep.subr.bf16.mxu0 %v6763_v34  ;;  %4729 = vmatprep.subr.bf16.mxu1 %v6764_v36 }
 0x653   :  { %4603 = vmatpush1.bf16.msra.mxu0 %v6684_v14  ;;  %4731 = vmatpush1.bf16.msra.mxu1 %v6685_v22  ;;  %v2964_v22 = vmul.f32 %v2960_v60, %v2960_v60 }
 0x654   :  { %4605 = vmatprep.subr.bf16.mxu0 %v6686_v24  ;;  %4733 = vmatprep.subr.bf16.mxu1 %v6765_v44 }
 0x657   :  { %4607 = vmatpush1.bf16.msra.mxu0 %v6688_v7  ;;  %4735 = vmatpush1.bf16.msra.mxu1 %v6689_v59 }
 0x658   :  { %4609 = vmatprep.subr.bf16.mxu0 %v6690_v27  ;;  %4737 = vmatprep.subr.bf16.mxu1 %v6691_v31  ;;  %v863_v27 = vsub.s32 3, %v6766_v8  ;;  %v883_v31 = vsub.s32 4, %v6766_v8 }
 0x65a   :  { %v872_v56 = vrot.slane %v6767_v57, %v863_v27  ;;  %v868_v48 = vrot.slane %v4812_v42, %v863_v27  ;;  %v876_v40 = vrot.slane %v4813_v13, %v863_v27  ;;  %v892_v55 = vrot.slane %v6767_v57, %v883_v31 }
 0x65b   :  { %4611 = vmatpush1.bf16.msra.mxu0 %v6692_v58  ;;  %4739 = vmatpush1.bf16.msra.mxu1 %v6693_v54  ;;  %v4811_v54 = vld [vmem:[#allocation7] sm:$0x3f]  ;;  %v888_v63 = vrot.slane %v4812_v42, %v883_v31  ;;  %v896_v19 = vrot.slane %v4813_v13, %v883_v31 }
 0x65c   :  { %v864_v58 = vrot.slane %v4811_v54, %v863_v27  ;;  %v884_v49 = vrot.slane %v4811_v54, %v883_v31  ;;  %v879_v33 = vadd.f32 %v872_v56, %v6769_v52  ;;  %v878_v4 = vadd.f32 %v868_v48, %v6770_v2 }
 0x65d   :  { %v880_v21 = vadd.f32 %v876_v40, %v6772_v15  ;;  %v899_v29 = vadd.f32 %v892_v55, %v6773_v25  ;;  %v898_v39 = vadd.f32 %v888_v63, %v6774_v38  ;;  %v900_v51 = vadd.f32 %v896_v19, %v6775_v47 }
 0x65e   :  { %3102 = vmatmul.mubr.f32.vlgmr.msra.gmra.mrb[18].mxu0 %v2964_v22  ;;  %3244 = vmatmul.mubr.f32.vlgmr.msra.gmra.mrb[18].mxu1 %v2964_v22  ;;  %v877_v3 = vadd.f32 %v864_v58, %v6768_v20  ;;  %v897_v11 = vadd.f32 %v884_v49, %v6771_v0 }
 0x731   :  { %v3103_v24 = vpop.f32.mrb[18].mxu0  ;;  %v3245_v14 = vpop.f32.mrb[18].mxu1 }
 0x732   :  { %v4748_v45 = vadd.f32 1e-08, %v3103_v24  ;;  %v4750_v7 = vadd.f32 1e-08, %v3245_v14  ;;  %v3105_v26 = vpop.f32.mrb[19].mxu0  ;;  %v3247_v59 = vpop.f32.mrb[19].mxu1 }
 0x733   :  { %v4749_v50 = vadd.f32 1e-08, %v3105_v26  ;;  %v4751_v6 = vadd.f32 1e-08, %v3247_v59 }
 0x734   :  { %4799 = vrsqrt.f32 %v4748_v45 }
 0x735   :  { %4801 = vrsqrt.f32 %v4750_v7 }
 0x736   :  { %4803 = vrsqrt.f32 %v4749_v50 }
 0x737   :  { %4805 = vrsqrt.f32 %v4751_v6 }
 0x73e   :  { %v4800_v37 = vpop.eup %4799 }
 0x73f   :  { %v4802_v16 = vpop.eup %4801  ;;  %v3254_v41 = vmul.f32 %v4800_v37, %v6065_v32 }
 0x740   :  { %v4804_v1 = vpop.eup %4803  ;;  %v3256_v30 = vmul.f32 %v4802_v16, %v2960_v60 }
 0x741   :  { %v4806_v61 = vpop.eup %4805  ;;  %v3255_v12 = vmul.f32 %v4804_v1, %v6068_v9  ;;  %v3258_v17 = vmul.f32 %v3254_v41, %v877_v3 }
 0x742   :  { %v3257_v35 = vmul.f32 %v4806_v61, %v6071_v10  ;;  %v3260_v32 = vmul.f32 %v3256_v30, %v879_v33 }
 0x743   :  { %v3259_v43 = vmul.f32 %v3255_v12, %v878_v4  ;;  %v3262_v46 = vadd.f32 %v3258_v17, %v897_v11 }
 0x744   :  { %v3261_v53 = vmul.f32 %v3257_v35, %v880_v21  ;;  %v3264_v62 = vadd.f32 %v3260_v32, %v899_v29 }
 0x745   :  { %v3263_v5 = vadd.f32 %v3259_v43, %v898_v39  ;;  %3266 = vst [vmem:[#allocation14] sm:$0xff] %v3262_v46 }
 0x746   :  { %v3265_v9 = vadd.f32 %v3261_v53, %v900_v51  ;;  %3268 = vst [vmem:[#allocation14 + $0x10] sm:$0xff] %v3264_v62 }
 0x747   :  { %3267 = vst [vmem:[#allocation14 + $0x8] sm:$0xff] %v3263_v5 }
 0x748   :  { %3269 = vst [vmem:[#allocation14 + $0x18] sm:$0xff] %v3265_v9 }
 0x749   :  { %4979 = shalt.err (!%p4976_p4)
}
 0x74a   :  { %s4980_s16 = scalar_lea.hbm %s6177_s7, 512 }
 0x74b   :  { %p4981_p5 = scmp.ne.s32.totalorder %s6177_s7, %s4980_s16  ;;  %p4984_p6 = scmp.lt.u32.totalorder %s4980_s16, %s6177_s7 }
 0x74d   :  { %p4986_p7 = pnand %p4984_p6, %p4981_p5 }
 0x74f   :  { %4989 = shalt.err (!%p4986_p7)
}
 0x750   :  { %3279 = dma.vmem_to_hbm [thread:$0]  %s3277_s3, 512, %s6177_s7, [#allocation4]  }
 0x751   :  { %4998 = dma.done.wait [#allocation4], 512  }
 0x752   :  { %4999 = vsyncadd [#allocation4], 4294966784 }
 0x753   :  { %3283 = vsyncpa [#allocation3], 1 }
 0x754   :  { %3284 = vsyncpa [#allocation6], 1 }
 0x755   :  { %3285 = vsyncpa [#allocation9], 1 }
 0x756   :  { %3286 = vsyncpa [#allocation12], 1 }
 0x757   :  { %3287 = vsyncpa [#allocation4], 1 }

</bundles_post_ra>
